<compile_context>
chip_gen: v5e
topology: v5e:2x2
jax: 0.10.0
libtpu: 0.0.40
codegen_flags: <defaults>
</compile_context>

<pallas_src>
import functools

import jax
import jax.numpy as jnp
from jax import lax
from jax.experimental import pallas as pl
from jax.experimental.pallas import tpu as pltpu


LANE = 128


def _full_spec(shape):
    """Whole-array block (legal for any shape since block == full dims)."""
    nd = len(shape)
    return pl.BlockSpec(shape, lambda i, _nd=nd: (0,) * _nd)


def _round_up(n, m):
    return ((n + m - 1) // m) * m


def _pad_to(x, shape):
    return jnp.pad(x, [(0, t - s) for s, t in zip(x.shape, shape)])


# ----------------------------- Pallas kernel ------------------------------- #

def gcmc_encoder_kernel(u_ref, i_ref, A_hbm, W_ref, Wu_ref, bu_ref, Wi_ref,
                        bi_ref, Wh_ref, bh_ref, uo_ref, io_ref,
                        A_vmem, iw_stack, dma_sem,
                        *, n_layers, n_ratings, ni_p, hp, compute_dtype):
    """Whole encoder fused: n_layers GCMC layers + shared output linear W_h."""
    cd = compute_dtype
    f32 = jnp.float32

    # Single explicit DMA of the layer-invariant normalized adjacency
    # (HBM -> single-buffered VMEM scratch; no pipeline double-buffering).
    cp = pltpu.make_async_copy(A_hbm, A_vmem, dma_sem)
    cp.start()
    u = u_ref[...]                     # (Nu_p, P) f32, carried in VMEM/registers
    it = i_ref[...]                    # (Ni_p, P) f32
    cp.wait()

    for l in range(n_layers):                        # static unroll (L small)
        uc = u.astype(cd)
        itc = it.astype(cd)

        # ---- user-side aggregation as ONE long-K MXU matmul -----------------
        # Stage per-rating item projections at row offset r*Ni_p (128-aligned),
        # then ua = A_cat @ IW_stack with K = R*Ni_p (accumulation in the MXU).
        for r in range(n_ratings):                   # static unroll (R small)
            iw_stack[r * ni_p:(r + 1) * ni_p, :] = jnp.dot(
                itc, W_ref[l * n_ratings + r],
                preferred_element_type=f32).astype(cd)
        ua = jnp.dot(A_vmem[...], iw_stack[...],
                     preferred_element_type=f32)     # (Nu_p, P) f32

        # ---- item-side aggregation: contract A's row axis directly ----------
        # (no materialized A^T; per-rating 128-aligned lane slices of A_cat).
        ia = jnp.zeros((it.shape[0], hp), f32)
        for r in range(n_ratings):
            UWr = jnp.dot(uc, W_ref[l * n_ratings + r],
                          preferred_element_type=f32).astype(cd)   # (Nu_p, P)
            Ar = A_vmem[:, r * ni_p:(r + 1) * ni_p]                # (Nu_p, Ni_p)
            ia = ia + lax.dot_general(
                Ar, UWr, (((0,), (0,)), ((), ())),
                preferred_element_type=f32)                        # (Ni_p, P)

        # aggregation activation (ReLU) on the VPU; dropout == identity.
        hu = jnp.maximum(ua, 0.0)
        hi = jnp.maximum(ia, 0.0)
        # per-side dense projection + output activation (bias adds in f32).
        u = jnp.maximum(
            jnp.dot(hu.astype(cd), Wu_ref[l],
                    preferred_element_type=f32) + bu_ref[l], 0.0)
        it = jnp.maximum(
            jnp.dot(hi.astype(cd), Wi_ref[l],
                    preferred_element_type=f32) + bi_ref[l], 0.0)

    # shared output linear W_h (weight pre-transposed, padded & cast host-side).
    Wh = Wh_ref[...]
    bh = bh_ref[...]
    uo_ref[...] = jnp.dot(u.astype(cd), Wh, preferred_element_type=f32) + bh
    io_ref[...] = jnp.dot(it.astype(cd), Wh, preferred_element_type=f32) + bh


# ------------------------------ host wrapper -------------------------------- #

def gcmc_encoder(ufeats, ifeats, layer_params, Wh, bh, A, CU, CI,
                 compute_dtype=jnp.float32):
    """Fused GCMC encoder forward.

    ufeats : (Nu, Din) f32      ifeats : (Ni, Din) f32
    layer_params : list of dicts with W (R, din, H), Wu/Wi (H, H), bu/bi (1, H)
    Wh : (Dout, H) nn.Linear weight      bh : (1, Dout)
    A  : (R, Nu, Ni) dense per-rating adjacency (0/1)
    CU : (R, Nu, 1), CI : (R, Ni, 1) per-rating 1/sqrt(deg) norms
    """
    R, Nu, Ni = A.shape
    L = len(layer_params)
    H = layer_params[0]["W"].shape[2]
    Dout = Wh.shape[0]
    cd = compute_dtype

    P = max(_round_up(ufeats.shape[1], LANE), _round_up(H, LANE),
            _round_up(Dout, LANE))
    # Node counts padded to the lane width so per-rating column slices of the
    # concatenated adjacency and the transposed-LHS contraction stay aligned.
    Nu_p, Ni_p = _round_up(Nu, LANE), _round_up(Ni, LANE)

    # ---- host-side prep (static given graph & params) -----------------------
    # Fold the symmetric degree norm into the adjacency once:
    #   A_norm[r] = diag(CU[r]) @ A[r] @ diag(CI[r]).
    # Concatenate ratings along the lane axis -> (Nu_p, R*Ni_p) and cast to the
    # compute dtype HOST-side (single copy; no AT; no in-kernel casts of the
    # dominant buffer).
    A_norm = (CU * A) * jnp.transpose(CI, (0, 2, 1))                 # (R, Nu, Ni)
    A_cat = jnp.concatenate(
        [_pad_to(A_norm[r], (Nu_p, Ni_p)) for r in range(R)], axis=1
    ).astype(cd)                                                     # (Nu_p, R*Ni_p)

    u_p = _pad_to(ufeats, (Nu_p, P))
    i_p = _pad_to(ifeats, (Ni_p, P))

    W_all, Wu_all, bu_all, Wi_all, bi_all = [], [], [], [], []
    for p in layer_params:
        W = p["W"]                                                   # (R, din, H)
        for r in range(R):
            W_all.append(_pad_to(W[r], (P, P)))
        Wu_all.append(_pad_to(p["Wu"], (P, P)))
        Wi_all.append(_pad_to(p["Wi"], (P, P)))
        bu_all.append(_pad_to(p["bu"], (1, P)))
        bi_all.append(_pad_to(p["bi"], (1, P)))
    W_all = jnp.stack(W_all).astype(cd)                              # (L*R, P, P)
    Wu_all = jnp.stack(Wu_all).astype(cd)                            # (L, P, P)
    Wi_all = jnp.stack(Wi_all).astype(cd)
    bu_all = jnp.stack(bu_all)                                       # (L, 1, P) f32
    bi_all = jnp.stack(bi_all)
    Wh_p = _pad_to(Wh.T, (P, P)).astype(cd)                          # (P, P)
    bh_p = _pad_to(bh, (1, P))

    blocked = (u_p, i_p, W_all, Wu_all, bu_all, Wi_all, bi_all, Wh_p, bh_p)

    # ---- explicit VMEM budget ------------------------------------------------
    itemsize = jnp.dtype(cd).itemsize
    in_bytes = sum(int(a.size) * a.dtype.itemsize for a in blocked)
    adj_bytes = int(A_cat.size) * A_cat.dtype.itemsize               # single copy
    stack_bytes = R * Ni_p * P * itemsize
    out_bytes = (Nu_p + Ni_p) * P * 4
    interm_bytes = 12 * (Nu_p + Ni_p) * P * 4                        # live f32 temps
    resident = (2 * in_bytes + 2 * out_bytes + adj_bytes + stack_bytes
                + interm_bytes)
    vmem_cap = 64 << 20                                              # v7x floor
    try:
        vmem_cap = int(getattr(pltpu.get_tpu_info(), "vmem_capacity_bytes",
                               vmem_cap))
    except Exception:
        pass
    vmem_limit = int(min(max(resident + (4 << 20), 32 << 20),
                         (vmem_cap * 7) // 8))

    # ---- cost estimate (scheduling hint for XLA around the fused call) ------
    agg_flops = 2 * 2 * R * Nu_p * Ni_p * P
    proj_flops = 2 * R * (Nu_p + Ni_p) * P * P
    dense_flops = 2 * (Nu_p + Ni_p) * P * P
    flops = L * (agg_flops + proj_flops + dense_flops) + 2 * (Nu_p + Ni_p) * P * P
    cost = pl.CostEstimate(flops=int(flops), transcendentals=0,
                           bytes_accessed=int(in_bytes + adj_bytes + out_bytes))

    kernel = functools.partial(gcmc_encoder_kernel, n_layers=L, n_ratings=R,
                               ni_p=Ni_p, hp=P, compute_dtype=cd)

    in_specs = ([_full_spec(u_p.shape), _full_spec(i_p.shape),
                 pl.BlockSpec(memory_space=pl.ANY)]                  # adjacency
                + [_full_spec(a.shape) for a in
                   (W_all, Wu_all, bu_all, Wi_all, bi_all, Wh_p, bh_p)])

    u_out, i_out = pl.pallas_call(
        kernel,
        grid=(1,),
        in_specs=in_specs,
        out_specs=[_full_spec((Nu_p, P)), _full_spec((Ni_p, P))],
        out_shape=(jax.ShapeDtypeStruct((Nu_p, P), jnp.float32),
                   jax.ShapeDtypeStruct((Ni_p, P), jnp.float32)),
        scratch_shapes=[
            pltpu.VMEM((Nu_p, R * Ni_p), cd),    # single-buffered adjacency copy
            pltpu.VMEM((R * Ni_p, P), cd),       # stacked per-rating item proj.
            pltpu.SemaphoreType.DMA(()),
        ],
        compiler_params=pltpu.CompilerParams(
            dimension_semantics=("arbitrary",),
            vmem_limit_bytes=vmem_limit),
        cost_estimate=cost,
    )(u_p, i_p, A_cat, W_all, Wu_all, bu_all, Wi_all, bi_all, Wh_p, bh_p)

    return u_out[:Nu, :Dout], i_out[:Ni, :Dout]


# --------------------------- pure-JAX reference ----------------------------- #

def gcmc_encoder_ref(ufeats, ifeats, layer_params, Wh_t, bh, A, AT, CU, CI):
    u, it = ufeats, ifeats
    R = A.shape[0]
    for p in layer_params:
        W, Wu, bu, Wi, bi = p["W"], p["Wu"], p["bu"], p["Wi"], p["bi"]
        H = W.shape[2]
        ua = jnp.zeros((u.shape[0], H), jnp.float32)
        ia = jnp.zeros((it.shape[0], H), jnp.float32)
        for r in range(R):
            ia = ia + CI[r] * (AT[r] @ ((u * CU[r]) @ W[r]))
            ua = ua + CU[r] * (A[r] @ ((it * CI[r]) @ W[r]))
        hu, hi = jnp.maximum(ua, 0.0), jnp.maximum(ia, 0.0)
        u = jnp.maximum(hu @ Wu + bu, 0.0)
        it = jnp.maximum(hi @ Wi + bi, 0.0)
    return u @ Wh_t + bh, it @ Wh_t + bh


# ----------------------------------- main ------------------------------------ #

def xavier_normal(key, shape):
    fan_in, fan_out = shape[-2], shape[-1]
    std = (2.0 / (fan_in + fan_out)) ** 0.5
    return std * jax.random.normal(key, shape, jnp.float32)


if __name__ == "__main__":
    key = jax.random.PRNGKey(0)

    # module hyper-params (small, deterministic)
    n_layers = 2
    edge_types = [1, 2, 3]       # 3 rating levels
    R = len(edge_types)
    in_feats_dim = 16
    hidden_feats_dim = 32
    out_feats_dim = 32
    n_users, n_items = 8, 12

    keys = jax.random.split(key, 16)

    # node features
    ufeats = jax.random.normal(keys[0], (n_users, in_feats_dim), jnp.float32)
    ifeats = jax.random.normal(keys[1], (n_items, in_feats_dim), jnp.float32)

    # bipartite graph: each (user, item) pair has rating in {0=no edge, 1..R}
    ratings = jax.random.randint(keys[2], (n_users, n_items), 0, R + 1)
    A = jnp.stack([(ratings == (r + 1)).astype(jnp.float32) for r in range(R)])
    AT = jnp.transpose(A, (0, 2, 1))     # reference only

    # per-rating symmetric degree normalisation 1/sqrt(deg), 0 for isolated nodes
    du = A.sum(axis=2)                                   # (R, Nu)
    di = A.sum(axis=1)                                   # (R, Ni)
    CU = jnp.where(du > 0, 1.0 / jnp.sqrt(jnp.maximum(du, 1.0)), 0.0)[:, :, None]
    CI = jnp.where(di > 0, 1.0 / jnp.sqrt(jnp.maximum(di, 1.0)), 0.0)[:, :, None]

    # deterministic parameter init
    layer_params = []
    din = in_feats_dim
    for l in range(n_layers):
        k = jax.random.split(keys[3 + l], 4)
        layer_params.append(dict(
            W=xavier_normal(k[0], (R, din, hidden_feats_dim)),     # per-rating W_r
            Wu=xavier_normal(k[1], (hidden_feats_dim, hidden_feats_dim)),
            bu=jnp.zeros((1, hidden_feats_dim), jnp.float32),
            Wi=xavier_normal(k[2], (hidden_feats_dim, hidden_feats_dim)),
            bi=jnp.zeros((1, hidden_feats_dim), jnp.float32),
        ))
        din = hidden_feats_dim

    Wh = xavier_normal(keys[10], (out_feats_dim, hidden_feats_dim))  # nn.Linear weight
    bh = jnp.zeros((1, out_feats_dim), jnp.float32)

    # pure-JAX reference
    u_ref, i_ref = gcmc_encoder_ref(ufeats, ifeats, layer_params, Wh.T, bh,
                                    A, AT, CU, CI)

    # f32 compute path: exact reference check.
    u_out, i_out = gcmc_encoder(ufeats, ifeats, layer_params, Wh, bh,
                                A, CU, CI, compute_dtype=jnp.float32)
    jax.block_until_ready((u_out, i_out))
    assert u_out.shape == (n_users, out_feats_dim)
    assert i_out.shape == (n_items, out_feats_dim)
    assert jnp.allclose(u_out, u_ref, atol=2e-4, rtol=2e-4)
    assert jnp.allclose(i_out, i_ref, atol=2e-4, rtol=2e-4)

    # bf16 MXU-operand path (host-cast adjacency/weights, f32 accumulation):
    # halves adjacency DMA/VMEM and runs at native MXU rate on v6e/v7x.
    # Looser tolerance accounts for bf16 rounding of operands.
    u_bf, i_bf = gcmc_encoder(ufeats, ifeats, layer_params, Wh, bh,
                              A, CU, CI, compute_dtype=jnp.bfloat16)
    jax.block_until_ready((u_bf, i_bf))
    assert jnp.allclose(u_bf, u_ref, atol=1e-1, rtol=1e-1)
    assert jnp.allclose(i_bf, i_ref, atol=1e-1, rtol=1e-1)

    print("KERNEL_OK")
</pallas_src>

<mosaic_0001>
module attributes {stable_mosaic.version = 11 : i64} {
  func.func @gcmc_encoder_kernel(%arg0: i32, %arg1: memref<128x128xf32, #tpu.memory_space<vmem>>, %arg2: memref<128x128xf32, #tpu.memory_space<vmem>>, %arg3: memref<128x384xf32, #tpu.memory_space<any>>, %arg4: memref<6x128x128xf32, #tpu.memory_space<vmem>>, %arg5: memref<2x128x128xf32, #tpu.memory_space<vmem>>, %arg6: memref<2x1x128xf32, #tpu.memory_space<vmem>>, %arg7: memref<2x128x128xf32, #tpu.memory_space<vmem>>, %arg8: memref<2x1x128xf32, #tpu.memory_space<vmem>>, %arg9: memref<128x128xf32, #tpu.memory_space<vmem>>, %arg10: memref<1x128xf32, #tpu.memory_space<vmem>>, %arg11: memref<128x128xf32, #tpu.memory_space<vmem>>, %arg12: memref<128x128xf32, #tpu.memory_space<vmem>>, %arg13: memref<128x384xf32, #tpu.memory_space<vmem>>, %arg14: memref<384x128xf32, #tpu.memory_space<vmem>>, %arg15: memref<!tpu.dma_semaphore, #tpu.memory_space<semaphore_mem>>) attributes {dimension_semantics = [#tpu.dimension_semantics<arbitrary>], iteration_bounds = array<i64: 1>, scalar_prefetch = 0 : i64, scratch_operands = 3 : i64, tpu.core_type = #tpu.core_type<tc>, window_params = [{pipeline_mode = #tpu.pipeline_mode<synchronous>, transform_indices = @transform_0, window_bounds = array<i64: 128, 128>}, {pipeline_mode = #tpu.pipeline_mode<synchronous>, transform_indices = @transform_1, window_bounds = array<i64: 128, 128>}, {}, {pipeline_mode = #tpu.pipeline_mode<synchronous>, transform_indices = @transform_3, window_bounds = array<i64: 6, 128, 128>}, {pipeline_mode = #tpu.pipeline_mode<synchronous>, transform_indices = @transform_4, window_bounds = array<i64: 2, 128, 128>}, {pipeline_mode = #tpu.pipeline_mode<synchronous>, transform_indices = @transform_5, window_bounds = array<i64: 2, 1, 128>}, {pipeline_mode = #tpu.pipeline_mode<synchronous>, transform_indices = @transform_6, window_bounds = array<i64: 2, 128, 128>}, {pipeline_mode = #tpu.pipeline_mode<synchronous>, transform_indices = @transform_7, window_bounds = array<i64: 2, 1, 128>}, {pipeline_mode = #tpu.pipeline_mode<synchronous>, transform_indices = @transform_8, window_bounds = array<i64: 128, 128>}, {pipeline_mode = #tpu.pipeline_mode<synchronous>, transform_indices = @transform_9, window_bounds = array<i64: 1, 128>}, {pipeline_mode = #tpu.pipeline_mode<synchronous>, transform_indices = @transform_10, window_bounds = array<i64: 128, 128>}, {pipeline_mode = #tpu.pipeline_mode<synchronous>, transform_indices = @transform_11, window_bounds = array<i64: 128, 128>}]} {
    tpu.enqueue_dma source(%arg3 : memref<128x384xf32, #tpu.memory_space<any>>) target(%arg13 : memref<128x384xf32, #tpu.memory_space<vmem>>) target_semaphore(%arg15 : memref<!tpu.dma_semaphore, #tpu.memory_space<semaphore_mem>>)
    %c0 = arith.constant 0 : index
    %c0_0 = arith.constant 0 : index
    %0 = vector.load %arg1[%c0, %c0_0] : memref<128x128xf32, #tpu.memory_space<vmem>>, vector<128x128xf32>
    %c0_1 = arith.constant 0 : index
    %c0_2 = arith.constant 0 : index
    %1 = vector.load %arg2[%c0_1, %c0_2] : memref<128x128xf32, #tpu.memory_space<vmem>>, vector<128x128xf32>
    tpu.wait_dma2 semaphore(%arg15 : memref<!tpu.dma_semaphore, #tpu.memory_space<semaphore_mem>>) src(%arg3 : memref<128x384xf32, #tpu.memory_space<any>>) dst(%arg13 : memref<128x384xf32, #tpu.memory_space<vmem>>)
    %c0_3 = arith.constant 0 : index
    %c0_4 = arith.constant 0 : index
    %c0_5 = arith.constant 0 : index
    %2 = vector.load %arg4[%c0_3, %c0_4, %c0_5] : memref<6x128x128xf32, #tpu.memory_space<vmem>>, vector<1x128x128xf32>
    %3 = vector.shape_cast %2 : vector<1x128x128xf32> to vector<128x128xf32>
    %cst = arith.constant dense<0.000000e+00> : vector<128x128xf32>
    %4 = tpu.matmul %1, %3, %cst {dimension_numbers = #tpu.dot_dimension_numbers<[1], [0], [0], [1], [0, 0, 1, 1], [], []>} : vector<128x128xf32>, vector<128x128xf32>, vector<128x128xf32> -> vector<128x128xf32>
    %c0_6 = arith.constant 0 : index
    %c0_7 = arith.constant 0 : index
    %5 = vector.load %arg14[%c0_6, %c0_7] : memref<384x128xf32, #tpu.memory_space<vmem>>, vector<128x128xf32>
    tpu.vector_store %arg14[%c0_6, %c0_7], %4 {strides = array<i32>} : memref<384x128xf32, #tpu.memory_space<vmem>>, vector<128x128xf32>,
    %c1 = arith.constant 1 : index
    %c0_8 = arith.constant 0 : index
    %c0_9 = arith.constant 0 : index
    %6 = vector.load %arg4[%c1, %c0_8, %c0_9] : memref<6x128x128xf32, #tpu.memory_space<vmem>>, vector<1x128x128xf32>
    %7 = vector.shape_cast %6 : vector<1x128x128xf32> to vector<128x128xf32>
    %cst_10 = arith.constant dense<0.000000e+00> : vector<128x128xf32>
    %8 = tpu.matmul %1, %7, %cst_10 {dimension_numbers = #tpu.dot_dimension_numbers<[1], [0], [0], [1], [0, 0, 1, 1], [], []>} : vector<128x128xf32>, vector<128x128xf32>, vector<128x128xf32> -> vector<128x128xf32>
    %c128 = arith.constant 128 : index
    %c0_11 = arith.constant 0 : index
    %9 = vector.load %arg14[%c128, %c0_11] : memref<384x128xf32, #tpu.memory_space<vmem>>, vector<128x128xf32>
    tpu.vector_store %arg14[%c128, %c0_11], %8 {strides = array<i32>} : memref<384x128xf32, #tpu.memory_space<vmem>>, vector<128x128xf32>,
    %c2 = arith.constant 2 : index
    %c0_12 = arith.constant 0 : index
    %c0_13 = arith.constant 0 : index
    %10 = vector.load %arg4[%c2, %c0_12, %c0_13] : memref<6x128x128xf32, #tpu.memory_space<vmem>>, vector<1x128x128xf32>
    %11 = vector.shape_cast %10 : vector<1x128x128xf32> to vector<128x128xf32>
    %cst_14 = arith.constant dense<0.000000e+00> : vector<128x128xf32>
    %12 = tpu.matmul %1, %11, %cst_14 {dimension_numbers = #tpu.dot_dimension_numbers<[1], [0], [0], [1], [0, 0, 1, 1], [], []>} : vector<128x128xf32>, vector<128x128xf32>, vector<128x128xf32> -> vector<128x128xf32>
    %c256 = arith.constant 256 : index
    %c0_15 = arith.constant 0 : index
    %13 = vector.load %arg14[%c256, %c0_15] : memref<384x128xf32, #tpu.memory_space<vmem>>, vector<128x128xf32>
    tpu.vector_store %arg14[%c256, %c0_15], %12 {strides = array<i32>} : memref<384x128xf32, #tpu.memory_space<vmem>>, vector<128x128xf32>,
    %c0_16 = arith.constant 0 : index
    %c0_17 = arith.constant 0 : index
    %14 = vector.load %arg13[%c0_16, %c0_17] : memref<128x384xf32, #tpu.memory_space<vmem>>, vector<128x384xf32>
    %c0_18 = arith.constant 0 : index
    %c0_19 = arith.constant 0 : index
    %15 = vector.load %arg14[%c0_18, %c0_19] : memref<384x128xf32, #tpu.memory_space<vmem>>, vector<384x128xf32>
    %cst_20 = arith.constant dense<0.000000e+00> : vector<128x128xf32>
    %16 = tpu.matmul %14, %15, %cst_20 {dimension_numbers = #tpu.dot_dimension_numbers<[1], [0], [0], [1], [0, 0, 1, 1], [], []>} : vector<128x384xf32>, vector<384x128xf32>, vector<128x128xf32> -> vector<128x128xf32>
    %cst_21 = arith.constant 0.000000e+00 : f32
    %17 = vector.broadcast %cst_21 : f32 to vector<128x128xf32>
    %c0_22 = arith.constant 0 : index
    %c0_23 = arith.constant 0 : index
    %c0_24 = arith.constant 0 : index
    %18 = vector.load %arg4[%c0_22, %c0_23, %c0_24] : memref<6x128x128xf32, #tpu.memory_space<vmem>>, vector<1x128x128xf32>
    %19 = vector.shape_cast %18 : vector<1x128x128xf32> to vector<128x128xf32>
    %cst_25 = arith.constant dense<0.000000e+00> : vector<128x128xf32>
    %20 = tpu.matmul %0, %19, %cst_25 {dimension_numbers = #tpu.dot_dimension_numbers<[1], [0], [0], [1], [0, 0, 1, 1], [], []>} : vector<128x128xf32>, vector<128x128xf32>, vector<128x128xf32> -> vector<128x128xf32>
    %c0_26 = arith.constant 0 : index
    %c0_27 = arith.constant 0 : index
    %21 = vector.load %arg13[%c0_26, %c0_27] : memref<128x384xf32, #tpu.memory_space<vmem>>, vector<128x128xf32>
    %cst_28 = arith.constant dense<0.000000e+00> : vector<128x128xf32>
    %22 = tpu.matmul %21, %20, %cst_28 {dimension_numbers = #tpu.dot_dimension_numbers<[0], [0], [1], [1], [0, 1, 1, 1], [], []>} : vector<128x128xf32>, vector<128x128xf32>, vector<128x128xf32> -> vector<128x128xf32>
    %23 = arith.addf %17, %22 : vector<128x128xf32>
    %c1_29 = arith.constant 1 : index
    %c0_30 = arith.constant 0 : index
    %c0_31 = arith.constant 0 : index
    %24 = vector.load %arg4[%c1_29, %c0_30, %c0_31] : memref<6x128x128xf32, #tpu.memory_space<vmem>>, vector<1x128x128xf32>
    %25 = vector.shape_cast %24 : vector<1x128x128xf32> to vector<128x128xf32>
    %cst_32 = arith.constant dense<0.000000e+00> : vector<128x128xf32>
    %26 = tpu.matmul %0, %25, %cst_32 {dimension_numbers = #tpu.dot_dimension_numbers<[1], [0], [0], [1], [0, 0, 1, 1], [], []>} : vector<128x128xf32>, vector<128x128xf32>, vector<128x128xf32> -> vector<128x128xf32>
    %c0_33 = arith.constant 0 : index
    %c128_34 = arith.constant 128 : index
    %27 = vector.load %arg13[%c0_33, %c128_34] : memref<128x384xf32, #tpu.memory_space<vmem>>, vector<128x128xf32>
    %cst_35 = arith.constant dense<0.000000e+00> : vector<128x128xf32>
    %28 = tpu.matmul %27, %26, %cst_35 {dimension_numbers = #tpu.dot_dimension_numbers<[0], [0], [1], [1], [0, 1, 1, 1], [], []>} : vector<128x128xf32>, vector<128x128xf32>, vector<128x128xf32> -> vector<128x128xf32>
    %29 = arith.addf %23, %28 : vector<128x128xf32>
    %c2_36 = arith.constant 2 : index
    %c0_37 = arith.constant 0 : index
    %c0_38 = arith.constant 0 : index
    %30 = vector.load %arg4[%c2_36, %c0_37, %c0_38] : memref<6x128x128xf32, #tpu.memory_space<vmem>>, vector<1x128x128xf32>
    %31 = vector.shape_cast %30 : vector<1x128x128xf32> to vector<128x128xf32>
    %cst_39 = arith.constant dense<0.000000e+00> : vector<128x128xf32>
    %32 = tpu.matmul %0, %31, %cst_39 {dimension_numbers = #tpu.dot_dimension_numbers<[1], [0], [0], [1], [0, 0, 1, 1], [], []>} : vector<128x128xf32>, vector<128x128xf32>, vector<128x128xf32> -> vector<128x128xf32>
    %c0_40 = arith.constant 0 : index
    %c256_41 = arith.constant 256 : index
    %33 = vector.load %arg13[%c0_40, %c256_41] : memref<128x384xf32, #tpu.memory_space<vmem>>, vector<128x128xf32>
    %cst_42 = arith.constant dense<0.000000e+00> : vector<128x128xf32>
    %34 = tpu.matmul %33, %32, %cst_42 {dimension_numbers = #tpu.dot_dimension_numbers<[0], [0], [1], [1], [0, 1, 1, 1], [], []>} : vector<128x128xf32>, vector<128x128xf32>, vector<128x128xf32> -> vector<128x128xf32>
    %35 = arith.addf %29, %34 : vector<128x128xf32>
    %cst_43 = arith.constant 0.000000e+00 : f32
    %36 = vector.broadcast %cst_43 : f32 to vector<128x128xf32>
    %37 = arith.maximumf %16, %36 : vector<128x128xf32>
    %cst_44 = arith.constant 0.000000e+00 : f32
    %38 = vector.broadcast %cst_44 : f32 to vector<128x128xf32>
    %39 = arith.maximumf %35, %38 : vector<128x128xf32>
    %c0_45 = arith.constant 0 : index
    %c0_46 = arith.constant 0 : index
    %c0_47 = arith.constant 0 : index
    %40 = vector.load %arg5[%c0_45, %c0_46, %c0_47] : memref<2x128x128xf32, #tpu.memory_space<vmem>>, vector<1x128x128xf32>
    %41 = vector.shape_cast %40 : vector<1x128x128xf32> to vector<128x128xf32>
    %cst_48 = arith.constant dense<0.000000e+00> : vector<128x128xf32>
    %42 = tpu.matmul %37, %41, %cst_48 {dimension_numbers = #tpu.dot_dimension_numbers<[1], [0], [0], [1], [0, 0, 1, 1], [], []>} : vector<128x128xf32>, vector<128x128xf32>, vector<128x128xf32> -> vector<128x128xf32>
    %c0_49 = arith.constant 0 : index
    %c0_50 = arith.constant 0 : index
    %c0_51 = arith.constant 0 : index
    %43 = vector.load %arg6[%c0_49, %c0_50, %c0_51] : memref<2x1x128xf32, #tpu.memory_space<vmem>>, vector<1x1x128xf32>
    %44 = vector.shape_cast %43 : vector<1x1x128xf32> to vector<1x128xf32>
    %45 = vector.broadcast %44 : vector<1x128xf32> to vector<128x128xf32>
    %46 = arith.addf %42, %45 : vector<128x128xf32>
    %cst_52 = arith.constant 0.000000e+00 : f32
    %47 = vector.broadcast %cst_52 : f32 to vector<128x128xf32>
    %48 = arith.maximumf %46, %47 : vector<128x128xf32>
    %c0_53 = arith.constant 0 : index
    %c0_54 = arith.constant 0 : index
    %c0_55 = arith.constant 0 : index
    %49 = vector.load %arg7[%c0_53, %c0_54, %c0_55] : memref<2x128x128xf32, #tpu.memory_space<vmem>>, vector<1x128x128xf32>
    %50 = vector.shape_cast %49 : vector<1x128x128xf32> to vector<128x128xf32>
    %cst_56 = arith.constant dense<0.000000e+00> : vector<128x128xf32>
    %51 = tpu.matmul %39, %50, %cst_56 {dimension_numbers = #tpu.dot_dimension_numbers<[1], [0], [0], [1], [0, 0, 1, 1], [], []>} : vector<128x128xf32>, vector<128x128xf32>, vector<128x128xf32> -> vector<128x128xf32>
    %c0_57 = arith.constant 0 : index
    %c0_58 = arith.constant 0 : index
    %c0_59 = arith.constant 0 : index
    %52 = vector.load %arg8[%c0_57, %c0_58, %c0_59] : memref<2x1x128xf32, #tpu.memory_space<vmem>>, vector<1x1x128xf32>
    %53 = vector.shape_cast %52 : vector<1x1x128xf32> to vector<1x128xf32>
    %54 = vector.broadcast %53 : vector<1x128xf32> to vector<128x128xf32>
    %55 = arith.addf %51, %54 : vector<128x128xf32>
    %cst_60 = arith.constant 0.000000e+00 : f32
    %56 = vector.broadcast %cst_60 : f32 to vector<128x128xf32>
    %57 = arith.maximumf %55, %56 : vector<128x128xf32>
    %c3 = arith.constant 3 : index
    %c0_61 = arith.constant 0 : index
    %c0_62 = arith.constant 0 : index
    %58 = vector.load %arg4[%c3, %c0_61, %c0_62] : memref<6x128x128xf32, #tpu.memory_space<vmem>>, vector<1x128x128xf32>
    %59 = vector.shape_cast %58 : vector<1x128x128xf32> to vector<128x128xf32>
    %cst_63 = arith.constant dense<0.000000e+00> : vector<128x128xf32>
    %60 = tpu.matmul %57, %59, %cst_63 {dimension_numbers = #tpu.dot_dimension_numbers<[1], [0], [0], [1], [0, 0, 1, 1], [], []>} : vector<128x128xf32>, vector<128x128xf32>, vector<128x128xf32> -> vector<128x128xf32>
    %c0_64 = arith.constant 0 : index
    %c0_65 = arith.constant 0 : index
    %61 = vector.load %arg14[%c0_64, %c0_65] : memref<384x128xf32, #tpu.memory_space<vmem>>, vector<128x128xf32>
    tpu.vector_store %arg14[%c0_64, %c0_65], %60 {strides = array<i32>} : memref<384x128xf32, #tpu.memory_space<vmem>>, vector<128x128xf32>,
    %c4 = arith.constant 4 : index
    %c0_66 = arith.constant 0 : index
    %c0_67 = arith.constant 0 : index
    %62 = vector.load %arg4[%c4, %c0_66, %c0_67] : memref<6x128x128xf32, #tpu.memory_space<vmem>>, vector<1x128x128xf32>
    %63 = vector.shape_cast %62 : vector<1x128x128xf32> to vector<128x128xf32>
    %cst_68 = arith.constant dense<0.000000e+00> : vector<128x128xf32>
    %64 = tpu.matmul %57, %63, %cst_68 {dimension_numbers = #tpu.dot_dimension_numbers<[1], [0], [0], [1], [0, 0, 1, 1], [], []>} : vector<128x128xf32>, vector<128x128xf32>, vector<128x128xf32> -> vector<128x128xf32>
    %c128_69 = arith.constant 128 : index
    %c0_70 = arith.constant 0 : index
    %65 = vector.load %arg14[%c128_69, %c0_70] : memref<384x128xf32, #tpu.memory_space<vmem>>, vector<128x128xf32>
    tpu.vector_store %arg14[%c128_69, %c0_70], %64 {strides = array<i32>} : memref<384x128xf32, #tpu.memory_space<vmem>>, vector<128x128xf32>,
    %c5 = arith.constant 5 : index
    %c0_71 = arith.constant 0 : index
    %c0_72 = arith.constant 0 : index
    %66 = vector.load %arg4[%c5, %c0_71, %c0_72] : memref<6x128x128xf32, #tpu.memory_space<vmem>>, vector<1x128x128xf32>
    %67 = vector.shape_cast %66 : vector<1x128x128xf32> to vector<128x128xf32>
    %cst_73 = arith.constant dense<0.000000e+00> : vector<128x128xf32>
    %68 = tpu.matmul %57, %67, %cst_73 {dimension_numbers = #tpu.dot_dimension_numbers<[1], [0], [0], [1], [0, 0, 1, 1], [], []>} : vector<128x128xf32>, vector<128x128xf32>, vector<128x128xf32> -> vector<128x128xf32>
    %c256_74 = arith.constant 256 : index
    %c0_75 = arith.constant 0 : index
    %69 = vector.load %arg14[%c256_74, %c0_75] : memref<384x128xf32, #tpu.memory_space<vmem>>, vector<128x128xf32>
    tpu.vector_store %arg14[%c256_74, %c0_75], %68 {strides = array<i32>} : memref<384x128xf32, #tpu.memory_space<vmem>>, vector<128x128xf32>,
    %c0_76 = arith.constant 0 : index
    %c0_77 = arith.constant 0 : index
    %70 = vector.load %arg13[%c0_76, %c0_77] : memref<128x384xf32, #tpu.memory_space<vmem>>, vector<128x384xf32>
    %c0_78 = arith.constant 0 : index
    %c0_79 = arith.constant 0 : index
    %71 = vector.load %arg14[%c0_78, %c0_79] : memref<384x128xf32, #tpu.memory_space<vmem>>, vector<384x128xf32>
    %cst_80 = arith.constant dense<0.000000e+00> : vector<128x128xf32>
    %72 = tpu.matmul %70, %71, %cst_80 {dimension_numbers = #tpu.dot_dimension_numbers<[1], [0], [0], [1], [0, 0, 1, 1], [], []>} : vector<128x384xf32>, vector<384x128xf32>, vector<128x128xf32> -> vector<128x128xf32>
    %cst_81 = arith.constant 0.000000e+00 : f32
    %73 = vector.broadcast %cst_81 : f32 to vector<128x128xf32>
    %c3_82 = arith.constant 3 : index
    %c0_83 = arith.constant 0 : index
    %c0_84 = arith.constant 0 : index
    %74 = vector.load %arg4[%c3_82, %c0_83, %c0_84] : memref<6x128x128xf32, #tpu.memory_space<vmem>>, vector<1x128x128xf32>
    %75 = vector.shape_cast %74 : vector<1x128x128xf32> to vector<128x128xf32>
    %cst_85 = arith.constant dense<0.000000e+00> : vector<128x128xf32>
    %76 = tpu.matmul %48, %75, %cst_85 {dimension_numbers = #tpu.dot_dimension_numbers<[1], [0], [0], [1], [0, 0, 1, 1], [], []>} : vector<128x128xf32>, vector<128x128xf32>, vector<128x128xf32> -> vector<128x128xf32>
    %c0_86 = arith.constant 0 : index
    %c0_87 = arith.constant 0 : index
    %77 = vector.load %arg13[%c0_86, %c0_87] : memref<128x384xf32, #tpu.memory_space<vmem>>, vector<128x128xf32>
    %cst_88 = arith.constant dense<0.000000e+00> : vector<128x128xf32>
    %78 = tpu.matmul %77, %76, %cst_88 {dimension_numbers = #tpu.dot_dimension_numbers<[0], [0], [1], [1], [0, 1, 1, 1], [], []>} : vector<128x128xf32>, vector<128x128xf32>, vector<128x128xf32> -> vector<128x128xf32>
    %79 = arith.addf %73, %78 : vector<128x128xf32>
    %c4_89 = arith.constant 4 : index
    %c0_90 = arith.constant 0 : index
    %c0_91 = arith.constant 0 : index
    %80 = vector.load %arg4[%c4_89, %c0_90, %c0_91] : memref<6x128x128xf32, #tpu.memory_space<vmem>>, vector<1x128x128xf32>
    %81 = vector.shape_cast %80 : vector<1x128x128xf32> to vector<128x128xf32>
    %cst_92 = arith.constant dense<0.000000e+00> : vector<128x128xf32>
    %82 = tpu.matmul %48, %81, %cst_92 {dimension_numbers = #tpu.dot_dimension_numbers<[1], [0], [0], [1], [0, 0, 1, 1], [], []>} : vector<128x128xf32>, vector<128x128xf32>, vector<128x128xf32> -> vector<128x128xf32>
    %c0_93 = arith.constant 0 : index
    %c128_94 = arith.constant 128 : index
    %83 = vector.load %arg13[%c0_93, %c128_94] : memref<128x384xf32, #tpu.memory_space<vmem>>, vector<128x128xf32>
    %cst_95 = arith.constant dense<0.000000e+00> : vector<128x128xf32>
    %84 = tpu.matmul %83, %82, %cst_95 {dimension_numbers = #tpu.dot_dimension_numbers<[0], [0], [1], [1], [0, 1, 1, 1], [], []>} : vector<128x128xf32>, vector<128x128xf32>, vector<128x128xf32> -> vector<128x128xf32>
    %85 = arith.addf %79, %84 : vector<128x128xf32>
    %c5_96 = arith.constant 5 : index
    %c0_97 = arith.constant 0 : index
    %c0_98 = arith.constant 0 : index
    %86 = vector.load %arg4[%c5_96, %c0_97, %c0_98] : memref<6x128x128xf32, #tpu.memory_space<vmem>>, vector<1x128x128xf32>
    %87 = vector.shape_cast %86 : vector<1x128x128xf32> to vector<128x128xf32>
    %cst_99 = arith.constant dense<0.000000e+00> : vector<128x128xf32>
    %88 = tpu.matmul %48, %87, %cst_99 {dimension_numbers = #tpu.dot_dimension_numbers<[1], [0], [0], [1], [0, 0, 1, 1], [], []>} : vector<128x128xf32>, vector<128x128xf32>, vector<128x128xf32> -> vector<128x128xf32>
    %c0_100 = arith.constant 0 : index
    %c256_101 = arith.constant 256 : index
    %89 = vector.load %arg13[%c0_100, %c256_101] : memref<128x384xf32, #tpu.memory_space<vmem>>, vector<128x128xf32>
    %cst_102 = arith.constant dense<0.000000e+00> : vector<128x128xf32>
    %90 = tpu.matmul %89, %88, %cst_102 {dimension_numbers = #tpu.dot_dimension_numbers<[0], [0], [1], [1], [0, 1, 1, 1], [], []>} : vector<128x128xf32>, vector<128x128xf32>, vector<128x128xf32> -> vector<128x128xf32>
    %91 = arith.addf %85, %90 : vector<128x128xf32>
    %cst_103 = arith.constant 0.000000e+00 : f32
    %92 = vector.broadcast %cst_103 : f32 to vector<128x128xf32>
    %93 = arith.maximumf %72, %92 : vector<128x128xf32>
    %cst_104 = arith.constant 0.000000e+00 : f32
    %94 = vector.broadcast %cst_104 : f32 to vector<128x128xf32>
    %95 = arith.maximumf %91, %94 : vector<128x128xf32>
    %c1_105 = arith.constant 1 : index
    %c0_106 = arith.constant 0 : index
    %c0_107 = arith.constant 0 : index
    %96 = vector.load %arg5[%c1_105, %c0_106, %c0_107] : memref<2x128x128xf32, #tpu.memory_space<vmem>>, vector<1x128x128xf32>
    %97 = vector.shape_cast %96 : vector<1x128x128xf32> to vector<128x128xf32>
    %cst_108 = arith.constant dense<0.000000e+00> : vector<128x128xf32>
    %98 = tpu.matmul %93, %97, %cst_108 {dimension_numbers = #tpu.dot_dimension_numbers<[1], [0], [0], [1], [0, 0, 1, 1], [], []>} : vector<128x128xf32>, vector<128x128xf32>, vector<128x128xf32> -> vector<128x128xf32>
    %c1_109 = arith.constant 1 : index
    %c0_110 = arith.constant 0 : index
    %c0_111 = arith.constant 0 : index
    %99 = vector.load %arg6[%c1_109, %c0_110, %c0_111] : memref<2x1x128xf32, #tpu.memory_space<vmem>>, vector<1x1x128xf32>
    %100 = vector.shape_cast %99 : vector<1x1x128xf32> to vector<1x128xf32>
    %101 = vector.broadcast %100 : vector<1x128xf32> to vector<128x128xf32>
    %102 = arith.addf %98, %101 : vector<128x128xf32>
    %cst_112 = arith.constant 0.000000e+00 : f32
    %103 = vector.broadcast %cst_112 : f32 to vector<128x128xf32>
    %104 = arith.maximumf %102, %103 : vector<128x128xf32>
    %c1_113 = arith.constant 1 : index
    %c0_114 = arith.constant 0 : index
    %c0_115 = arith.constant 0 : index
    %105 = vector.load %arg7[%c1_113, %c0_114, %c0_115] : memref<2x128x128xf32, #tpu.memory_space<vmem>>, vector<1x128x128xf32>
    %106 = vector.shape_cast %105 : vector<1x128x128xf32> to vector<128x128xf32>
    %cst_116 = arith.constant dense<0.000000e+00> : vector<128x128xf32>
    %107 = tpu.matmul %95, %106, %cst_116 {dimension_numbers = #tpu.dot_dimension_numbers<[1], [0], [0], [1], [0, 0, 1, 1], [], []>} : vector<128x128xf32>, vector<128x128xf32>, vector<128x128xf32> -> vector<128x128xf32>
    %c1_117 = arith.constant 1 : index
    %c0_118 = arith.constant 0 : index
    %c0_119 = arith.constant 0 : index
    %108 = vector.load %arg8[%c1_117, %c0_118, %c0_119] : memref<2x1x128xf32, #tpu.memory_space<vmem>>, vector<1x1x128xf32>
    %109 = vector.shape_cast %108 : vector<1x1x128xf32> to vector<1x128xf32>
    %110 = vector.broadcast %109 : vector<1x128xf32> to vector<128x128xf32>
    %111 = arith.addf %107, %110 : vector<128x128xf32>
    %cst_120 = arith.constant 0.000000e+00 : f32
    %112 = vector.broadcast %cst_120 : f32 to vector<128x128xf32>
    %113 = arith.maximumf %111, %112 : vector<128x128xf32>
    %c0_121 = arith.constant 0 : index
    %c0_122 = arith.constant 0 : index
    %114 = vector.load %arg9[%c0_121, %c0_122] : memref<128x128xf32, #tpu.memory_space<vmem>>, vector<128x128xf32>
    %c0_123 = arith.constant 0 : index
    %c0_124 = arith.constant 0 : index
    %115 = vector.load %arg10[%c0_123, %c0_124] : memref<1x128xf32, #tpu.memory_space<vmem>>, vector<1x128xf32>
    %cst_125 = arith.constant dense<0.000000e+00> : vector<128x128xf32>
    %116 = tpu.matmul %104, %114, %cst_125 {dimension_numbers = #tpu.dot_dimension_numbers<[1], [0], [0], [1], [0, 0, 1, 1], [], []>} : vector<128x128xf32>, vector<128x128xf32>, vector<128x128xf32> -> vector<128x128xf32>
    %117 = vector.broadcast %115 : vector<1x128xf32> to vector<128x128xf32>
    %118 = arith.addf %116, %117 : vector<128x128xf32>
    %c0_126 = arith.constant 0 : index
    %c0_127 = arith.constant 0 : index
    %119 = vector.load %arg11[%c0_126, %c0_127] : memref<128x128xf32, #tpu.memory_space<vmem>>, vector<128x128xf32>
    tpu.vector_store %arg11[%c0_126, %c0_127], %118 {strides = array<i32>} : memref<128x128xf32, #tpu.memory_space<vmem>>, vector<128x128xf32>,
    %cst_128 = arith.constant dense<0.000000e+00> : vector<128x128xf32>
    %120 = tpu.matmul %113, %114, %cst_128 {dimension_numbers = #tpu.dot_dimension_numbers<[1], [0], [0], [1], [0, 0, 1, 1], [], []>} : vector<128x128xf32>, vector<128x128xf32>, vector<128x128xf32> -> vector<128x128xf32>
    %121 = vector.broadcast %115 : vector<1x128xf32> to vector<128x128xf32>
    %122 = arith.addf %120, %121 : vector<128x128xf32>
    %c0_129 = arith.constant 0 : index
    %c0_130 = arith.constant 0 : index
    %123 = vector.load %arg12[%c0_129, %c0_130] : memref<128x128xf32, #tpu.memory_space<vmem>>, vector<128x128xf32>
    tpu.vector_store %arg12[%c0_129, %c0_130], %122 {strides = array<i32>} : memref<128x128xf32, #tpu.memory_space<vmem>>, vector<128x128xf32>,
    return
  }
  func.func @transform_0(%arg0: i32) -> (i32, i32) {
    %c0_i32 = arith.constant 0 : i32
    %c0_i32_0 = arith.constant 0 : i32
    %c0_i32_1 = arith.constant 0 : i32
    return %c0_i32, %c0_i32_0 : i32, i32
  }
  func.func @transform_1(%arg0: i32) -> (i32, i32) {
    %c0_i32 = arith.constant 0 : i32
    %c0_i32_0 = arith.constant 0 : i32
    %c0_i32_1 = arith.constant 0 : i32
    return %c0_i32, %c0_i32_0 : i32, i32
  }
  func.func @transform_3(%arg0: i32) -> (i32, i32, i32) {
    %c0_i32 = arith.constant 0 : i32
    %c0_i32_0 = arith.constant 0 : i32
    %c0_i32_1 = arith.constant 0 : i32
    %c0_i32_2 = arith.constant 0 : i32
    return %c0_i32, %c0_i32_0, %c0_i32_1 : i32, i32, i32
  }
  func.func @transform_4(%arg0: i32) -> (i32, i32, i32) {
    %c0_i32 = arith.constant 0 : i32
    %c0_i32_0 = arith.constant 0 : i32
    %c0_i32_1 = arith.constant 0 : i32
    %c0_i32_2 = arith.constant 0 : i32
    return %c0_i32, %c0_i32_0, %c0_i32_1 : i32, i32, i32
  }
  func.func @transform_5(%arg0: i32) -> (i32, i32, i32) {
    %c0_i32 = arith.constant 0 : i32
    %c0_i32_0 = arith.constant 0 : i32
    %c0_i32_1 = arith.constant 0 : i32
    %c0_i32_2 = arith.constant 0 : i32
    return %c0_i32, %c0_i32_0, %c0_i32_1 : i32, i32, i32
  }
  func.func @transform_6(%arg0: i32) -> (i32, i32, i32) {
    %c0_i32 = arith.constant 0 : i32
    %c0_i32_0 = arith.constant 0 : i32
    %c0_i32_1 = arith.constant 0 : i32
    %c0_i32_2 = arith.constant 0 : i32
    return %c0_i32, %c0_i32_0, %c0_i32_1 : i32, i32, i32
  }
  func.func @transform_7(%arg0: i32) -> (i32, i32, i32) {
    %c0_i32 = arith.constant 0 : i32
    %c0_i32_0 = arith.constant 0 : i32
    %c0_i32_1 = arith.constant 0 : i32
    %c0_i32_2 = arith.constant 0 : i32
    return %c0_i32, %c0_i32_0, %c0_i32_1 : i32, i32, i32
  }
  func.func @transform_8(%arg0: i32) -> (i32, i32) {
    %c0_i32 = arith.constant 0 : i32
    %c0_i32_0 = arith.constant 0 : i32
    %c0_i32_1 = arith.constant 0 : i32
    return %c0_i32, %c0_i32_0 : i32, i32
  }
  func.func @transform_9(%arg0: i32) -> (i32, i32) {
    %c0_i32 = arith.constant 0 : i32
    %c0_i32_0 = arith.constant 0 : i32
    %c0_i32_1 = arith.constant 0 : i32
    return %c0_i32, %c0_i32_0 : i32, i32
  }
  func.func @transform_10(%arg0: i32) -> (i32, i32) {
    %c0_i32 = arith.constant 0 : i32
    %c0_i32_0 = arith.constant 0 : i32
    %c0_i32_1 = arith.constant 0 : i32
    return %c0_i32, %c0_i32_0 : i32, i32
  }
  func.func @transform_11(%arg0: i32) -> (i32, i32) {
    %c0_i32 = arith.constant 0 : i32
    %c0_i32_0 = arith.constant 0 : i32
    %c0_i32_1 = arith.constant 0 : i32
    return %c0_i32, %c0_i32_0 : i32, i32
  }
}

</mosaic_0001>

<bundles_post_ra>
// kernel: tpu_custom_call.1
= control target key start
LH: loop header
LB: loop body
LE: loop exit
PB: predicated region body
PF: predicated region fallthrough
CT: control target
= control target key end

     0   :  { %17 = vsyncpa [#allocation6], 0  ;;  %s5375_s0 = inlined_call_operand.hbm [shape: f32[128,128], index: 0, kind: input, shape index: {}]   ;;  %s5376_s1 = inlined_call_operand.hbm [shape: f32[128,128], index: 1, kind: input, shape index: {}]   ;;  %s5377_s2 = inlined_call_operand.hbm [shape: f32[128,384], index: 2, kind: input, shape index: {}]   ;;  %s5378_s3 = inlined_call_operand.hbm [shape: f32[6,128,128], index: 3, kind: input, shape index: {}]   ;;  %s5379_s4 = inlined_call_operand.hbm [shape: f32[2,128,128], index: 4, kind: input, shape index: {}]   ;;  %s5380_s5 = inlined_call_operand.vmem [shape: f32[2,1,128], index: 5, kind: input, shape index: {}]   ;;  %s5381_s6 = inlined_call_operand.hbm [shape: f32[2,128,128], index: 6, kind: input, shape index: {}]   ;;  %s5382_s7 = inlined_call_operand.vmem [shape: f32[2,1,128], index: 7, kind: input, shape index: {}]   ;;  %s5383_s8 = inlined_call_operand.hbm [shape: f32[128,128], index: 8, kind: input, shape index: {}]   ;;  %s5384_s9 = inlined_call_operand.vmem [shape: f32[1,128], index: 9, kind: input, shape index: {}]   ;;  %s5385_s10 = inlined_call_operand.hbm [shape: f32[128,128], index: 10, kind: output, shape index: {0}]   ;;  %s5386_s11 = inlined_call_operand.hbm [shape: f32[128,128], index: 11, kind: output, shape index: {1}]  }
   0x1   :  { %18 = vsyncpa [#allocation9], 0 }
   0x2   :  { %19 = vsyncpa [#allocation12], 0 }
   0x3   :  { %20 = vsyncpa [#allocation15], 0 }
   0x4   :  { %21 = vsyncpa [#allocation7], 0 }
   0x5   :  { %22 = vsyncpa [#allocation18], 0  ;;  %s40_s19 = sshll.u32 %s5376_s1, 4  ;;  %s3710_s20 = smov [#allocation8]   ;;  %s41_s19 = int_to_ptr.hbm [resolvable:$true] %s40_s19 }
   0x6   :  { %s42_s21 = sshll.u32 %s3710_s20, 4  ;;  %s66_s24 = sshll.u32 %s5379_s4, 4  ;;  %s43_s21 = int_to_ptr.vmem [resolvable:$true] %s42_s21  ;;  %s67_s24 = int_to_ptr.hbm [resolvable:$true] %s66_s24 }
   0x7   :  { %s3711_s25 = smov 128   ;;  %s3712_s26 = smov 8  }
   0x8   :  { %48 = dma.hbm_to_vmem [thread:$0]  %s41_s19, 2048, %s43_s21, [#allocation9], %s3711_s25, %s3711_s25, %s3712_s26  }
   0x9   :  { %s3713_s27 = smov [#allocation11]   ;;  %s27_s1 = sshll.u32 %s5375_s0, 4  ;;  %s28_s1 = int_to_ptr.hbm [resolvable:$true] %s27_s1 }
   0xa   :  { %s68_s28 = sshll.u32 %s3713_s27, 4  ;;  %s53_s13 = sshll.u32 %s5378_s3, 4  ;;  %s69_s28 = int_to_ptr.vmem [resolvable:$true] %s68_s28  ;;  %s54_s13 = int_to_ptr.hbm [resolvable:$true] %s53_s13 }
   0xb   :  { %74 = dma.hbm_to_vmem [thread:$0]  %s67_s24, 4096, %s69_s28, [#allocation12], %s3711_s25, %s3711_s25, %s3712_s26  }
   0xc   :  { %s3714_s14 = smov [#allocation5]   ;;  %s3715_s16 = smov [#allocation10]  }
   0xd   :  { %s29_s15 = sshll.u32 %s3714_s14, 4  ;;  %s55_s0 = sshll.u32 %s3715_s16, 4  ;;  %s30_s15 = int_to_ptr.vmem [resolvable:$true] %s29_s15  ;;  %s56_s0 = int_to_ptr.vmem [resolvable:$true] %s55_s0 }
   0xe   :  { %35 = dma.hbm_to_vmem [thread:$0]  %s28_s1, 2048, %s30_s15, [#allocation6], %s3711_s25, %s3711_s25, %s3712_s26  }
   0xf   :  { %s81_s19 = sshll.u32 %s5381_s6, 4  ;;  %s96_s21 = sshll.u32 %s5383_s8, 4  ;;  %s82_s19 = int_to_ptr.hbm [resolvable:$true] %s81_s19  ;;  %s97_s21 = int_to_ptr.hbm [resolvable:$true] %s96_s21 }
  0x10   :  { %61 = dma.hbm_to_vmem [thread:$0]  %s54_s13, 12288, %s56_s0, [#allocation9], %s3711_s25, %s3711_s25, %s3712_s26  }
  0x11   :  { %s3716_s22 = smov [#allocation13]   ;;  %s3717_s24 = smov [#allocation14]  }
  0x12   :  { %s83_s23 = sshll.u32 %s3716_s22, 4  ;;  %s98_s6 = sshll.u32 %s3717_s24, 4  ;;  %s84_s23 = int_to_ptr.vmem [resolvable:$true] %s83_s23  ;;  %s99_s6 = int_to_ptr.vmem [resolvable:$true] %s98_s6 }
  0x13   :  { %89 = dma.hbm_to_vmem [thread:$0]  %s82_s19, 4096, %s84_s23, [#allocation12], %s3711_s25, %s3711_s25, %s3712_s26  }
  0x14   :  { %104 = dma.hbm_to_vmem [thread:$0]  %s97_s21, 2048, %s99_s6, [#allocation15], %s3711_s25, %s3711_s25, %s3712_s26  }
  0x15   :  { %3696 = dma.done.wait [#allocation6], 2048  }
  0x16   :  { %3697 = vsyncadd [#allocation6], 4294965248 }
  0x17   :  { %3698 = dma.done.wait [#allocation9], 14336  }
  0x18   :  { %3699 = vsyncadd [#allocation9], 4294952960 }
  0x19   :  { %3700 = dma.done.wait [#allocation12], 8192  }
  0x1a   :  { %3701 = vsyncadd [#allocation12], 4294959104 }
  0x1b   :  { %3702 = dma.done.wait [#allocation15], 2048  }
  0x1c   :  { %3703 = vsyncadd [#allocation15], 4294965248  ;;  %s138_s28 = sshll.u32 %s5377_s2, 4  ;;  %s3718_s29 = smov [#allocation2]   ;;  %v3826_v0 = vld [vmem:[#allocation5] sm:$0xff]  ;;  %v3828_v1 = vld [vmem:[#allocation5 + $0x8] sm:$0xff]  ;;  %s139_s28 = int_to_ptr.hbm [resolvable:$true] %s138_s28 }
  0x1d   :  { %s140_s30 = sshll.u32 %s3718_s29, 4  ;;  %v3830_v2 = vld [vmem:[#allocation5 + $0x10] sm:$0xff]  ;;  %v3832_v3 = vld [vmem:[#allocation5 + $0x18] sm:$0xff]  ;;  %v3834_v4 = vld [vmem:[#allocation5 + $0x20] sm:$0xff]  ;;  %s141_s30 = int_to_ptr.vmem [resolvable:$true] %s140_s30 }
  0x1e   :  { %143 = dma.hbm_to_vmem [thread:$0]  %s139_s28, 6144, %s141_s30, [#allocation4]  ;;  %v3836_v5 = vld [vmem:[#allocation5 + $0x28] sm:$0xff]  ;;  %v3838_v6 = vld [vmem:[#allocation5 + $0x30] sm:$0xff]  ;;  %v3840_v7 = vld [vmem:[#allocation5 + $0x38] sm:$0xff] }
  0x1f   :  { %5429 = vst [vmem:[#allocation30_spill] sm:$0xff] %v3840_v7  ;;  %v3842_v8 = vld [vmem:[#allocation5 + $0x40] sm:$0xff]  ;;  %v3844_v9 = vld [vmem:[#allocation5 + $0x48] sm:$0xff]  ;;  %v3846_v10 = vld [vmem:[#allocation5 + $0x50] sm:$0xff] }
  0x20   :  { %5430 = vst [vmem:[#allocation31_spill] sm:$0xff] %v3842_v8  ;;  %v3848_v11 = vld [vmem:[#allocation5 + $0x58] sm:$0xff]  ;;  %v3850_v12 = vld [vmem:[#allocation5 + $0x60] sm:$0xff]  ;;  %v3852_v13 = vld [vmem:[#allocation5 + $0x68] sm:$0xff] }
  0x21   :  { %5431 = vst [vmem:[#allocation32_spill] sm:$0xff] %v3844_v9  ;;  %v3854_v14 = vld [vmem:[#allocation5 + $0x70] sm:$0xff]  ;;  %v3856_v15 = vld [vmem:[#allocation5 + $0x78] sm:$0xff]  ;;  %v3858_v16 = vld [vmem:[#allocation8] sm:$0xff] }
  0x22   :  { %5432 = vst [vmem:[#allocation33_spill] sm:$0xff] %v3846_v10  ;;  %v3860_v17 = vld [vmem:[#allocation8 + $0x8] sm:$0xff]  ;;  %v3862_v18 = vld [vmem:[#allocation8 + $0x10] sm:$0xff]  ;;  %v3864_v19 = vld [vmem:[#allocation8 + $0x18] sm:$0xff] }
  0x23   :  { %5433 = vst [vmem:[#allocation34_spill] sm:$0xff] %v3848_v11  ;;  %v3866_v20 = vld [vmem:[#allocation8 + $0x20] sm:$0xff]  ;;  %v3868_v21 = vld [vmem:[#allocation8 + $0x28] sm:$0xff]  ;;  %v3870_v22 = vld [vmem:[#allocation8 + $0x30] sm:$0xff] }
  0x24   :  { %5434 = vst [vmem:[#allocation35_spill] sm:$0xff] %v3850_v12  ;;  %v3872_v23 = vld [vmem:[#allocation8 + $0x38] sm:$0xff]  ;;  %v3874_v24 = vld [vmem:[#allocation8 + $0x40] sm:$0xff]  ;;  %v3876_v25 = vld [vmem:[#allocation8 + $0x48] sm:$0xff] }
  0x25   :  { %5435 = vst [vmem:[#allocation36_spill] sm:$0xff] %v3852_v13  ;;  %v3878_v26 = vld [vmem:[#allocation8 + $0x50] sm:$0xff]  ;;  %v3880_v27 = vld [vmem:[#allocation8 + $0x58] sm:$0xff]  ;;  %v3882_v28 = vld [vmem:[#allocation8 + $0x60] sm:$0xff] }
  0x26   :  { %5436 = vst [vmem:[#allocation37_spill] sm:$0xff] %v3854_v14  ;;  %v3884_v29 = vld [vmem:[#allocation8 + $0x68] sm:$0xff]  ;;  %v3886_v30 = vld [vmem:[#allocation8 + $0x70] sm:$0xff]  ;;  %v3888_v31 = vld [vmem:[#allocation8 + $0x78] sm:$0xff] }
  0x27   :  { %5437 = vst [vmem:[#allocation38_spill] sm:$0xff] %v3856_v15 }
  0x28   :  { %3704 = dma.done.wait [#allocation4], 6144 }
  0x29   :  { %3705 = vsyncadd [#allocation4], 4294961152  ;;  %v3890_v32 = vld [vmem:[#allocation10 + $0x78] sm:$0xff]  ;;  %v3892_v33 = vld [vmem:[#allocation10 + $0x70] sm:$0xff]  ;;  %s3173_s19 = sshll.u32 %s5385_s10, 4  ;;  %s3720_s3 = smov [#allocation17]   ;;  %s3174_s19 = int_to_ptr.hbm [resolvable:$true] %s3173_s19 }
  0x2a   :  { %3216 = vmatpush.msra.mxu2 %v3890_v32  ;;  %v3895_v34 = vld [vmem:[#allocation10 + $0xf8] sm:$0xff]  ;;  %196 = vmatpush.msra.mxu0 %v3890_v32  ;;  %v3898_v35 = vld [vmem:[#allocation10 + $0x68] sm:$0xff]  ;;  %v3901_v36 = vld [vmem:[#allocation10 + $0xf0] sm:$0xff]  ;;  %s3184_s20 = sshll.u32 %s3720_s3, 4  ;;  %s3186_s10 = sshll.u32 %s5386_s11, 4  ;;  %s3185_s20 = int_to_ptr.vmem [resolvable:$true] %s3184_s20  ;;  %s3187_s10 = int_to_ptr.hbm [resolvable:$true] %s3186_s10 }
  0x2b   :  { %3232 = vmatpush.msra.mxu3 %v3895_v34  ;;  %294 = vmatpush.msra.mxu1 %v3895_v34  ;;  %v3905_v37 = vld [vmem:[#allocation10 + $0xe8] sm:$0xff]  ;;  %v3908_v38 = vld [vmem:[#allocation10 + $0x60] sm:$0xff]  ;;  %v3916_v40 = vld [vmem:[#allocation10 + $0x58] sm:$0xff] }
  0x2c   :  { %3217 = vmatpush.msra.mxu2 %v3892_v33  ;;  %197 = vmatpush.msra.mxu0 %v3892_v33  ;;  %v3913_v39 = vld [vmem:[#allocation10 + $0xe0] sm:$0xff]  ;;  %v3921_v41 = vld [vmem:[#allocation10 + $0xd8] sm:$0xff]  ;;  %v3924_v42 = vld [vmem:[#allocation10 + $0x50] sm:$0xff] }
  0x2d   :  { %3233 = vmatpush.msra.mxu3 %v3901_v36  ;;  %295 = vmatpush.msra.mxu1 %v3901_v36  ;;  %v3929_v43 = vld [vmem:[#allocation10 + $0xd0] sm:$0xff]  ;;  %v3932_v44 = vld [vmem:[#allocation10 + $0x48] sm:$0xff]  ;;  %v3940_v46 = vld [vmem:[#allocation10 + $0x40] sm:$0xff] }
  0x2e   :  { %3218 = vmatpush.msra.mxu2 %v3898_v35  ;;  %198 = vmatpush.msra.mxu0 %v3898_v35  ;;  %v3935_v45 = vld [vmem:[#allocation10 + $0xc8] sm:$0xff]  ;;  %v3945_v47 = vld [vmem:[#allocation10 + $0xc0] sm:$0xff]  ;;  %v3948_v48 = vld [vmem:[#allocation10 + $0x38] sm:$0xff] }
  0x2f   :  { %3234 = vmatpush.msra.mxu3 %v3905_v37  ;;  %296 = vmatpush.msra.mxu1 %v3905_v37  ;;  %v3953_v49 = vld [vmem:[#allocation10 + $0xb8] sm:$0xff]  ;;  %v3956_v50 = vld [vmem:[#allocation10 + $0x30] sm:$0xff]  ;;  %v3964_v52 = vld [vmem:[#allocation10 + $0x28] sm:$0xff] }
  0x30   :  { %3219 = vmatpush.msra.mxu2 %v3908_v38  ;;  %199 = vmatpush.msra.mxu0 %v3908_v38  ;;  %v3961_v51 = vld [vmem:[#allocation10 + $0xb0] sm:$0xff]  ;;  %v3969_v53 = vld [vmem:[#allocation10 + $0xa8] sm:$0xff]  ;;  %v3972_v54 = vld [vmem:[#allocation10 + $0x20] sm:$0xff] }
  0x31   :  { %3235 = vmatpush.msra.mxu3 %v3913_v39  ;;  %297 = vmatpush.msra.mxu1 %v3913_v39  ;;  %5438 = vst [vmem:[#allocation39_spill] sm:$0xff] %v3961_v51  ;;  %v3977_v55 = vld [vmem:[#allocation10 + $0xa0] sm:$0xff]  ;;  %v3980_v56 = vld [vmem:[#allocation10 + $0x18] sm:$0xff]  ;;  %v3988_v58 = vld [vmem:[#allocation10 + $0x10] sm:$0xff] }
  0x32   :  { %3220 = vmatpush.msra.mxu2 %v3916_v40  ;;  %200 = vmatpush.msra.mxu0 %v3916_v40  ;;  %5439 = vst [vmem:[#allocation40_spill] sm:$0xff] %v3969_v53  ;;  %v3985_v57 = vld [vmem:[#allocation10 + $0x98] sm:$0xff]  ;;  %v3993_v59 = vld [vmem:[#allocation10 + $0x90] sm:$0xff]  ;;  %v3996_v60 = vld [vmem:[#allocation10 + $0x8] sm:$0xff] }
  0x33   :  { %3236 = vmatpush.msra.mxu3 %v3921_v41  ;;  %298 = vmatpush.msra.mxu1 %v3921_v41  ;;  %5440 = vst [vmem:[#allocation41_spill] sm:$0xff] %v3977_v55  ;;  %v4001_v61 = vld [vmem:[#allocation10 + $0x88] sm:$0xff]  ;;  %v4004_v62 = vld [vmem:[#allocation10] sm:$0xff]  ;;  %v4018_v15 = vld [vmem:[#allocation10 + $0x178] sm:$0xff] }
  0x34   :  { %3221 = vmatpush.msra.mxu2 %v3924_v42  ;;  %201 = vmatpush.msra.mxu0 %v3924_v42  ;;  %5441 = vst [vmem:[#allocation42_spill] sm:$0xff] %v3985_v57  ;;  %v4009_v63 = vld [vmem:[#allocation10 + $0x80] sm:$0xff]  ;;  %v4022_v14 = vld [vmem:[#allocation10 + $0x170] sm:$0xff]  ;;  %v4027_v13 = vld [vmem:[#allocation10 + $0x168] sm:$0xff] }
  0x35   :  { %3237 = vmatpush.msra.mxu3 %v3929_v43  ;;  %299 = vmatpush.msra.mxu1 %v3929_v43  ;;  %5442 = vst [vmem:[#allocation43_spill] sm:$0xff] %v3993_v59  ;;  %v4031_v12 = vld [vmem:[#allocation10 + $0x160] sm:$0xff]  ;;  %v4036_v11 = vld [vmem:[#allocation10 + $0x158] sm:$0xff]  ;;  %v4040_v10 = vld [vmem:[#allocation10 + $0x150] sm:$0xff] }
  0x36   :  { %3222 = vmatpush.msra.mxu2 %v3932_v44  ;;  %202 = vmatpush.msra.mxu0 %v3932_v44  ;;  %5443 = vst [vmem:[#allocation44_spill] sm:$0xff] %v4001_v61  ;;  %v4044_v9 = vld [vmem:[#allocation10 + $0x148] sm:$0xff]  ;;  %v4049_v8 = vld [vmem:[#allocation10 + $0x140] sm:$0xff] }
  0x37   :  { %3238 = vmatpush.msra.mxu3 %v3935_v45  ;;  %300 = vmatpush.msra.mxu1 %v3935_v45  ;;  %5444 = vst [vmem:[#allocation45_spill] sm:$0xff] %v4009_v63  ;;  %v4066_v7 = vld [vmem:[#allocation10 + $0x120] sm:$0xff] }
  0x38   :  { %3223 = vmatpush.msra.mxu2 %v3940_v46  ;;  %203 = vmatpush.msra.mxu0 %v3940_v46 }
  0x39   :  { %3239 = vmatpush.msra.mxu3 %v3945_v47  ;;  %301 = vmatpush.msra.mxu1 %v3945_v47 }
  0x3a   :  { %3224 = vmatpush.msra.mxu2 %v3948_v48  ;;  %204 = vmatpush.msra.mxu0 %v3948_v48 }
  0x3b   :  { %3240 = vmatpush.msra.mxu3 %v3953_v49  ;;  %302 = vmatpush.msra.mxu1 %v3953_v49 }
  0x3c   :  { %3225 = vmatpush.msra.mxu2 %v3956_v50  ;;  %205 = vmatpush.msra.mxu0 %v3956_v50 }
  0x3d   :  { %3241 = vmatpush.msra.mxu3 %v3961_v51  ;;  %303 = vmatpush.msra.mxu1 %v3961_v51  ;;  %v4083_v51 = vld [vmem:[#allocation10 + $0x100] sm:$0xff] }
  0x3e   :  { %3226 = vmatpush.msra.mxu2 %v3964_v52  ;;  %206 = vmatpush.msra.mxu0 %v3964_v52 }
  0x3f   :  { %3242 = vmatpush.msra.mxu3 %v3969_v53  ;;  %304 = vmatpush.msra.mxu1 %v3969_v53  ;;  %v4079_v53 = vld [vmem:[#allocation10 + $0x108] sm:$0xff] }
  0x40   :  { %3227 = vmatpush.msra.mxu2 %v3972_v54  ;;  %207 = vmatpush.msra.mxu0 %v3972_v54 }
  0x41   :  { %3243 = vmatpush.msra.mxu3 %v3977_v55  ;;  %305 = vmatpush.msra.mxu1 %v3977_v55  ;;  %v4075_v55 = vld [vmem:[#allocation10 + $0x110] sm:$0xff] }
  0x42   :  { %3228 = vmatpush.msra.mxu2 %v3980_v56  ;;  %208 = vmatpush.msra.mxu0 %v3980_v56 }
  0x43   :  { %3244 = vmatpush.msra.mxu3 %v3985_v57  ;;  %306 = vmatpush.msra.mxu1 %v3985_v57  ;;  %v4070_v57 = vld [vmem:[#allocation10 + $0x118] sm:$0xff] }
  0x44   :  { %3229 = vmatpush.msra.mxu2 %v3988_v58  ;;  %209 = vmatpush.msra.mxu0 %v3988_v58 }
  0x45   :  { %3245 = vmatpush.msra.mxu3 %v3993_v59  ;;  %307 = vmatpush.msra.mxu1 %v3993_v59  ;;  %v4062_v59 = vld [vmem:[#allocation10 + $0x128] sm:$0xff] }
  0x46   :  { %3230 = vmatpush.msra.mxu2 %v3996_v60  ;;  %210 = vmatpush.msra.mxu0 %v3996_v60 }
  0x47   :  { %3246 = vmatpush.msra.mxu3 %v4001_v61  ;;  %308 = vmatpush.msra.mxu1 %v4001_v61  ;;  %v4057_v61 = vld [vmem:[#allocation10 + $0x130] sm:$0xff] }
  0x48   :  { %3231 = vmatpush.msra.mxu2 %v4004_v62  ;;  %211 = vmatpush.msra.mxu0 %v4004_v62 }
  0x49   :  { %236 = vmatmul.f32.vlgmr.msra.gmra.mxu2 %v3874_v24  ;;  %3247 = vmatpush.msra.mxu3 %v4009_v63 }
  0x4a   :  { %334 = vmatmul.f32.vlgmr.msra.gmra.mxu3 %v3874_v24  ;;  %212 = vmatmul.f32.vlgmr.msra.gmra.mxu0 %v3858_v16 }
  0x4b   :  { %309 = vmatpush.msra.mxu1 %v4009_v63  ;;  %392 = vmatpush.msra.mxu2 %v4018_v15  ;;  %v4053_v63 = vld [vmem:[#allocation10 + $0x138] sm:$0xff] }
  0x4c   :  { %310 = vmatmul.f32.vlgmr.msra.gmra.mxu1 %v3858_v16 }
  0x4d   :  { %393 = vmatpush.msra.mxu2 %v4022_v14 }
  0x4f   :  { %394 = vmatpush.msra.mxu2 %v4027_v13 }
  0x51   :  { %239 = vmatmul.f32.gmra.mxu2 %v3876_v25 }
  0x52   :  { %337 = vmatmul.f32.gmra.mxu3 %v3876_v25  ;;  %215 = vmatmul.f32.gmra.mxu0 %v3860_v17 }
  0x53   :  { %395 = vmatpush.msra.mxu2 %v4031_v12 }
  0x54   :  { %313 = vmatmul.f32.gmra.mxu1 %v3860_v17 }
  0x55   :  { %396 = vmatpush.msra.mxu2 %v4036_v11 }
  0x57   :  { %397 = vmatpush.msra.mxu2 %v4040_v10 }
  0x59   :  { %242 = vmatmul.f32.gmra.mxu2 %v3878_v26 }
  0x5a   :  { %340 = vmatmul.f32.gmra.mxu3 %v3878_v26  ;;  %218 = vmatmul.f32.gmra.mxu0 %v3862_v18 }
  0x5b   :  { %398 = vmatpush.msra.mxu2 %v4044_v9 }
  0x5c   :  { %316 = vmatmul.f32.gmra.mxu1 %v3862_v18 }
  0x5d   :  { %399 = vmatpush.msra.mxu2 %v4049_v8 }
  0x5f   :  { %400 = vmatpush.msra.mxu2 %v4053_v63 }
  0x61   :  { %245 = vmatmul.f32.gmra.mxu2 %v3880_v27 }
  0x62   :  { %343 = vmatmul.f32.gmra.mxu3 %v3880_v27  ;;  %221 = vmatmul.f32.gmra.mxu0 %v3864_v19 }
  0x63   :  { %401 = vmatpush.msra.mxu2 %v4057_v61 }
  0x64   :  { %319 = vmatmul.f32.gmra.mxu1 %v3864_v19 }
  0x65   :  { %402 = vmatpush.msra.mxu2 %v4062_v59 }
  0x67   :  { %403 = vmatpush.msra.mxu2 %v4066_v7 }
  0x69   :  { %248 = vmatmul.f32.gmra.mxu2 %v3882_v28 }
  0x6a   :  { %346 = vmatmul.f32.gmra.mxu3 %v3882_v28  ;;  %224 = vmatmul.f32.gmra.mxu0 %v3866_v20 }
  0x6b   :  { %404 = vmatpush.msra.mxu2 %v4070_v57 }
  0x6c   :  { %322 = vmatmul.f32.gmra.mxu1 %v3866_v20 }
  0x6d   :  { %405 = vmatpush.msra.mxu2 %v4075_v55 }
  0x6f   :  { %406 = vmatpush.msra.mxu2 %v4079_v53 }
  0x71   :  { %251 = vmatmul.f32.gmra.mxu2 %v3884_v29 }
  0x72   :  { %349 = vmatmul.f32.gmra.mxu3 %v3884_v29  ;;  %227 = vmatmul.f32.gmra.mxu0 %v3868_v21 }
  0x73   :  { %407 = vmatpush.msra.mxu2 %v4083_v51 }
  0x74   :  { %325 = vmatmul.f32.gmra.mxu1 %v3868_v21 }
  0x79   :  { %254 = vmatmul.f32.gmra.mxu2 %v3886_v30 }
  0x7a   :  { %352 = vmatmul.f32.gmra.mxu3 %v3886_v30  ;;  %230 = vmatmul.f32.gmra.mxu0 %v3870_v22 }
  0x7c   :  { %328 = vmatmul.f32.gmra.mxu1 %v3870_v22 }
  0x81   :  { %257 = vmatmul.f32.gmra.mxu2 %v3888_v31 }
  0x82   :  { %355 = vmatmul.f32.gmra.mxu3 %v3888_v31  ;;  %233 = vmatmul.f32.gmra.mxu0 %v3872_v23 }
  0x84   :  { %331 = vmatmul.f32.gmra.mxu1 %v3872_v23 }
  0x89   :  { %408 = vmatmul.f32.vlgmr.msra.gmra.mxu2 %v3858_v16 }
  0x8a   :  { %780 = vmatpush.msra.mxu2 %v3890_v32 }
  0x8c   :  { %781 = vmatpush.msra.mxu2 %v3892_v33 }
  0x8e   :  { %782 = vmatpush.msra.mxu2 %v3898_v35 }
  0x90   :  { %783 = vmatpush.msra.mxu2 %v3908_v38 }
  0x91   :  { %411 = vmatmul.f32.gmra.mxu2 %v3860_v17 }
  0x92   :  { %784 = vmatpush.msra.mxu2 %v3916_v40 }
  0x94   :  { %785 = vmatpush.msra.mxu2 %v3924_v42 }
  0x96   :  { %786 = vmatpush.msra.mxu2 %v3932_v44 }
  0x98   :  { %787 = vmatpush.msra.mxu2 %v3940_v46 }
  0x99   :  { %414 = vmatmul.f32.gmra.mxu2 %v3862_v18 }
  0x9a   :  { %788 = vmatpush.msra.mxu2 %v3948_v48 }
  0x9c   :  { %789 = vmatpush.msra.mxu2 %v3956_v50 }
  0x9e   :  { %790 = vmatpush.msra.mxu2 %v3964_v52 }
  0xa0   :  { %791 = vmatpush.msra.mxu2 %v3972_v54 }
  0xa1   :  { %417 = vmatmul.f32.gmra.mxu2 %v3864_v19 }
  0xa2   :  { %792 = vmatpush.msra.mxu2 %v3980_v56 }
  0xa4   :  { %793 = vmatpush.msra.mxu2 %v3988_v58 }
  0xa6   :  { %794 = vmatpush.msra.mxu2 %v3996_v60 }
  0xa8   :  { %795 = vmatpush.msra.mxu2 %v4004_v62 }
  0xa9   :  { %420 = vmatmul.f32.gmra.mxu2 %v3866_v20 }
  0xb1   :  { %423 = vmatmul.f32.gmra.mxu2 %v3868_v21 }
  0xb9   :  { %426 = vmatmul.f32.gmra.mxu2 %v3870_v22 }
  0xc1   :  { %429 = vmatmul.f32.gmra.mxu2 %v3872_v23 }
  0xc7   :  { %v4123_v17 = vpop.f32.mrf.mxu0 }
  0xc9   :  { %432 = vmatmul.f32.gmra.mxu2 %v3874_v24  ;;  %v4125_v19 = vpop.f32.mrf.mxu1 }
  0xcc   :  { %v237_v16 = vpop.f32.mrf.mxu2 }
  0xcd   :  { %v335_v18 = vpop.f32.mrf.mxu3 }
  0xcf   :  { %v4128_v35 = vpop.f32.mrf.mxu0 }
  0xd1   :  { %435 = vmatmul.f32.gmra.mxu2 %v3876_v25  ;;  %v4130_v20 = vpop.f32.mrf.mxu1 }
  0xd4   :  { %v240_v32 = vpop.f32.mrf.mxu2 }
  0xd5   :  { %v338_v33 = vpop.f32.mrf.mxu3 }
  0xd7   :  { %v4133_v23 = vpop.f32.mrf.mxu0 }
  0xd9   :  { %438 = vmatmul.f32.gmra.mxu2 %v3878_v26  ;;  %v4136_v24 = vpop.f32.mrf.mxu1 }
  0xdc   :  { %v243_v21 = vpop.f32.mrf.mxu2 }
  0xdd   :  { %v341_v22 = vpop.f32.mrf.mxu3 }
  0xdf   :  { %v222_v25 = vpop.f32.mrf.mxu0 }
  0xe1   :  { %441 = vmatmul.f32.gmra.mxu2 %v3880_v27  ;;  %v320_v42 = vpop.f32.mrf.mxu1 }
  0xe4   :  { %v246_v38 = vpop.f32.mrf.mxu2 }
  0xe5   :  { %v344_v40 = vpop.f32.mrf.mxu3 }
  0xe7   :  { %v225_v26 = vpop.f32.mrf.mxu0 }
  0xe9   :  { %444 = vmatmul.f32.gmra.mxu2 %v3882_v28  ;;  %v323_v52 = vpop.f32.mrf.mxu1 }
  0xec   :  { %v249_v44 = vpop.f32.mrf.mxu2 }
  0xed   :  { %v347_v46 = vpop.f32.mrf.mxu3 }
  0xef   :  { %v228_v56 = vpop.f32.mrf.mxu0 }
  0xf1   :  { %447 = vmatmul.f32.gmra.mxu2 %v3884_v29  ;;  %v326_v58 = vpop.f32.mrf.mxu1 }
  0xf4   :  { %v252_v48 = vpop.f32.mrf.mxu2 }
  0xf5   :  { %v350_v50 = vpop.f32.mrf.mxu3 }
  0xf7   :  { %v231_v62 = vpop.f32.mrf.mxu0 }
  0xf9   :  { %450 = vmatmul.f32.gmra.mxu2 %v3886_v30  ;;  %v329_v29 = vpop.f32.mrf.mxu1 }
  0xfc   :  { %v255_v54 = vpop.f32.mrf.mxu2 }
  0xfd   :  { %v353_v27 = vpop.f32.mrf.mxu3 }
 0x101   :  { %453 = vmatmul.f32.gmra.mxu2 %v3888_v31  ;;  %v234_v31 = vpop.f32.mrf.mxu0 }
 0x104   :  { %v258_v60 = vpop.f32.mrf.mxu2 }
 0x105   :  { %569 = vmatpush.msra.mxu3 %v258_v60  ;;  %v356_v28 = vpop.f32.mrf.mxu3  ;;  %v506_v60 = vld [vmem:[#allocation2 + $0x108] sm:$0xff] }
 0x106   :  { %634 = vmatpush.msra.mxu0 %v356_v28  ;;  %v507_v28 = vld [vmem:[#allocation2 + $0x110] sm:$0xff] }
 0x107   :  { %570 = vmatpush.msra.mxu3 %v255_v54  ;;  %v503_v54 = vld [vmem:[#allocation2 + $0xf0] sm:$0xff] }
 0x108   :  { %635 = vmatpush.msra.mxu0 %v353_v27  ;;  %v504_v27 = vld [vmem:[#allocation2 + $0xf8] sm:$0xff] }
 0x109   :  { %571 = vmatpush.msra.mxu3 %v252_v48  ;;  %796 = vmatmul.f32.vlgmr.msra.gmra.mxu2 %v3826_v0  ;;  %v500_v48 = vld [vmem:[#allocation2 + $0xd8] sm:$0xff] }
 0x10a   :  { %636 = vmatpush.msra.mxu0 %v350_v50  ;;  %1168 = vmatpush.msra.mxu2 %v4018_v15  ;;  %v332_v15 = vpop.f32.mrf.mxu1 }
 0x10b   :  { %572 = vmatpush.msra.mxu3 %v249_v44 }
 0x10c   :  { %v4144_v30 = vpop.f32.mrf.mxu2  ;;  %637 = vmatpush.msra.mxu0 %v347_v46  ;;  %1169 = vmatpush.msra.mxu2 %v4022_v14  ;;  %v4197_v14 = vld [vmem:[#allocation2 + $0x30] sm:$0xff]  ;;  %v5457_v46 = vld [vmem:[#allocation35_spill] sm:$0xff] }
 0x10d   :  { %573 = vmatpush.msra.mxu3 %v246_v38  ;;  %v5456_v38 = vld [vmem:[#allocation34_spill] sm:$0xff] }
 0x10e   :  { %638 = vmatpush.msra.mxu0 %v344_v40  ;;  %1170 = vmatpush.msra.mxu2 %v4027_v13  ;;  %v497_v40 = vld [vmem:[#allocation2 + $0xc0] sm:$0xff] }
 0x10f   :  { %574 = vmatpush.msra.mxu3 %v243_v21  ;;  %v5455_v21 = vld [vmem:[#allocation33_spill] sm:$0xff] }
 0x110   :  { %639 = vmatpush.msra.mxu0 %v341_v22  ;;  %1171 = vmatpush.msra.mxu2 %v4031_v12  ;;  %v4186_v12 = vld [vmem:[#allocation2 + $0x20] sm:$0xff]  ;;  %v4253_v22 = vld [vmem:[#allocation2 + $0xa8] sm:$0xff] }
 0x111   :  { %575 = vmatpush.msra.mxu3 %v240_v32  ;;  %799 = vmatmul.f32.gmra.mxu2 %v3828_v1  ;;  %v5454_v32 = vld [vmem:[#allocation32_spill] sm:$0xff] }
 0x112   :  { %640 = vmatpush.msra.mxu0 %v338_v33  ;;  %1172 = vmatpush.msra.mxu2 %v4036_v11  ;;  %v4244_v33 = vld [vmem:[#allocation2 + $0x90] sm:$0xff] }
 0x113   :  { %576 = vmatpush.msra.mxu3 %v237_v16  ;;  %v5453_v16 = vld [vmem:[#allocation31_spill] sm:$0xff] }
 0x114   :  { %v4151_v44 = vpop.f32.mrf.mxu2  ;;  %641 = vmatpush.msra.mxu0 %v335_v18  ;;  %1173 = vmatpush.msra.mxu2 %v4040_v10  ;;  %v4237_v18 = vld [vmem:[#allocation2 + $0x80] sm:$0xff] }
 0x115   :  { %577 = vmatpush.msra.mxu3 %v234_v31  ;;  %v515_v31 = vld [vmem:[#allocation2 + $0x150] sm:$0xff] }
 0x116   :  { %642 = vmatpush.msra.mxu0 %v332_v15  ;;  %1174 = vmatpush.msra.mxu2 %v4044_v9  ;;  %v4170_v9 = vld [vmem:[#allocation2 + $0x8] sm:$0xff]  ;;  %v512_v15 = vld [vmem:[#allocation2 + $0x138] sm:$0xff] }
 0x117   :  { %578 = vmatpush.msra.mxu3 %v231_v62  ;;  %v518_v62 = vld [vmem:[#allocation2 + $0x168] sm:$0xff] }
 0x118   :  { %643 = vmatpush.msra.mxu0 %v329_v29  ;;  %1175 = vmatpush.msra.mxu2 %v4049_v8  ;;  %v4167_v8 = vld [vmem:[#allocation2] sm:$0xff] }
 0x119   :  { %579 = vmatpush.msra.mxu3 %v228_v56  ;;  %802 = vmatmul.f32.gmra.mxu2 %v3830_v2 }
 0x11a   :  { %644 = vmatpush.msra.mxu0 %v326_v58  ;;  %1176 = vmatpush.msra.mxu2 %v4053_v63  ;;  %v5452_v63 = vld [vmem:[#allocation45_spill] sm:$0xff] }
 0x11b   :  { %580 = vmatpush.msra.mxu3 %v225_v26  ;;  %v501_v26 = vld [vmem:[#allocation2 + $0xe0] sm:$0xff]  ;;  %v5459_v58 = vld [vmem:[#allocation37_spill] sm:$0xff]  ;;  %3290 = vmatpush.lsf.msrb.mxu1 %v518_v62 }
 0x11c   :  { %v4158_v11 = vpop.f32.mrf.mxu2  ;;  %645 = vmatpush.msra.mxu0 %v323_v52  ;;  %1177 = vmatpush.msra.mxu2 %v4057_v61  ;;  %v5458_v52 = vld [vmem:[#allocation36_spill] sm:$0xff] }
 0x11d   :  { %581 = vmatpush.msra.mxu3 %v222_v25  ;;  %v498_v25 = vld [vmem:[#allocation2 + $0xc8] sm:$0xff]  ;;  %3291 = vmatpush.lsf.msrb.mxu1 %v515_v31 }
 0x11e   :  { %646 = vmatpush.msra.mxu0 %v320_v42  ;;  %1178 = vmatpush.msra.mxu2 %v4062_v59  ;;  %v5451_v59 = vld [vmem:[#allocation44_spill] sm:$0xff] }
 0x11f   :  { %582 = vmatpush.msra.mxu3 %v4133_v23  ;;  %v4255_v23 = vld [vmem:[#allocation2 + $0xb0] sm:$0xff]  ;;  %3292 = vmatpush.lsf.msrb.mxu1 %v512_v15 }
 0x120   :  { %647 = vmatpush.msra.mxu0 %v4136_v24  ;;  %1179 = vmatpush.msra.mxu2 %v4066_v7  ;;  %v4184_v7 = vld [vmem:[#allocation2 + $0x18] sm:$0xff] }
 0x121   :  { %583 = vmatpush.msra.mxu3 %v4128_v35  ;;  %805 = vmatmul.f32.gmra.mxu2 %v3832_v3  ;;  %v4246_v35 = vld [vmem:[#allocation2 + $0x98] sm:$0xff] }
 0x122   :  { %648 = vmatpush.msra.mxu0 %v4130_v20  ;;  %1180 = vmatpush.msra.mxu2 %v4070_v57  ;;  %v4226_v57 = vld [vmem:[#allocation2 + $0x68] sm:$0xff] }
 0x123   :  { %584 = vmatpush.msra.mxu3 %v4123_v17  ;;  %v4235_v17 = vld [vmem:[#allocation2 + $0x78] sm:$0xff] }
 0x124   :  { %v4174_v10 = vpop.f32.mrf.mxu2  ;;  %585 = vmatmul.f32.vlgmr.msra.gmra.mxu3 %v4167_v8  ;;  %649 = vmatpush.msra.mxu0 %v4125_v19 }
 0x125   :  { %650 = vmatmul.f32.vlgmr.msra.gmra.mxu0 %v4170_v9  ;;  %1181 = vmatpush.msra.mxu2 %v4075_v55  ;;  %v5450_v55 = vld [vmem:[#allocation43_spill] sm:$0xff] }
 0x126   :  { %877 = vmatpush.msra.mxu3 %v3895_v34  ;;  %v4200_v34 = vld [vmem:[#allocation2 + $0x38] sm:$0xff] }
 0x127   :  { %1182 = vmatpush.msra.mxu2 %v4079_v53  ;;  %v4223_v53 = vld [vmem:[#allocation2 + $0x60] sm:$0xff] }
 0x128   :  { %878 = vmatpush.msra.mxu3 %v3901_v36 }
 0x129   :  { %808 = vmatmul.f32.gmra.mxu2 %v3834_v4 }
 0x12a   :  { %1183 = vmatpush.msra.mxu2 %v4083_v51  ;;  %879 = vmatpush.msra.mxu3 %v3905_v37  ;;  %v4210_v37 = vld [vmem:[#allocation2 + $0x48] sm:$0xff]  ;;  %v5447_v51 = vld [vmem:[#allocation41_spill] sm:$0xff] }
 0x12c   :  { %v4190_v13 = vpop.f32.mrf.mxu2  ;;  %588 = vmatmul.f32.gmra.mxu3 %v4184_v7 }
 0x12d   :  { %653 = vmatmul.f32.gmra.mxu0 %v4186_v12  ;;  %880 = vmatpush.msra.mxu3 %v3913_v39  ;;  %v5445_v39 = vld [vmem:[#allocation39_spill] sm:$0xff] }
 0x12f   :  { %881 = vmatpush.msra.mxu3 %v3921_v41  ;;  %v4213_v41 = vld [vmem:[#allocation2 + $0x50] sm:$0xff] }
 0x131   :  { %811 = vmatmul.f32.gmra.mxu2 %v3836_v5  ;;  %882 = vmatpush.msra.mxu3 %v3929_v43  ;;  %v5446_v43 = vld [vmem:[#allocation40_spill] sm:$0xff] }
 0x133   :  { %883 = vmatpush.msra.mxu3 %v3935_v45 }
 0x134   :  { %v4203_v36 = vpop.f32.mrf.mxu2  ;;  %591 = vmatmul.f32.gmra.mxu3 %v4197_v14 }
 0x135   :  { %656 = vmatmul.f32.gmra.mxu0 %v4200_v34  ;;  %884 = vmatpush.msra.mxu3 %v3945_v47  ;;  %v5448_v47 = vld [vmem:[#allocation42_spill] sm:$0xff] }
 0x137   :  { %885 = vmatpush.msra.mxu3 %v3953_v49  ;;  %v5449_v49 = vld [vmem:[#allocation30_spill] sm:$0xff] }
 0x139   :  { %814 = vmatmul.f32.gmra.mxu2 %v3838_v6  ;;  %886 = vmatpush.msra.mxu3 %v5445_v39  ;;  %v5460_v39 = vld [vmem:[#allocation38_spill] sm:$0xff] }
 0x13b   :  { %887 = vmatpush.msra.mxu3 %v5446_v43  ;;  %v509_v43 = vld [vmem:[#allocation2 + $0x120] sm:$0xff] }
 0x13c   :  { %v4216_v45 = vpop.f32.mrf.mxu2  ;;  %594 = vmatmul.f32.gmra.mxu3 %v4210_v37  ;;  %3293 = vmatpush.lsf.msrb.mxu1 %v509_v43 }
 0x13d   :  { %659 = vmatmul.f32.gmra.mxu0 %v4213_v41  ;;  %888 = vmatpush.msra.mxu3 %v5447_v51  ;;  %v519_v51 = vld [vmem:[#allocation2 + $0x170] sm:$0xff] }
 0x13e   :  { %3251 = vmatpush.lsf.msrb.mxu0 %v519_v51 }
 0x13f   :  { %889 = vmatpush.msra.mxu3 %v5448_v47  ;;  %v510_v47 = vld [vmem:[#allocation2 + $0x128] sm:$0xff] }
 0x141   :  { %817 = vmatmul.f32.gmra.mxu2 %v5449_v49  ;;  %890 = vmatpush.msra.mxu3 %v5450_v55  ;;  %v516_v55 = vld [vmem:[#allocation2 + $0x158] sm:$0xff] }
 0x142   :  { %3252 = vmatpush.lsf.msrb.mxu0 %v516_v55 }
 0x143   :  { %891 = vmatpush.msra.mxu3 %v5451_v59 }
 0x144   :  { %v4229_v61 = vpop.f32.mrf.mxu2  ;;  %597 = vmatmul.f32.gmra.mxu3 %v4223_v53 }
 0x145   :  { %662 = vmatmul.f32.gmra.mxu0 %v4226_v57  ;;  %892 = vmatpush.msra.mxu3 %v5452_v63  ;;  %v513_v63 = vld [vmem:[#allocation2 + $0x140] sm:$0xff] }
 0x146   :  { %3253 = vmatpush.lsf.msrb.mxu0 %v513_v63 }
 0x148   :  { %3254 = vmatpush.lsf.msrb.mxu0 %v510_v47 }
 0x149   :  { %820 = vmatmul.f32.gmra.mxu2 %v5453_v16 }
 0x14a   :  { %3255 = vmatpush.lsf.msrb.mxu0 %v507_v28 }
 0x14c   :  { %v4239_v19 = vpop.f32.mrf.mxu2  ;;  %600 = vmatmul.f32.gmra.mxu3 %v4235_v17  ;;  %3256 = vmatpush.lsf.msrb.mxu0 %v504_v27 }
 0x14d   :  { %665 = vmatmul.f32.gmra.mxu0 %v4237_v18 }
 0x14e   :  { %3257 = vmatpush.lsf.msrb.mxu0 %v501_v26 }
 0x150   :  { %3258 = vmatpush.lsf.msrb.mxu0 %v498_v25 }
 0x151   :  { %823 = vmatmul.f32.gmra.mxu2 %v5454_v32 }
 0x152   :  { %3259 = vmatpush.lsf.msrb.mxu0 %v4255_v23 }
 0x154   :  { %v4248_v20 = vpop.f32.mrf.mxu2  ;;  %603 = vmatmul.f32.gmra.mxu3 %v4244_v33  ;;  %3260 = vmatpush.lsf.msrb.mxu0 %v4246_v35 }
 0x155   :  { %668 = vmatmul.f32.gmra.mxu0 %v4246_v35 }
 0x156   :  { %3261 = vmatpush.lsf.msrb.mxu0 %v4237_v18 }
 0x158   :  { %3262 = vmatpush.lsf.msrb.mxu0 %v4226_v57  ;;  %v496_v57 = vld [vmem:[#allocation2 + $0xb8] sm:$0xff] }
 0x159   :  { %826 = vmatmul.f32.gmra.mxu2 %v5455_v21 }
 0x15a   :  { %3263 = vmatpush.lsf.msrb.mxu0 %v4213_v41 }
 0x15c   :  { %v439_v24 = vpop.f32.mrf.mxu2  ;;  %606 = vmatmul.f32.gmra.mxu3 %v4253_v22  ;;  %3264 = vmatpush.lsf.msrb.mxu0 %v4200_v34  ;;  %v4336_v34 = vld [vmem:[#allocation2 + $0x70] sm:$0xff] }
 0x15d   :  { %671 = vmatmul.f32.gmra.mxu0 %v4255_v23 }
 0x15e   :  { %3265 = vmatpush.lsf.msrb.mxu0 %v4186_v12  ;;  %v4327_v12 = vld [vmem:[#allocation2 + $0x58] sm:$0xff] }
 0x160   :  { %3266 = vmatpush.lsf.msrb.mxu0 %v4170_v9 }
 0x161   :  { %829 = vmatmul.f32.gmra.mxu2 %v5456_v38 }
 0x164   :  { %v442_v42 = vpop.f32.mrf.mxu2  ;;  %609 = vmatmul.f32.gmra.mxu3 %v497_v40 }
 0x165   :  { %674 = vmatmul.f32.gmra.mxu0 %v498_v25 }
 0x169   :  { %832 = vmatmul.f32.gmra.mxu2 %v5457_v46 }
 0x16c   :  { %v445_v50 = vpop.f32.mrf.mxu2  ;;  %612 = vmatmul.f32.gmra.mxu3 %v500_v48 }
 0x16d   :  { %677 = vmatmul.f32.gmra.mxu0 %v501_v26  ;;  %v5461_v26 = vld [vmem:[#allocation38_spill] sm:$0xff] }
 0x171   :  { %835 = vmatmul.f32.gmra.mxu2 %v5458_v52 }
 0x174   :  { %v448_v56 = vpop.f32.mrf.mxu2  ;;  %615 = vmatmul.f32.gmra.mxu3 %v503_v54 }
 0x175   :  { %680 = vmatmul.f32.gmra.mxu0 %v504_v27 }
 0x179   :  { %838 = vmatmul.f32.gmra.mxu2 %v5459_v58 }
 0x17c   :  { %v451_v29 = vpop.f32.mrf.mxu2  ;;  %618 = vmatmul.f32.gmra.mxu3 %v506_v60 }
 0x17d   :  { %683 = vmatmul.f32.gmra.mxu0 %v507_v28 }
 0x181   :  { %841 = vmatmul.f32.gmra.mxu2 %v5460_v39 }
 0x184   :  { %v454_v59 = vpop.f32.mrf.mxu2  ;;  %621 = vmatmul.f32.gmra.mxu3 %v509_v43 }
 0x185   :  { %699 = vmatpush.msra.mxu1 %v454_v59  ;;  %686 = vmatmul.f32.gmra.mxu0 %v510_v47 }
 0x187   :  { %3294 = vmatpush.lsf.msrb.mxu1 %v506_v60 }
 0x189   :  { %700 = vmatpush.msra.mxu1 %v451_v29  ;;  %1184 = vmatmul.f32.vlgmr.msra.gmra.mxu2 %v3826_v0 }
 0x18b   :  { %3295 = vmatpush.lsf.msrb.mxu1 %v503_v54 }
 0x18c   :  { %624 = vmatmul.f32.gmra.mxu3 %v512_v15  ;;  %v4265_v39 = vpop.f32.mrf.mxu2 }
 0x18d   :  { %701 = vmatpush.msra.mxu1 %v448_v56  ;;  %689 = vmatmul.f32.gmra.mxu0 %v513_v63 }
 0x18f   :  { %3296 = vmatpush.lsf.msrb.mxu1 %v500_v48 }
 0x191   :  { %702 = vmatpush.msra.mxu1 %v445_v50  ;;  %1187 = vmatmul.f32.gmra.mxu2 %v3828_v1  ;;  %v511_v50 = vld [vmem:[#allocation2 + $0x130] sm:$0xff] }
 0x193   :  { %703 = vmatpush.msra.mxu1 %v442_v42  ;;  %v514_v42 = vld [vmem:[#allocation2 + $0x148] sm:$0xff] }
 0x194   :  { %627 = vmatmul.f32.gmra.mxu3 %v515_v31  ;;  %v4273_v48 = vpop.f32.mrf.mxu2 }
 0x195   :  { %3297 = vmatpush.lsf.msrb.mxu1 %v497_v40  ;;  %692 = vmatmul.f32.gmra.mxu0 %v516_v55  ;;  %v520_v40 = vld [vmem:[#allocation2 + $0x178] sm:$0xff] }
 0x196   :  { %3398 = vmatpush.lsf.msrb.mxu3 %v520_v40 }
 0x197   :  { %704 = vmatpush.msra.mxu1 %v439_v24 }
 0x199   :  { %3298 = vmatpush.lsf.msrb.mxu1 %v4253_v22  ;;  %1190 = vmatmul.f32.gmra.mxu2 %v3830_v2 }
 0x19b   :  { %705 = vmatpush.msra.mxu1 %v4248_v20 }
 0x19c   :  { %630 = vmatmul.f32.gmra.mxu3 %v518_v62 }
 0x19d   :  { %3299 = vmatpush.lsf.msrb.mxu1 %v4244_v33  ;;  %695 = vmatmul.f32.gmra.mxu0 %v519_v51 }
 0x19f   :  { %706 = vmatpush.msra.mxu1 %v4239_v19 }
 0x1a1   :  { %707 = vmatpush.msra.mxu1 %v4229_v61  ;;  %v4287_v61 = vpop.f32.mrf.mxu2  ;;  %1193 = vmatmul.f32.gmra.mxu2 %v3832_v3 }
 0x1a3   :  { %3300 = vmatpush.lsf.msrb.mxu1 %v4235_v17 }
 0x1a4   :  { %3267 = vllmr.16.mxu0  ;;  %893 = vmatmul.f32.vlgmr.msra.gmra.mxu3 %v3826_v0 }
 0x1a5   :  { %708 = vmatpush.msra.mxu1 %v4216_v45  ;;  %v493_v45 = vld [vmem:[#allocation2 + $0xa0] sm:$0xff] }
 0x1a7   :  { %3301 = vmatpush.lsf.msrb.mxu1 %v4223_v53 }
 0x1a9   :  { %709 = vmatpush.msra.mxu1 %v4203_v36  ;;  %1196 = vmatmul.f32.gmra.mxu2 %v3834_v4 }
 0x1ab   :  { %3302 = vmatpush.lsf.msrb.mxu1 %v4210_v37  ;;  %v4345_v37 = vld [vmem:[#allocation2 + $0x88] sm:$0xff] }
 0x1ac   :  { %896 = vmatmul.f32.gmra.mxu3 %v3828_v1 }
 0x1ad   :  { %710 = vmatpush.msra.mxu1 %v4190_v13  ;;  %v4298_v13 = vld [vmem:[#allocation2 + $0x10] sm:$0xff] }
 0x1af   :  { %711 = vmatpush.msra.mxu1 %v4174_v10  ;;  %v4303_v10 = vpop.f32.mrf.mxu2 }
 0x1b1   :  { %3303 = vmatpush.lsf.msrb.mxu1 %v4197_v14  ;;  %1199 = vmatmul.f32.gmra.mxu2 %v3836_v5 }
 0x1b3   :  { %712 = vmatpush.msra.mxu1 %v4158_v11  ;;  %v4306_v11 = vpop.f32.mrf.mxu3 }
 0x1b4   :  { %899 = vmatmul.f32.gmra.mxu3 %v3830_v2 }
 0x1b5   :  { %3304 = vmatpush.lsf.msrb.mxu1 %v4184_v7 }
 0x1b7   :  { %713 = vmatpush.msra.mxu1 %v4151_v44  ;;  %v4309_v44 = vld [vmem:[#allocation2 + $0x28] sm:$0xff]  ;;  %v4312_v9 = vpop.f32.mrf.mxu2 }
 0x1b9   :  { %3305 = vmatpush.lsf.msrb.mxu1 %v4167_v8  ;;  %v4318_v8 = vld [vmem:[#allocation2 + $0x40] sm:$0xff]  ;;  %1202 = vmatmul.f32.gmra.mxu2 %v3838_v6 }
 0x1bb   :  { %714 = vmatpush.msra.mxu1 %v4144_v30  ;;  %v4315_v30 = vpop.f32.mrf.mxu3 }
 0x1bc   :  { %715 = vmatmul.f32.vlgmr.msra.gmra.mxu1 %v4298_v13  ;;  %902 = vmatmul.f32.gmra.mxu3 %v3832_v3 }
 0x1bf   :  { %v4321_v0 = vpop.f32.mrf.mxu2 }
 0x1c1   :  { %1205 = vmatmul.f32.gmra.mxu2 %v5449_v49 }
 0x1c3   :  { %3306 = vllmr.16.mxu1  ;;  %v4324_v7 = vpop.f32.mrf.mxu3 }
 0x1c4   :  { %718 = vmatmul.f32.gmra.mxu1 %v4309_v44  ;;  %905 = vmatmul.f32.gmra.mxu3 %v3834_v4 }
 0x1c7   :  { %v4330_v1 = vpop.f32.mrf.mxu2 }
 0x1c9   :  { %1208 = vmatmul.f32.gmra.mxu2 %v5453_v16 }
 0x1cb   :  { %v4333_v14 = vpop.f32.mrf.mxu3 }
 0x1cc   :  { %721 = vmatmul.f32.gmra.mxu1 %v4318_v8  ;;  %908 = vmatmul.f32.gmra.mxu3 %v3836_v5  ;;  %v499_v5 = vld [vmem:[#allocation2 + $0xd0] sm:$0xff] }
 0x1cf   :  { %v4339_v2 = vpop.f32.mrf.mxu2 }
 0x1d1   :  { %1211 = vmatmul.f32.gmra.mxu2 %v5454_v32 }
 0x1d3   :  { %v4342_v36 = vpop.f32.mrf.mxu3 }
 0x1d4   :  { %724 = vmatmul.f32.gmra.mxu1 %v4327_v12  ;;  %911 = vmatmul.f32.gmra.mxu3 %v3838_v6  ;;  %v502_v6 = vld [vmem:[#allocation2 + $0xe8] sm:$0xff] }
 0x1d7   :  { %v4348_v3 = vpop.f32.mrf.mxu2 }
 0x1d9   :  { %1214 = vmatmul.f32.gmra.mxu2 %v5455_v21 }
 0x1db   :  { %v4351_v41 = vpop.f32.mrf.mxu3 }
 0x1dc   :  { %727 = vmatmul.f32.gmra.mxu1 %v4336_v34  ;;  %914 = vmatmul.f32.gmra.mxu3 %v5449_v49  ;;  %v505_v49 = vld [vmem:[#allocation2 + $0x100] sm:$0xff] }
 0x1df   :  { %v824_v53 = vpop.f32.mrf.mxu2 }
 0x1e1   :  { %1217 = vmatmul.f32.gmra.mxu2 %v5456_v38 }
 0x1e3   :  { %v4355_v4 = vpop.f32.mrf.mxu3 }
 0x1e4   :  { %730 = vmatmul.f32.gmra.mxu1 %v4345_v37  ;;  %917 = vmatmul.f32.gmra.mxu3 %v5453_v16  ;;  %v508_v16 = vld [vmem:[#allocation2 + $0x118] sm:$0xff] }
 0x1e7   :  { %v827_v17 = vpop.f32.mrf.mxu2 }
 0x1e9   :  { %1220 = vmatmul.f32.gmra.mxu2 %v5457_v46 }
 0x1eb   :  { %v4359_v18 = vpop.f32.mrf.mxu3 }
 0x1ec   :  { %733 = vmatmul.f32.gmra.mxu1 %v493_v45  ;;  %920 = vmatmul.f32.gmra.mxu3 %v5454_v32  ;;  %v517_v32 = vld [vmem:[#allocation2 + $0x160] sm:$0xff] }
 0x1ed   :  { %3399 = vmatpush.lsf.msrb.mxu3 %v517_v32 }
 0x1ef   :  { %v830_v19 = vpop.f32.mrf.mxu2  ;;  %3400 = vmatpush.lsf.msrb.mxu3 %v514_v42 }
 0x1f1   :  { %1223 = vmatmul.f32.gmra.mxu2 %v5458_v52  ;;  %3401 = vmatpush.lsf.msrb.mxu3 %v511_v50 }
 0x1f3   :  { %v4363_v33 = vpop.f32.mrf.mxu3  ;;  %3402 = vmatpush.lsf.msrb.mxu3 %v508_v16 }
 0x1f4   :  { %736 = vmatmul.f32.gmra.mxu1 %v496_v57  ;;  %923 = vmatmul.f32.gmra.mxu3 %v5455_v21 }
 0x1f5   :  { %3403 = vmatpush.lsf.msrb.mxu3 %v505_v49 }
 0x1f7   :  { %v833_v35 = vpop.f32.mrf.mxu2  ;;  %3404 = vmatpush.lsf.msrb.mxu3 %v502_v6 }
 0x1f9   :  { %1226 = vmatmul.f32.gmra.mxu2 %v5459_v58  ;;  %3405 = vmatpush.lsf.msrb.mxu3 %v499_v5 }
 0x1fb   :  { %v4367_v20 = vpop.f32.mrf.mxu3  ;;  %3406 = vmatpush.lsf.msrb.mxu3 %v496_v57 }
 0x1fc   :  { %739 = vmatmul.f32.gmra.mxu1 %v499_v5  ;;  %926 = vmatmul.f32.gmra.mxu3 %v5456_v38 }
 0x1fd   :  { %3407 = vmatpush.lsf.msrb.mxu3 %v493_v45 }
 0x1ff   :  { %v836_v22 = vpop.f32.mrf.mxu2  ;;  %3408 = vmatpush.lsf.msrb.mxu3 %v4345_v37 }
 0x201   :  { %1229 = vmatmul.f32.gmra.mxu2 %v5461_v26  ;;  %3409 = vmatpush.lsf.msrb.mxu3 %v4336_v34 }
 0x203   :  { %v4371_v23 = vpop.f32.mrf.mxu3  ;;  %3410 = vmatpush.lsf.msrb.mxu3 %v4327_v12 }
 0x204   :  { %742 = vmatmul.f32.gmra.mxu1 %v502_v6  ;;  %929 = vmatmul.f32.gmra.mxu3 %v5457_v46 }
 0x205   :  { %3411 = vmatpush.lsf.msrb.mxu3 %v4318_v8 }
 0x207   :  { %v839_v24 = vpop.f32.mrf.mxu2  ;;  %3412 = vmatpush.lsf.msrb.mxu3 %v4309_v44 }
 0x209   :  { %3413 = vmatpush.lsf.msrb.mxu3 %v4298_v13 }
 0x20b   :  { %v4375_v25 = vpop.f32.mrf.mxu3 }
 0x20c   :  { %745 = vmatmul.f32.gmra.mxu1 %v505_v49  ;;  %932 = vmatmul.f32.gmra.mxu3 %v5458_v52 }
 0x20f   :  { %v842_v21 = vpop.f32.mrf.mxu2 }
 0x210   :  { %1087 = vmatpush.msra.mxu1 %v842_v21 }
 0x212   :  { %1088 = vmatpush.msra.mxu1 %v839_v24 }
 0x213   :  { %v4379_v54 = vpop.f32.mrf.mxu3 }
 0x214   :  { %748 = vmatmul.f32.gmra.mxu1 %v508_v16  ;;  %935 = vmatmul.f32.gmra.mxu3 %v5459_v58 }
 0x215   :  { %1089 = vmatpush.msra.mxu1 %v836_v22  ;;  %v4442_v22 = vpop.f32.mrf.mxu0 }
 0x217   :  { %1090 = vmatpush.msra.mxu1 %v833_v35  ;;  %v4382_v38 = vpop.f32.mrf.mxu2 }
 0x219   :  { %1091 = vmatpush.msra.mxu1 %v830_v19 }
 0x21b   :  { %v4384_v27 = vpop.f32.mrf.mxu3  ;;  %1092 = vmatpush.msra.mxu1 %v827_v17 }
 0x21c   :  { %751 = vmatmul.f32.gmra.mxu1 %v511_v50  ;;  %938 = vmatmul.f32.gmra.mxu3 %v5461_v26 }
 0x21d   :  { %1093 = vmatpush.msra.mxu1 %v824_v53  ;;  %v4447_v24 = vpop.f32.mrf.mxu0 }
 0x21f   :  { %1094 = vmatpush.msra.mxu1 %v4348_v3  ;;  %v4390_v46 = vpop.f32.mrf.mxu2 }
 0x221   :  { %1095 = vmatpush.msra.mxu1 %v4339_v2 }
 0x223   :  { %v4394_v52 = vpop.f32.mrf.mxu3  ;;  %1096 = vmatpush.msra.mxu1 %v4330_v1  ;;  %3414 = vllmr.16.mxu3 }
 0x224   :  { %754 = vmatmul.f32.gmra.mxu1 %v514_v42 }
 0x225   :  { %1097 = vmatpush.msra.mxu1 %v4321_v0 }
 0x227   :  { %1098 = vmatpush.msra.mxu1 %v4312_v9  ;;  %v4403_v56 = vpop.f32.mrf.mxu2 }
 0x229   :  { %1099 = vmatpush.msra.mxu1 %v4303_v10 }
 0x22b   :  { %v4406_v58 = vpop.f32.mrf.mxu3  ;;  %1100 = vmatpush.msra.mxu1 %v4287_v61 }
 0x22c   :  { %757 = vmatmul.f32.gmra.mxu1 %v517_v32  ;;  %5462 = vst [vmem:[#allocation39_spill] sm:$0xff] %v4406_v58 }
 0x22d   :  { %1101 = vmatpush.msra.mxu1 %v4273_v48 }
 0x22f   :  { %1102 = vmatpush.msra.mxu1 %v4265_v39  ;;  %v4411_v60 = vpop.f32.mrf.mxu2 }
 0x233   :  { %v4413_v28 = vpop.f32.mrf.mxu3 }
 0x234   :  { %760 = vmatmul.f32.gmra.mxu1 %v520_v40  ;;  %v4449_v40 = vpop.f32.mrf.mxu0 }
 0x237   :  { %v1197_v62 = vpop.f32.mrf.mxu2 }
 0x239   :  { %v4425_v48 = vpop.f32.mrf.mxu1 }
 0x23b   :  { %v4415_v29 = vpop.f32.mrf.mxu3 }
 0x23c   :  { %3307 = vmatmul.lmr.bf16.vlgmr.msra.gmra.16.mxu1  ;;  %v4455_v32 = vpop.f32.mrf.mxu0 }
 0x23f   :  { %v1200_v31 = vpop.f32.mrf.mxu2 }
 0x241   :  { %v4427_v44 = vpop.f32.mrf.mxu1 }
 0x243   :  { %v4417_v15 = vpop.f32.mrf.mxu3 }
 0x244   :  { %3308 = vmatmul.lmr.bf16.gmra.16.mxu1  ;;  %v4459_v42 = vpop.f32.mrf.mxu0 }
 0x247   :  { %v1203_v43 = vpop.f32.mrf.mxu2 }
 0x249   :  { %v4429_v0 = vpop.f32.mrf.mxu1 }
 0x24b   :  { %v4419_v51 = vpop.f32.mrf.mxu3 }
 0x24c   :  { %3309 = vmatmul.lmr.bf16.gmra.16.mxu1  ;;  %v4463_v50 = vpop.f32.mrf.mxu0 }
 0x24f   :  { %v1206_v47 = vpop.f32.mrf.mxu2 }
 0x251   :  { %v4431_v34 = vpop.f32.mrf.mxu1 }
 0x253   :  { %v4421_v39 = vpop.f32.mrf.mxu3 }
 0x254   :  { %3310 = vmatmul.lmr.bf16.gmra.16.mxu1 }
 0x257   :  { %v1209_v55 = vpop.f32.mrf.mxu2 }
 0x259   :  { %v4433_v45 = vpop.f32.mrf.mxu1 }
 0x25b   :  { %v4423_v59 = vpop.f32.mrf.mxu3 }
 0x25c   :  { %3311 = vmatmul.lmr.bf16.gmra.16.mxu1 }
 0x25f   :  { %v1212_v63 = vpop.f32.mrf.mxu2 }
 0x261   :  { %v4435_v5 = vpop.f32.mrf.mxu1 }
 0x263   :  { %v912_v61 = vpop.f32.mrf.mxu3 }
 0x264   :  { %3312 = vmatmul.lmr.bf16.gmra.16.mxu1 }
 0x267   :  { %v1215_v13 = vpop.f32.mrf.mxu2 }
 0x269   :  { %v4437_v6 = vpop.f32.mrf.mxu1 }
 0x26b   :  { %v915_v10 = vpop.f32.mrf.mxu3 }
 0x26c   :  { %3313 = vmatmul.lmr.bf16.gmra.16.mxu1 }
 0x26f   :  { %v1218_v9 = vpop.f32.mrf.mxu2 }
 0x271   :  { %v4439_v49 = vpop.f32.mrf.mxu1 }
 0x273   :  { %v918_v8 = vpop.f32.mrf.mxu3 }
 0x274   :  { %3314 = vmatmul.lmr.bf16.gmra.16.mxu1 }
 0x277   :  { %v1221_v12 = vpop.f32.mrf.mxu2 }
 0x279   :  { %v4461_v26 = vpop.f32.mrf.mxu1 }
 0x27b   :  { %v921_v1 = vpop.f32.mrf.mxu3 }
 0x27c   :  { %3315 = vmatmul.lmr.bf16.gmra.16.mxu1 }
 0x27f   :  { %v1224_v2 = vpop.f32.mrf.mxu2 }
 0x281   :  { %v4465_v21 = vpop.f32.mrf.mxu1 }
 0x283   :  { %v924_v37 = vpop.f32.mrf.mxu3 }
 0x284   :  { %3316 = vmatmul.lmr.bf16.gmra.16.mxu1 }
 0x287   :  { %v1227_v3 = vpop.f32.mrf.mxu2 }
 0x28b   :  { %v927_v53 = vpop.f32.mrf.mxu3 }
 0x28c   :  { %3317 = vmatmul.lmr.bf16.gmra.16.mxu1 }
 0x28f   :  { %v1230_v57 = vpop.f32.mrf.mxu2 }
 0x290   :  { %1265 = vmatpush.msra.mxu3 %v1230_v57  ;;  %v1384_v57 = vld [vmem:[#allocation11 + $0x30] sm:$0xff] }
 0x292   :  { %1266 = vmatpush.msra.mxu3 %v1227_v3  ;;  %v1385_v3 = vld [vmem:[#allocation11 + $0x38] sm:$0xff] }
 0x293   :  { %v930_v17 = vpop.f32.mrf.mxu3 }
 0x294   :  { %3318 = vmatmul.lmr.bf16.gmra.16.mxu1  ;;  %1267 = vmatpush.msra.mxu3 %v1224_v2 }
 0x296   :  { %1268 = vmatpush.msra.mxu3 %v1221_v12  ;;  %v1490_v12 = vld [vmem:[#allocation13 + $0x58] sm:$0xff] }
 0x298   :  { %1269 = vmatpush.msra.mxu3 %v1218_v9  ;;  %v1387_v9 = vld [vmem:[#allocation11 + $0x48] sm:$0xff] }
 0x29a   :  { %1270 = vmatpush.msra.mxu3 %v1215_v13  ;;  %v1388_v13 = vld [vmem:[#allocation11 + $0x50] sm:$0xff] }
 0x29b   :  { %v933_v19 = vpop.f32.mrf.mxu3 }
 0x29c   :  { %3319 = vmatmul.lmr.bf16.gmra.16.mxu1  ;;  %1271 = vmatpush.msra.mxu3 %v1212_v63  ;;  %v1389_v63 = vld [vmem:[#allocation11 + $0x58] sm:$0xff] }
 0x29e   :  { %1272 = vmatpush.msra.mxu3 %v1209_v55 }
 0x2a0   :  { %1273 = vmatpush.msra.mxu3 %v1206_v47  ;;  %v1493_v47 = vld [vmem:[#allocation13 + $0x70] sm:$0xff] }
 0x2a2   :  { %1274 = vmatpush.msra.mxu3 %v1203_v43 }
 0x2a3   :  { %v936_v35 = vpop.f32.mrf.mxu3 }
 0x2a4   :  { %3320 = vmatmul.lmr.bf16.gmra.16.mxu1  ;;  %1275 = vmatpush.msra.mxu3 %v1200_v31  ;;  %v1393_v31 = vld [vmem:[#allocation11 + $0x78] sm:$0xff] }
 0x2a6   :  { %1276 = vmatpush.msra.mxu3 %v1197_v62 }
 0x2a8   :  { %1277 = vmatpush.msra.mxu3 %v4411_v60 }
 0x2aa   :  { %1278 = vmatpush.msra.mxu3 %v4403_v56 }
 0x2ab   :  { %v939_v16 = vpop.f32.mrf.mxu3 }
 0x2ac   :  { %3321 = vmatmul.lmr.bf16.gmra.16.mxu1  ;;  %990 = vmatpush.msra.mxu0 %v939_v16  ;;  %v1382_v16 = vld [vmem:[#allocation11 + $0x20] sm:$0xff] }
 0x2ad   :  { %1279 = vmatpush.msra.mxu3 %v4390_v46  ;;  %v4469_v46 = vpop.f32.mrf.mxu1 }
 0x2ae   :  { %991 = vmatpush.msra.mxu0 %v936_v35  ;;  %v1486_v35 = vld [vmem:[#allocation13 + $0x38] sm:$0xff] }
 0x2af   :  { %1280 = vmatpush.msra.mxu3 %v4382_v38  ;;  %v4467_v38 = vpop.f32.mrf.mxu0 }
 0x2b0   :  { %992 = vmatpush.msra.mxu0 %v933_v19  ;;  %3415 = vmatmul.lmr.bf16.vlgmr.msra.gmra.16.mxu3  ;;  %v1383_v19 = vld [vmem:[#allocation11 + $0x28] sm:$0xff] }
 0x2b2   :  { %993 = vmatpush.msra.mxu0 %v930_v17  ;;  %v1487_v17 = vld [vmem:[#allocation13 + $0x40] sm:$0xff] }
 0x2b4   :  { %3322 = vmatmul.lmr.bf16.gmra.16.mxu1  ;;  %994 = vmatpush.msra.mxu0 %v927_v53  ;;  %v1488_v53 = vld [vmem:[#allocation13 + $0x48] sm:$0xff] }
 0x2b5   :  { %v4473_v60 = vpop.f32.mrf.mxu1 }
 0x2b6   :  { %995 = vmatpush.msra.mxu0 %v924_v37  ;;  %v1489_v37 = vld [vmem:[#allocation13 + $0x50] sm:$0xff] }
 0x2b7   :  { %v4471_v56 = vpop.f32.mrf.mxu0 }
 0x2b8   :  { %996 = vmatpush.msra.mxu0 %v921_v1  ;;  %3416 = vmatmul.lmr.bf16.gmra.16.mxu3  ;;  %v1386_v1 = vld [vmem:[#allocation11 + $0x40] sm:$0xff] }
 0x2ba   :  { %997 = vmatpush.msra.mxu0 %v918_v8 }
 0x2bc   :  { %998 = vmatpush.msra.mxu0 %v915_v10  ;;  %v1491_v10 = vld [vmem:[#allocation13 + $0x60] sm:$0xff] }
 0x2bd   :  { %v4477_v62 = vpop.f32.mrf.mxu1 }
 0x2be   :  { %999 = vmatpush.msra.mxu0 %v912_v61  ;;  %v1492_v61 = vld [vmem:[#allocation13 + $0x68] sm:$0xff] }
 0x2c0   :  { %1000 = vmatpush.msra.mxu0 %v4423_v59  ;;  %3417 = vmatmul.lmr.bf16.gmra.16.mxu3  ;;  %v1390_v59 = vld [vmem:[#allocation11 + $0x60] sm:$0xff] }
 0x2c2   :  { %1001 = vmatpush.msra.mxu0 %v4421_v39  ;;  %v1391_v39 = vld [vmem:[#allocation11 + $0x68] sm:$0xff] }
 0x2c4   :  { %1002 = vmatpush.msra.mxu0 %v4419_v51  ;;  %v1494_v51 = vld [vmem:[#allocation13 + $0x78] sm:$0xff] }
 0x2c5   :  { %v4481_v43 = vpop.f32.mrf.mxu1  ;;  %1499 = vmatpush.msra.mxu1 %v1494_v51 }
 0x2c6   :  { %1003 = vmatpush.msra.mxu0 %v4417_v15  ;;  %v1392_v15 = vld [vmem:[#allocation11 + $0x70] sm:$0xff] }
 0x2c7   :  { %1500 = vmatpush.msra.mxu1 %v1493_v47  ;;  %v1381_v47 = vld [vmem:[#allocation11 + $0x18] sm:$0xff] }
 0x2c8   :  { %1004 = vmatpush.msra.mxu0 %v4415_v29  ;;  %3418 = vmatmul.lmr.bf16.gmra.16.mxu3 }
 0x2c9   :  { %1501 = vmatpush.msra.mxu1 %v1492_v61  ;;  %v1379_v61 = vld [vmem:[#allocation11 + $0x8] sm:$0xff] }
 0x2ca   :  { %1005 = vmatpush.msra.mxu0 %v4413_v28  ;;  %v4475_v28 = vpop.f32.mrf.mxu0 }
 0x2cb   :  { %3268 = vmatmul.lmr.bf16.vlgmr.msra.gmra.16.mxu0  ;;  %1502 = vmatpush.msra.mxu1 %v1491_v10 }
 0x2cc   :  { %1398 = vmatpush.msra.mxu0 %v1393_v31 }
 0x2cd   :  { %v4485_v8 = vpop.f32.mrf.mxu1  ;;  %1503 = vmatpush.msra.mxu1 %v1490_v12  ;;  %v1481_v12 = vld [vmem:[#allocation13 + $0x10] sm:$0xff] }
 0x2ce   :  { %1399 = vmatpush.msra.mxu0 %v1392_v15  ;;  %v1485_v15 = vld [vmem:[#allocation13 + $0x30] sm:$0xff] }
 0x2cf   :  { %1504 = vmatpush.msra.mxu1 %v1489_v37 }
 0x2d0   :  { %3419 = vmatmul.lmr.bf16.gmra.16.mxu3  ;;  %1400 = vmatpush.msra.mxu0 %v1391_v39  ;;  %v1484_v39 = vld [vmem:[#allocation13 + $0x28] sm:$0xff] }
 0x2d1   :  { %1505 = vmatpush.msra.mxu1 %v1488_v53 }
 0x2d2   :  { %v4479_v29 = vpop.f32.mrf.mxu0  ;;  %1401 = vmatpush.msra.mxu0 %v1390_v59  ;;  %v1380_v59 = vld [vmem:[#allocation11 + $0x10] sm:$0xff] }
 0x2d3   :  { %3269 = vmatmul.lmr.bf16.gmra.16.mxu0  ;;  %1506 = vmatpush.msra.mxu1 %v1487_v17 }
 0x2d4   :  { %1402 = vmatpush.msra.mxu0 %v1389_v63  ;;  %v1483_v63 = vld [vmem:[#allocation13 + $0x20] sm:$0xff] }
 0x2d5   :  { %v4489_v31 = vpop.f32.mrf.mxu1  ;;  %1507 = vmatpush.msra.mxu1 %v1486_v35 }
 0x2d6   :  { %1403 = vmatpush.msra.mxu0 %v1388_v13  ;;  %5463 = vst [vmem:[#allocation40_spill] sm:$0xff] %v4489_v31  ;;  %v1482_v13 = vld [vmem:[#allocation13 + $0x18] sm:$0xff] }
 0x2d7   :  { %1508 = vmatpush.msra.mxu1 %v1485_v15  ;;  %v652_v15 = vadd.f32 %v4442_v22, %v4306_v11 }
 0x2d8   :  { %3420 = vmatmul.lmr.bf16.gmra.16.mxu3  ;;  %1404 = vmatpush.msra.mxu0 %v1387_v9  ;;  %v1378_v9 = vld [vmem:[#allocation11] sm:$0xff] }
 0x2d9   :  { %1509 = vmatpush.msra.mxu1 %v1484_v39  ;;  %v717_v39 = vadd.f32 %v4425_v48, %v652_v15  ;;  %v658_v48 = vadd.f32 %v4449_v40, %v4324_v7 }
 0x2da   :  { %v4483_v55 = vpop.f32.mrf.mxu0  ;;  %1405 = vmatpush.msra.mxu0 %v1386_v1  ;;  %v1480_v1 = vld [vmem:[#allocation13 + $0x8] sm:$0xff] }
 0x2db   :  { %3270 = vmatmul.lmr.bf16.gmra.16.mxu0  ;;  %1510 = vmatpush.msra.mxu1 %v1483_v63 }
 0x2dc   :  { %1406 = vmatpush.msra.mxu0 %v1385_v3  ;;  %v1479_v3 = vld [vmem:[#allocation13] sm:$0xff] }
 0x2dd   :  { %v1104_v10 = vpop.f32.mrf.mxu1  ;;  %1511 = vmatpush.msra.mxu1 %v1482_v13 }
 0x2de   :  { %1407 = vmatpush.msra.mxu0 %v1384_v57 }
 0x2df   :  { %1512 = vmatpush.msra.mxu1 %v1481_v12 }
 0x2e0   :  { %3421 = vmatmul.lmr.bf16.gmra.16.mxu3  ;;  %1408 = vmatpush.msra.mxu0 %v1383_v19 }
 0x2e1   :  { %1513 = vmatpush.msra.mxu1 %v1480_v1 }
 0x2e2   :  { %v4487_v2 = vpop.f32.mrf.mxu0  ;;  %1409 = vmatpush.msra.mxu0 %v1382_v16 }
 0x2e3   :  { %3271 = vmatmul.lmr.bf16.gmra.16.mxu0  ;;  %1514 = vmatpush.msra.mxu1 %v1479_v3 }
 0x2e4   :  { %1410 = vmatpush.msra.mxu0 %v1381_v47 }
 0x2e5   :  { %v1107_v53 = vpop.f32.mrf.mxu1 }
 0x2e6   :  { %1411 = vmatpush.msra.mxu0 %v1380_v59 }
 0x2e8   :  { %3422 = vmatmul.lmr.bf16.gmra.16.mxu3  ;;  %1412 = vmatpush.msra.mxu0 %v1379_v61  ;;  %v1346_v61 = vmax.f32 %v717_v39, 0.0  ;;  %v723_v39 = vadd.f32 %v4429_v0, %v658_v48  ;;  %v664_v0 = vadd.f32 %v4459_v42, %v4342_v36 }
 0x2ea   :  { %v4491_v51 = vpop.f32.mrf.mxu0  ;;  %1413 = vmatpush.msra.mxu0 %v1378_v9  ;;  %v655_v9 = vadd.f32 %v4447_v24, %v4315_v30 }
 0x2eb   :  { %3272 = vmatmul.lmr.bf16.gmra.16.mxu0 }
 0x2ec   :  { %v720_v3 = vadd.f32 %v4427_v44, %v655_v9  ;;  %v729_v9 = vadd.f32 %v4433_v45, %v664_v0 }
 0x2ed   :  { %v1110_v35 = vpop.f32.mrf.mxu1 }
 0x2ee   :  { %v1347_v22 = vmax.f32 %v720_v3, 0.0 }
 0x2f0   :  { %3423 = vmatmul.lmr.bf16.gmra.16.mxu3 }
 0x2f2   :  { %v4493_v37 = vpop.f32.mrf.mxu0 }
 0x2f3   :  { %3273 = vmatmul.lmr.bf16.gmra.16.mxu0 }
 0x2f5   :  { %v1113_v59 = vpop.f32.mrf.mxu1 }
 0x2f8   :  { %3424 = vmatmul.lmr.bf16.gmra.16.mxu3 }
 0x2fa   :  { %v4495_v17 = vpop.f32.mrf.mxu0 }
 0x2fb   :  { %3274 = vmatmul.lmr.bf16.gmra.16.mxu0 }
 0x2fd   :  { %v1116_v11 = vpop.f32.mrf.mxu1 }
 0x300   :  { %3425 = vmatmul.lmr.bf16.gmra.16.mxu3 }
 0x302   :  { %v4497_v16 = vpop.f32.mrf.mxu0 }
 0x303   :  { %3275 = vmatmul.lmr.bf16.gmra.16.mxu0  ;;  %5464 = vst [vmem:[#allocation41_spill] sm:$0xff] %v4497_v16 }
 0x305   :  { %v1119_v44 = vpop.f32.mrf.mxu1 }
 0x308   :  { %3426 = vmatmul.lmr.bf16.gmra.16.mxu3 }
 0x30b   :  { %3276 = vmatmul.lmr.bf16.gmra.16.mxu0 }
 0x310   :  { %3427 = vmatmul.lmr.bf16.gmra.16.mxu3 }
 0x313   :  { %3277 = vmatmul.lmr.bf16.gmra.16.mxu0 }
 0x318   :  { %3428 = vmatmul.lmr.bf16.gmra.16.mxu3 }
 0x31b   :  { %3278 = vmatmul.lmr.bf16.gmra.16.mxu0 }
 0x320   :  { %3429 = vmatmul.lmr.bf16.gmra.16.mxu3 }
 0x323   :  { %3279 = vmatmul.lmr.bf16.gmra.16.mxu0 }
 0x328   :  { %3430 = vmatmul.lmr.bf16.gmra.16.mxu3 }
 0x32b   :  { %3280 = vmatmul.lmr.bf16.gmra.16.mxu0 }
 0x333   :  { %3281 = vmatmul.lmr.bf16.gmra.16.mxu0  ;;  %v1282_v57 = vpop.f32.mrf.mxu3 }
 0x33b   :  { %3282 = vmatmul.lmr.bf16.gmra.16.mxu0  ;;  %v1285_v19 = vpop.f32.mrf.mxu3 }
 0x343   :  { %3283 = vmatmul.lmr.bf16.gmra.16.mxu0  ;;  %v1288_v47 = vpop.f32.mrf.mxu3 }
 0x348   :  { %v1007_v63 = vpop.f32.mrf.mxu0 }
 0x349   :  { %v1105_v13 = vadd.f32 %v1104_v10, %v1007_v63 }
 0x34b   :  { %v1330_v12 = vadd.f32 %v1282_v57, %v1105_v13  ;;  %1414 = vmatmul.f32.vlgmr.msra.gmra.mxu0 %v1346_v61  ;;  %v1291_v1 = vpop.f32.mrf.mxu3  ;;  %v1348_v57 = vmax.f32 %v723_v39, 0.0  ;;  %v670_v39 = vadd.f32 %v4467_v38, %v4355_v4 }
 0x34d   :  { %v1362_v31 = vmax.f32 %v1330_v12, 0.0 }
 0x34f   :  { %1515 = vmatmul.f32.vlgmr.msra.gmra.mxu1 %v1362_v31  ;;  %v661_v31 = vadd.f32 %v4455_v32, %v4333_v14 }
 0x350   :  { %v1010_v16 = vpop.f32.mrf.mxu0 }
 0x351   :  { %v1108_v58 = vadd.f32 %v1107_v53, %v1010_v16  ;;  %v726_v16 = vadd.f32 %v4431_v34, %v661_v31  ;;  %v667_v34 = vadd.f32 %v4463_v50, %v4351_v41 }
 0x353   :  { %v1331_v15 = vadd.f32 %v1285_v19, %v1108_v58  ;;  %1417 = vmatmul.f32.gmra.mxu0 %v1347_v22  ;;  %v1294_v10 = vpop.f32.mrf.mxu3  ;;  %v1349_v40 = vmax.f32 %v726_v16, 0.0  ;;  %v676_v16 = vadd.f32 %v4475_v28, %v4363_v33 }
 0x355   :  { %v1363_v30 = vmax.f32 %v1331_v15, 0.0 }
 0x357   :  { %1518 = vmatmul.f32.gmra.mxu1 %v1363_v30 }
 0x358   :  { %v1013_v24 = vpop.f32.mrf.mxu0 }
 0x359   :  { %v1111_v63 = vadd.f32 %v1110_v35, %v1013_v24  ;;  %v1122_v35 = vpop.f32.mrf.mxu1 }
 0x35b   :  { %v1332_v61 = vadd.f32 %v1288_v47, %v1111_v63  ;;  %1420 = vmatmul.f32.gmra.mxu0 %v1348_v57  ;;  %v1297_v53 = vpop.f32.mrf.mxu3  ;;  %v1350_v47 = vmax.f32 %v729_v9, 0.0  ;;  %v673_v63 = vadd.f32 %v4471_v56, %v4359_v18 }
 0x35d   :  { %v1364_v7 = vmax.f32 %v1332_v61, 0.0 }
 0x35f   :  { %1521 = vmatmul.f32.gmra.mxu1 %v1364_v7 }
 0x360   :  { %v1016_v58 = vpop.f32.mrf.mxu0 }
 0x361   :  { %v1114_v19 = vadd.f32 %v1113_v59, %v1016_v58  ;;  %v732_v59 = vadd.f32 %v4435_v5, %v667_v34  ;;  %v1125_v36 = vpop.f32.mrf.mxu1  ;;  %v1693_v34 = vld [vmem:[#allocation10 + $0x270] sm:$0xff] }
 0x363   :  { %v1333_v13 = vadd.f32 %v1291_v1, %v1114_v19  ;;  %1423 = vmatmul.f32.gmra.mxu0 %v1349_v40  ;;  %v1300_v14 = vpop.f32.mrf.mxu3  ;;  %v1351_v15 = vmax.f32 %v732_v59, 0.0  ;;  %v741_v40 = vadd.f32 %v4461_v26, %v676_v16  ;;  %v4529_v26 = vld [vmem:[#allocation10 + $0x1f8] sm:$0xff] }
 0x364   :  { %1597 = vmatpush.msra.mxu2 %v4529_v26 }
 0x365   :  { %v1365_v12 = vmax.f32 %v1333_v13, 0.0  ;;  %v1354_v56 = vmax.f32 %v741_v40, 0.0  ;;  %v4582_v40 = vld [vmem:[#allocation10 + $0x1b8] sm:$0xff] }
 0x367   :  { %1524 = vmatmul.f32.gmra.mxu1 %v1365_v12 }
 0x368   :  { %v1019_v32 = vpop.f32.mrf.mxu0 }
 0x369   :  { %v1117_v3 = vadd.f32 %v1116_v11, %v1019_v32  ;;  %v735_v11 = vadd.f32 %v4437_v6, %v670_v39  ;;  %v1128_v50 = vpop.f32.mrf.mxu1 }
 0x36b   :  { %v1334_v22 = vadd.f32 %v1294_v10, %v1117_v3  ;;  %1426 = vmatmul.f32.gmra.mxu0 %v1350_v47  ;;  %v1303_v1 = vpop.f32.mrf.mxu3  ;;  %v1352_v10 = vmax.f32 %v735_v11, 0.0  ;;  %v1694_v47 = vld [vmem:[#allocation10 + $0x278] sm:$0xff] }
 0x36c   :  { %v4531_v3 = vld [vmem:[#allocation10 + $0x2f8] sm:$0xff]  ;;  %1695 = vmatpush.msra.mxu3 %v1694_v47 }
 0x36d   :  { %v1366_v48 = vmax.f32 %v1334_v22, 0.0  ;;  %v4538_v22 = vld [vmem:[#allocation10 + $0x2f0] sm:$0xff]  ;;  %1793 = vmatpush.msra.mxu0 %v4531_v3 }
 0x36e   :  { %1696 = vmatpush.msra.mxu3 %v1693_v34  ;;  %v4612_v34 = vld [vmem:[#allocation10 + $0x198] sm:$0xff] }
 0x36f   :  { %1527 = vmatmul.f32.gmra.mxu1 %v1366_v48  ;;  %1794 = vmatpush.msra.mxu0 %v4538_v22 }
 0x370   :  { %v1022_v42 = vpop.f32.mrf.mxu0 }
 0x371   :  { %v1120_v45 = vadd.f32 %v1119_v44, %v1022_v42  ;;  %v738_v44 = vadd.f32 %v4439_v49, %v673_v63  ;;  %v1131_v6 = vpop.f32.mrf.mxu1  ;;  %v679_v49 = vadd.f32 %v4479_v29, %v4367_v20  ;;  %v682_v20 = vadd.f32 %v4483_v55, %v4371_v23  ;;  %v1692_v42 = vld [vmem:[#allocation10 + $0x268] sm:$0xff]  ;;  %v4549_v55 = vld [vmem:[#allocation10 + $0x1e0] sm:$0xff]  ;;  %v1689_v63 = vld [vmem:[#allocation10 + $0x250] sm:$0xff] }
 0x372   :  { %1697 = vmatpush.msra.mxu3 %v1692_v42 }
 0x373   :  { %v1335_v30 = vadd.f32 %v1297_v53, %v1120_v45  ;;  %1429 = vmatmul.f32.gmra.mxu0 %v1351_v15  ;;  %v1306_v57 = vpop.f32.mrf.mxu3  ;;  %v1353_v38 = vmax.f32 %v738_v44, 0.0  ;;  %v744_v9 = vadd.f32 %v4465_v21, %v679_v49  ;;  %v4536_v21 = vld [vmem:[#allocation10 + $0x1f0] sm:$0xff]  ;;  %v747_v59 = vadd.f32 %v4469_v46, %v682_v20  ;;  %v1691_v15 = vld [vmem:[#allocation10 + $0x260] sm:$0xff] }
 0x374   :  { %1598 = vmatpush.msra.mxu2 %v4536_v21  ;;  %v4551_v45 = vld [vmem:[#allocation10 + $0x2e0] sm:$0xff]  ;;  %1698 = vmatpush.msra.mxu3 %v1691_v15 }
 0x375   :  { %v1367_v24 = vmax.f32 %v1335_v30, 0.0  ;;  %v1356_v30 = vmax.f32 %v747_v59, 0.0  ;;  %v4614_v59 = vld [vmem:[#allocation10 + $0x218] sm:$0xff] }
 0x376   :  { %5466 = vst [vmem:[#allocation30_spill] sm:$0xff] %v4614_v59 }
 0x377   :  { %1530 = vmatmul.f32.gmra.mxu1 %v1367_v24  ;;  %v4555_v24 = vld [vmem:[#allocation10 + $0x1d8] sm:$0xff] }
 0x378   :  { %v1025_v41 = vpop.f32.mrf.mxu0 }
 0x379   :  { %v1123_v5 = vadd.f32 %v1122_v35, %v1025_v41  ;;  %v1134_v35 = vpop.f32.mrf.mxu1  ;;  %v1690_v41 = vld [vmem:[#allocation10 + $0x258] sm:$0xff] }
 0x37a   :  { %1699 = vmatpush.msra.mxu3 %v1690_v41 }
 0x37b   :  { %v1336_v31 = vadd.f32 %v1300_v14, %v1123_v5  ;;  %1432 = vmatmul.f32.gmra.mxu0 %v1352_v10  ;;  %v1309_v58 = vpop.f32.mrf.mxu3  ;;  %v1355_v14 = vmax.f32 %v744_v9, 0.0  ;;  %v685_v10 = vadd.f32 %v4487_v2, %v4375_v25  ;;  %v4572_v25 = vld [vmem:[#allocation10 + $0x2c8] sm:$0xff]  ;;  %v4576_v2 = vld [vmem:[#allocation10 + $0x1c0] sm:$0xff]  ;;  %v4592_v9 = vld [vmem:[#allocation10 + $0x2b0] sm:$0xff] }
 0x37c   :  { %1700 = vmatpush.msra.mxu3 %v1689_v63  ;;  %v4642_v63 = vld [vmem:[#allocation10 + $0x180] sm:$0xff] }
 0x37d   :  { %v1368_v61 = vmax.f32 %v1336_v31, 0.0  ;;  %v4565_v31 = vld [vmem:[#allocation10 + $0x2d0] sm:$0xff]  ;;  %v750_v44 = vadd.f32 %v4473_v60, %v685_v10 }
 0x37f   :  { %1533 = vmatmul.f32.gmra.mxu1 %v1368_v61 }
 0x380   :  { %v1028_v4 = vpop.f32.mrf.mxu0 }
 0x381   :  { %v1126_v53 = vadd.f32 %v1125_v36, %v1028_v4  ;;  %v4543_v36 = vld [vmem:[#allocation10 + $0x1e8] sm:$0xff]  ;;  %v1137_v23 = vpop.f32.mrf.mxu1 }
 0x382   :  { %1599 = vmatpush.msra.mxu2 %v4543_v36  ;;  %v4570_v4 = vld [vmem:[#allocation10 + $0x1c8] sm:$0xff] }
 0x383   :  { %v1337_v7 = vadd.f32 %v1303_v1, %v1126_v53  ;;  %1435 = vmatmul.f32.gmra.mxu0 %v1353_v38  ;;  %v1312_v33 = vpop.f32.mrf.mxu3  ;;  %v4545_v1 = vld [vmem:[#allocation10 + $0x2e8] sm:$0xff]  ;;  %v1687_v53 = vld [vmem:[#allocation10 + $0x240] sm:$0xff] }
 0x384   :  { %1795 = vmatpush.msra.mxu0 %v4545_v1  ;;  %1600 = vmatpush.msra.mxu2 %v4549_v55  ;;  %v1688_v38 = vld [vmem:[#allocation10 + $0x248] sm:$0xff] }
 0x385   :  { %v1369_v19 = vmax.f32 %v1337_v7, 0.0  ;;  %1701 = vmatpush.msra.mxu3 %v1688_v38  ;;  %v1357_v7 = vmax.f32 %v750_v44, 0.0  ;;  %v4644_v44 = vld [vmem:[#allocation10 + $0x200] sm:$0xff] }
 0x386   :  { %1796 = vmatpush.msra.mxu0 %v4551_v45  ;;  %1601 = vmatpush.msra.mxu2 %v4555_v24  ;;  %5469 = vst [vmem:[#allocation45_spill] sm:$0xff] %v4644_v44 }
 0x387   :  { %1536 = vmatmul.f32.gmra.mxu1 %v1369_v19  ;;  %1702 = vmatpush.msra.mxu3 %v1687_v53  ;;  %v1686_v19 = vld [vmem:[#allocation10 + $0x238] sm:$0xff] }
 0x388   :  { %v1031_v18 = vpop.f32.mrf.mxu0 }
 0x389   :  { %v1129_v0 = vadd.f32 %v1128_v50, %v1031_v18  ;;  %v4557_v50 = vld [vmem:[#allocation10 + $0x2d8] sm:$0xff]  ;;  %v1140_v60 = vpop.f32.mrf.mxu1  ;;  %1703 = vmatpush.msra.mxu3 %v1686_v19 }
 0x38a   :  { %1797 = vmatpush.msra.mxu0 %v4557_v50  ;;  %v4584_v18 = vld [vmem:[#allocation10 + $0x2b8] sm:$0xff] }
 0x38b   :  { %v1338_v13 = vadd.f32 %v1306_v57, %v1129_v0  ;;  %1438 = vmatmul.f32.gmra.mxu0 %v1354_v56  ;;  %v1315_v39 = vpop.f32.mrf.mxu3  ;;  %v4563_v57 = vld [vmem:[#allocation10 + $0x1d0] sm:$0xff]  ;;  %v688_v0 = vadd.f32 %v4491_v51, %v4379_v54  ;;  %v4599_v54 = vld [vmem:[#allocation10 + $0x2a8] sm:$0xff]  ;;  %v4603_v51 = vld [vmem:[#allocation10 + $0x1a0] sm:$0xff] }
 0x38c   :  { %1602 = vmatpush.msra.mxu2 %v4563_v57  ;;  %1798 = vmatpush.msra.mxu0 %v4565_v31 }
 0x38d   :  { %v1370_v12 = vmax.f32 %v1338_v13, 0.0  ;;  %v4590_v13 = vld [vmem:[#allocation10 + $0x1b0] sm:$0xff] }
 0x38e   :  { %1603 = vmatpush.msra.mxu2 %v4570_v4  ;;  %1799 = vmatpush.msra.mxu0 %v4572_v25 }
 0x38f   :  { %1539 = vmatmul.f32.gmra.mxu1 %v1370_v12  ;;  %v753_v12 = vadd.f32 %v4477_v62, %v688_v0  ;;  %v4609_v62 = vld [vmem:[#allocation10 + $0x2a0] sm:$0xff] }
 0x390   :  { %v1034_v28 = vpop.f32.mrf.mxu0  ;;  %1604 = vmatpush.msra.mxu2 %v4576_v2 }
 0x391   :  { %v1132_v32 = vadd.f32 %v1131_v6, %v1034_v28  ;;  %v4578_v6 = vld [vmem:[#allocation10 + $0x2c0] sm:$0xff]  ;;  %v4597_v28 = vld [vmem:[#allocation10 + $0x1a8] sm:$0xff]  ;;  %v1358_v20 = vmax.f32 %v753_v12, 0.0  ;;  %v1143_v42 = vpop.f32.mrf.mxu1 }
 0x392   :  { %1800 = vmatpush.msra.mxu0 %v4578_v6  ;;  %1605 = vmatpush.msra.mxu2 %v4582_v40  ;;  %v5470_v12 = vld [vmem:[#allocation39_spill] sm:$0xff] }
 0x393   :  { %v1339_v29 = vadd.f32 %v1309_v58, %v1132_v32  ;;  %1441 = vmatmul.f32.gmra.mxu0 %v1355_v14  ;;  %v1318_v56 = vpop.f32.mrf.mxu3  ;;  %v1684_v14 = vld [vmem:[#allocation10 + $0x228] sm:$0xff]  ;;  %v4605_v32 = vld [vmem:[#allocation10 + $0x220] sm:$0xff] }
 0x394   :  { %1801 = vmatpush.msra.mxu0 %v4584_v18  ;;  %1606 = vmatpush.msra.mxu2 %v4590_v13  ;;  %5465 = vst [vmem:[#allocation42_spill] sm:$0xff] %v4605_v32 }
 0x395   :  { %v1371_v48 = vmax.f32 %v1339_v29, 0.0 }
 0x396   :  { %1802 = vmatpush.msra.mxu0 %v4592_v9  ;;  %1607 = vmatpush.msra.mxu2 %v4597_v28 }
 0x397   :  { %1542 = vmatmul.f32.gmra.mxu1 %v1371_v48  ;;  %v4616_v48 = vld [vmem:[#allocation10 + $0x298] sm:$0xff] }
 0x398   :  { %v1037_v46 = vpop.f32.mrf.mxu0  ;;  %1803 = vmatpush.msra.mxu0 %v4599_v54  ;;  %1608 = vmatpush.msra.mxu2 %v4603_v51 }
 0x399   :  { %v1135_v11 = vadd.f32 %v1134_v35, %v1037_v46  ;;  %v1685_v35 = vld [vmem:[#allocation10 + $0x230] sm:$0xff] }
 0x39a   :  { %1704 = vmatpush.msra.mxu3 %v1685_v35  ;;  %1804 = vmatpush.msra.mxu0 %v4609_v62  ;;  %v4623_v46 = vld [vmem:[#allocation10 + $0x190] sm:$0xff] }
 0x39b   :  { %v1340_v5 = vadd.f32 %v1312_v33, %v1135_v11  ;;  %1444 = vmatmul.f32.gmra.mxu0 %v1356_v30  ;;  %1609 = vmatpush.msra.mxu2 %v4612_v34  ;;  %v1321_v30 = vpop.f32.mrf.mxu3  ;;  %v4629_v11 = vld [vmem:[#allocation10 + $0x290] sm:$0xff] }
 0x39c   :  { %1705 = vmatpush.msra.mxu3 %v1684_v14  ;;  %1805 = vmatpush.msra.mxu0 %v4616_v48 }
 0x39d   :  { %v1372_v61 = vmax.f32 %v1340_v5, 0.0  ;;  %1610 = vmatpush.msra.mxu2 %v4623_v46  ;;  %v4637_v5 = vld [vmem:[#allocation10 + $0x288] sm:$0xff] }
 0x39e   :  { %1706 = vmatpush.msra.mxu3 %v4605_v32  ;;  %1806 = vmatpush.msra.mxu0 %v4629_v11 }
 0x39f   :  { %1545 = vmatmul.f32.gmra.mxu1 %v1372_v61 }
 0x3a0   :  { %v1040_v16 = vpop.f32.mrf.mxu0  ;;  %1707 = vmatpush.msra.mxu3 %v4614_v59  ;;  %1807 = vmatpush.msra.mxu0 %v4637_v5 }
 0x3a1   :  { %v1138_v58 = vadd.f32 %v1137_v23, %v1040_v16  ;;  %v691_v23 = vadd.f32 %v4493_v37, %v4384_v27  ;;  %v4633_v27 = vld [vmem:[#allocation10 + $0x188] sm:$0xff]  ;;  %v694_v16 = vadd.f32 %v4495_v17, %v4394_v52 }
 0x3a2   :  { %v4635_v37 = vld [vmem:[#allocation10 + $0x208] sm:$0xff]  ;;  %1611 = vmatpush.msra.mxu2 %v4633_v27 }
 0x3a3   :  { %v1341_v49 = vadd.f32 %v1315_v39, %v1138_v58  ;;  %1447 = vmatmul.f32.gmra.mxu0 %v1357_v7  ;;  %v4625_v39 = vld [vmem:[#allocation10 + $0x210] sm:$0xff]  ;;  %v756_v41 = vadd.f32 %v4481_v43, %v691_v23  ;;  %5468 = vst [vmem:[#allocation44_spill] sm:$0xff] %v4635_v37  ;;  %v4646_v43 = vld [vmem:[#allocation10 + $0x280] sm:$0xff]  ;;  %v1146_v7 = vpop.f32.mrf.mxu1  ;;  %v759_v58 = vadd.f32 %v4485_v8, %v694_v16 }
 0x3a4   :  { %5467 = vst [vmem:[#allocation43_spill] sm:$0xff] %v4625_v39  ;;  %1708 = vmatpush.msra.mxu3 %v4625_v39  ;;  %1612 = vmatpush.msra.mxu2 %v4642_v63 }
 0x3a5   :  { %v1373_v33 = vmax.f32 %v1341_v49, 0.0  ;;  %v1359_v38 = vmax.f32 %v756_v41, 0.0  ;;  %1808 = vmatpush.msra.mxu0 %v4646_v43  ;;  %v1360_v49 = vmax.f32 %v759_v58, 0.0 }
 0x3a6   :  { %1709 = vmatpush.msra.mxu3 %v4635_v37 }
 0x3a7   :  { %1548 = vmatmul.f32.gmra.mxu1 %v1373_v33  ;;  %v5471_v33 = vld [vmem:[#allocation41_spill] sm:$0xff] }
 0x3a8   :  { %v1043_v47 = vpop.f32.mrf.mxu0  ;;  %1710 = vmatpush.msra.mxu3 %v4644_v44  ;;  %v697_v14 = vadd.f32 %v5471_v33, %v5470_v12 }
 0x3a9   :  { %v1141_v29 = vadd.f32 %v1140_v60, %v1043_v47 }
 0x3ab   :  { %v1342_v15 = vadd.f32 %v1318_v56, %v1141_v29  ;;  %1450 = vmatmul.f32.gmra.mxu0 %v1358_v20  ;;  %v1324_v56 = vpop.f32.mrf.mxu3  ;;  %v5472_v20 = vld [vmem:[#allocation40_spill] sm:$0xff]  ;;  %v1149_v52 = vpop.f32.mrf.mxu1 }
 0x3ac   :  { %v762_v29 = vadd.f32 %v5472_v20, %v697_v14 }
 0x3ad   :  { %v1374_v10 = vmax.f32 %v1342_v15, 0.0 }
 0x3ae   :  { %v1361_v15 = vmax.f32 %v762_v29, 0.0 }
 0x3af   :  { %1551 = vmatmul.f32.gmra.mxu1 %v1374_v10 }
 0x3b0   :  { %v1046_v61 = vpop.f32.mrf.mxu0 }
 0x3b1   :  { %v1144_v53 = vadd.f32 %v1143_v42, %v1046_v61  ;;  %v4663_v61 = vld [vmem:[%s5382_s7] ss:$0 sm:$0xff] }
 0x3b3   :  { %v1343_v60 = vadd.f32 %v1321_v30, %v1144_v53  ;;  %1453 = vmatmul.f32.gmra.mxu0 %v1359_v38  ;;  %v1327_v23 = vpop.f32.mrf.mxu3 }
 0x3b5   :  { %v1375_v19 = vmax.f32 %v1343_v60, 0.0 }
 0x3b7   :  { %1554 = vmatmul.f32.gmra.mxu1 %v1375_v19 }
 0x3b8   :  { %v1049_v0 = vpop.f32.mrf.mxu0 }
 0x3b9   :  { %v1147_v35 = vadd.f32 %v1146_v7, %v1049_v0 }
 0x3bb   :  { %v1344_v47 = vadd.f32 %v1324_v56, %v1147_v35  ;;  %1456 = vmatmul.f32.gmra.mxu0 %v1360_v49 }
 0x3bd   :  { %v1376_v42 = vmax.f32 %v1344_v47, 0.0 }
 0x3bf   :  { %1557 = vmatmul.f32.gmra.mxu1 %v1376_v42 }
 0x3c0   :  { %v1052_v17 = vpop.f32.mrf.mxu0 }
 0x3c1   :  { %v1150_v8 = vadd.f32 %v1149_v52, %v1052_v17 }
 0x3c3   :  { %v1345_v30 = vadd.f32 %v1327_v23, %v1150_v8  ;;  %1459 = vmatmul.f32.gmra.mxu0 %v1361_v15 }
 0x3c5   :  { %v1377_v41 = vmax.f32 %v1345_v30, 0.0 }
 0x3c7   :  { %1560 = vmatmul.f32.gmra.mxu1 %v1377_v41 }
 0x3c8   :  { %v4658_v10 = vpop.f32.mrf.mxu0 }
 0x3cc   :  { %v1516_v38 = vpop.f32.mrf.mxu1 }
 0x3cd   :  { %v1517_v53 = vadd.f32 %v4663_v61, %v1516_v38 }
 0x3cf   :  { %v1564_v16 = vmax.f32 %v1517_v53, 0.0 }
 0x3d0   :  { %v4666_v60 = vpop.f32.mrf.mxu0 }
 0x3d1   :  { %1613 = vmatmul.f32.vlgmr.msra.gmra.mxu2 %v1564_v16  ;;  %1711 = vmatmul.f32.vlgmr.msra.gmra.mxu3 %v1564_v16 }
 0x3d2   :  { %1809 = vmatmul.f32.vlgmr.msra.gmra.mxu0 %v1564_v16 }
 0x3d3   :  { %2181 = vmatpush.msra.mxu0 %v4529_v26 }
 0x3d4   :  { %v1519_v7 = vpop.f32.mrf.mxu1 }
 0x3d5   :  { %v1520_v58 = vadd.f32 %v4663_v61, %v1519_v7  ;;  %2182 = vmatpush.msra.mxu0 %v4536_v21 }
 0x3d7   :  { %v1565_v19 = vmax.f32 %v1520_v58, 0.0  ;;  %2183 = vmatpush.msra.mxu0 %v4543_v36 }
 0x3d8   :  { %v4672_v56 = vpop.f32.mrf.mxu0 }
 0x3d9   :  { %1616 = vmatmul.f32.gmra.mxu2 %v1565_v19  ;;  %1714 = vmatmul.f32.gmra.mxu3 %v1565_v19 }
 0x3da   :  { %1812 = vmatmul.f32.gmra.mxu0 %v1565_v19 }
 0x3db   :  { %2184 = vmatpush.msra.mxu0 %v4549_v55 }
 0x3dc   :  { %v1522_v0 = vpop.f32.mrf.mxu1 }
 0x3dd   :  { %v1523_v49 = vadd.f32 %v4663_v61, %v1522_v0  ;;  %2185 = vmatpush.msra.mxu0 %v4555_v24 }
 0x3df   :  { %v1566_v26 = vmax.f32 %v1523_v49, 0.0  ;;  %2186 = vmatpush.msra.mxu0 %v4563_v57 }
 0x3e0   :  { %v4678_v35 = vpop.f32.mrf.mxu0 }
 0x3e1   :  { %1619 = vmatmul.f32.gmra.mxu2 %v1566_v26  ;;  %1717 = vmatmul.f32.gmra.mxu3 %v1566_v26 }
 0x3e2   :  { %1815 = vmatmul.f32.gmra.mxu0 %v1566_v26 }
 0x3e3   :  { %2187 = vmatpush.msra.mxu0 %v4570_v4 }
 0x3e4   :  { %v1525_v21 = vpop.f32.mrf.mxu1 }
 0x3e5   :  { %v1526_v36 = vadd.f32 %v4663_v61, %v1525_v21  ;;  %2188 = vmatpush.msra.mxu0 %v4576_v2 }
 0x3e7   :  { %v1567_v55 = vmax.f32 %v1526_v36, 0.0  ;;  %2189 = vmatpush.msra.mxu0 %v4582_v40 }
 0x3e8   :  { %v4684_v12 = vpop.f32.mrf.mxu0 }
 0x3e9   :  { %1622 = vmatmul.f32.gmra.mxu2 %v1567_v55  ;;  %1720 = vmatmul.f32.gmra.mxu3 %v1567_v55 }
 0x3ea   :  { %1818 = vmatmul.f32.gmra.mxu0 %v1567_v55 }
 0x3eb   :  { %2190 = vmatpush.msra.mxu0 %v4590_v13 }
 0x3ec   :  { %v1528_v24 = vpop.f32.mrf.mxu1 }
 0x3ed   :  { %v1529_v57 = vadd.f32 %v4663_v61, %v1528_v24  ;;  %2191 = vmatpush.msra.mxu0 %v4597_v28 }
 0x3ef   :  { %v1568_v4 = vmax.f32 %v1529_v57, 0.0  ;;  %2192 = vmatpush.msra.mxu0 %v4603_v51 }
 0x3f0   :  { %v4690_v33 = vpop.f32.mrf.mxu0 }
 0x3f1   :  { %1625 = vmatmul.f32.gmra.mxu2 %v1568_v4  ;;  %1723 = vmatmul.f32.gmra.mxu3 %v1568_v4 }
 0x3f2   :  { %1821 = vmatmul.f32.gmra.mxu0 %v1568_v4 }
 0x3f3   :  { %2193 = vmatpush.msra.mxu0 %v4612_v34 }
 0x3f4   :  { %v1531_v2 = vpop.f32.mrf.mxu1 }
 0x3f5   :  { %v1532_v40 = vadd.f32 %v4663_v61, %v1531_v2  ;;  %2194 = vmatpush.msra.mxu0 %v4623_v46 }
 0x3f7   :  { %v1569_v13 = vmax.f32 %v1532_v40, 0.0  ;;  %2195 = vmatpush.msra.mxu0 %v4633_v27 }
 0x3f8   :  { %v4696_v14 = vpop.f32.mrf.mxu0 }
 0x3f9   :  { %1628 = vmatmul.f32.gmra.mxu2 %v1569_v13  ;;  %1726 = vmatmul.f32.gmra.mxu3 %v1569_v13 }
 0x3fa   :  { %1824 = vmatmul.f32.gmra.mxu0 %v1569_v13 }
 0x3fb   :  { %2196 = vmatpush.msra.mxu0 %v4642_v63 }
 0x3fc   :  { %v1534_v28 = vpop.f32.mrf.mxu1 }
 0x3fd   :  { %v1535_v51 = vadd.f32 %v4663_v61, %v1534_v28 }
 0x3ff   :  { %v1570_v47 = vmax.f32 %v1535_v51, 0.0 }
 0x400   :  { %v4700_v34 = vpop.f32.mrf.mxu0 }
 0x401   :  { %1631 = vmatmul.f32.gmra.mxu2 %v1570_v47  ;;  %1729 = vmatmul.f32.gmra.mxu3 %v1570_v47 }
 0x402   :  { %1827 = vmatmul.f32.gmra.mxu0 %v1570_v47 }
 0x404   :  { %v1537_v46 = vpop.f32.mrf.mxu1 }
 0x405   :  { %v1538_v20 = vadd.f32 %v4663_v61, %v1537_v46 }
 0x407   :  { %v1571_v27 = vmax.f32 %v1538_v20, 0.0  ;;  %v4730_v20 = vld [vmem:[%s5380_s5] ss:$0 sm:$0xff] }
 0x408   :  { %v4703_v29 = vpop.f32.mrf.mxu0 }
 0x409   :  { %1634 = vmatmul.f32.gmra.mxu2 %v1571_v27  ;;  %1732 = vmatmul.f32.gmra.mxu3 %v1571_v27 }
 0x40a   :  { %1830 = vmatmul.f32.gmra.mxu0 %v1571_v27  ;;  %v1416_v27 = vadd.f32 %v4730_v20, %v4658_v10 }
 0x40c   :  { %v1540_v42 = vpop.f32.mrf.mxu1 }
 0x40d   :  { %v1541_v63 = vadd.f32 %v4663_v61, %v1540_v42 }
 0x40f   :  { %v1572_v52 = vmax.f32 %v1541_v63, 0.0  ;;  %v4736_v63 = vmax.f32 %v1416_v27, 0.0 }
 0x410   :  { %v4706_v17 = vpop.f32.mrf.mxu0 }
 0x411   :  { %1637 = vmatmul.f32.gmra.mxu2 %v1572_v52  ;;  %1735 = vmatmul.f32.gmra.mxu3 %v1572_v52 }
 0x412   :  { %1833 = vmatmul.f32.gmra.mxu0 %v1572_v52 }
 0x414   :  { %v1543_v23 = vpop.f32.mrf.mxu1 }
 0x415   :  { %v1544_v15 = vadd.f32 %v4663_v61, %v1543_v23 }
 0x417   :  { %v1573_v8 = vmax.f32 %v1544_v15, 0.0 }
 0x418   :  { %v4709_v30 = vpop.f32.mrf.mxu0 }
 0x419   :  { %1640 = vmatmul.f32.gmra.mxu2 %v1573_v8  ;;  %1738 = vmatmul.f32.gmra.mxu3 %v1573_v8 }
 0x41a   :  { %1836 = vmatmul.f32.gmra.mxu0 %v1573_v8 }
 0x41c   :  { %v1546_v41 = vpop.f32.mrf.mxu1 }
 0x41d   :  { %v1547_v38 = vadd.f32 %v4663_v61, %v1546_v41 }
 0x41f   :  { %v1574_v53 = vmax.f32 %v1547_v38, 0.0 }
 0x420   :  { %v4712_v16 = vpop.f32.mrf.mxu0 }
 0x421   :  { %1643 = vmatmul.f32.gmra.mxu2 %v1574_v53  ;;  %1741 = vmatmul.f32.gmra.mxu3 %v1574_v53 }
 0x422   :  { %1839 = vmatmul.f32.gmra.mxu0 %v1574_v53 }
 0x424   :  { %v1549_v7 = vpop.f32.mrf.mxu1 }
 0x425   :  { %v1550_v58 = vadd.f32 %v4663_v61, %v1549_v7  ;;  %v1437_v7 = vadd.f32 %v4730_v20, %v4700_v34 }
 0x427   :  { %v1575_v19 = vmax.f32 %v1550_v58, 0.0 }
 0x428   :  { %v4715_v0 = vpop.f32.mrf.mxu0 }
 0x429   :  { %1646 = vmatmul.f32.gmra.mxu2 %v1575_v19  ;;  %1744 = vmatmul.f32.gmra.mxu3 %v1575_v19 }
 0x42a   :  { %1842 = vmatmul.f32.gmra.mxu0 %v1575_v19 }
 0x42c   :  { %v1552_v49 = vpop.f32.mrf.mxu1 }
 0x42d   :  { %v1553_v26 = vadd.f32 %v4663_v61, %v1552_v49 }
 0x42f   :  { %v1576_v21 = vmax.f32 %v1553_v26, 0.0  ;;  %v1440_v26 = vadd.f32 %v4730_v20, %v4703_v29  ;;  %v1446_v29 = vadd.f32 %v4730_v20, %v4709_v30  ;;  %v1452_v30 = vadd.f32 %v4730_v20, %v4715_v0 }
 0x430   :  { %v4718_v36 = vpop.f32.mrf.mxu0 }
 0x431   :  { %1649 = vmatmul.f32.gmra.mxu2 %v1576_v21  ;;  %1747 = vmatmul.f32.gmra.mxu3 %v1576_v21  ;;  %v4840_v34 = vmax.f32 %v1440_v26, 0.0 }
 0x432   :  { %1845 = vmatmul.f32.gmra.mxu0 %v1576_v21 }
 0x433   :  { %5480 = vst [vmem:[#allocation38_spill] sm:$0xff] %v4840_v34 }
 0x434   :  { %v1555_v55 = vpop.f32.mrf.mxu1 }
 0x435   :  { %v1556_v24 = vadd.f32 %v4663_v61, %v1555_v55 }
 0x437   :  { %v1577_v57 = vmax.f32 %v1556_v24, 0.0 }
 0x438   :  { %v4721_v2 = vpop.f32.mrf.mxu0 }
 0x439   :  { %1652 = vmatmul.f32.gmra.mxu2 %v1577_v57  ;;  %1750 = vmatmul.f32.gmra.mxu3 %v1577_v57  ;;  %v1458_v0 = vadd.f32 %v4730_v20, %v4721_v2 }
 0x43a   :  { %1848 = vmatmul.f32.gmra.mxu0 %v1577_v57  ;;  %v1443_v57 = vadd.f32 %v4730_v20, %v4706_v17  ;;  %v1449_v17 = vadd.f32 %v4730_v20, %v4712_v16  ;;  %v1455_v16 = vadd.f32 %v4730_v20, %v4718_v36 }
 0x43c   :  { %v1558_v4 = vpop.f32.mrf.mxu1 }
 0x43d   :  { %v1559_v40 = vadd.f32 %v4663_v61, %v1558_v4 }
 0x43f   :  { %v1578_v13 = vmax.f32 %v1559_v40, 0.0 }
 0x440   :  { %v4725_v47 = vpop.f32.mrf.mxu0 }
 0x441   :  { %1655 = vmatmul.f32.gmra.mxu2 %v1578_v13  ;;  %1753 = vmatmul.f32.gmra.mxu3 %v1578_v13  ;;  %v1461_v36 = vadd.f32 %v4730_v20, %v4725_v47  ;;  %v4923_v47 = vld [vmem:[#allocation2 + $0x8] sm:$0xff] }
 0x442   :  { %1851 = vmatmul.f32.gmra.mxu0 %v1578_v13 }
 0x444   :  { %v1561_v28 = vpop.f32.mrf.mxu1 }
 0x445   :  { %v1562_v51 = vadd.f32 %v4663_v61, %v1561_v28  ;;  %v1419_v61 = vadd.f32 %v4730_v20, %v4666_v60  ;;  %v4849_v28 = vmax.f32 %v1443_v57, 0.0  ;;  %v4864_v57 = vmax.f32 %v1452_v30, 0.0 }
 0x446   :  { %v4874_v30 = vmax.f32 %v1458_v0, 0.0 }
 0x447   :  { %v1579_v46 = vmax.f32 %v1562_v51, 0.0  ;;  %v4750_v10 = vmax.f32 %v1419_v61, 0.0  ;;  %5481 = vst [vmem:[#allocation39_spill] sm:$0xff] %v4849_v28  ;;  %v4854_v61 = vmax.f32 %v1446_v29, 0.0 }
 0x448   :  { %5484 = vst [vmem:[#allocation46_spill] sm:$0xff] %v4864_v57 }
 0x449   :  { %1658 = vmatmul.f32.gmra.mxu2 %v1579_v46  ;;  %1756 = vmatmul.f32.gmra.mxu3 %v1579_v46  ;;  %5473 = vst [vmem:[#allocation31_spill] sm:$0xff] %v4750_v10 }
 0x44a   :  { %1854 = vmatmul.f32.gmra.mxu0 %v1579_v46  ;;  %5482 = vst [vmem:[#allocation41_spill] sm:$0xff] %v4854_v61 }
 0x44b   :  { %5486 = vst [vmem:[#allocation48_spill] sm:$0xff] %v4874_v30 }
 0x44f   :  { %v4734_v42 = vpop.f32.mrf.mxu0 }
 0x452   :  { %2197 = vmatmul.f32.vlgmr.msra.gmra.mxu0 %v4736_v63 }
 0x453   :  { %2569 = vmatpush.msra.mxu0 %v4531_v3  ;;  %v1422_v3 = vadd.f32 %v4730_v20, %v4672_v56 }
 0x454   :  { %v4742_v52 = vpop.f32.mrf.mxu2  ;;  %v4744_v23 = vpop.f32.mrf.mxu3 }
 0x455   :  { %2570 = vmatpush.msra.mxu0 %v4538_v22 }
 0x457   :  { %v4747_v15 = vpop.f32.mrf.mxu0  ;;  %2571 = vmatpush.msra.mxu0 %v4545_v1  ;;  %v4765_v1 = vmax.f32 %v1422_v3, 0.0 }
 0x459   :  { %2572 = vmatpush.msra.mxu0 %v4551_v45  ;;  %5474 = vst [vmem:[#allocation32_spill] sm:$0xff] %v4765_v1  ;;  %v1425_v45 = vadd.f32 %v4730_v20, %v4678_v35 }
 0x45a   :  { %2200 = vmatmul.f32.gmra.mxu0 %v4750_v10 }
 0x45b   :  { %2573 = vmatpush.msra.mxu0 %v4557_v50 }
 0x45c   :  { %v4757_v60 = vpop.f32.mrf.mxu2  ;;  %v4759_v8 = vpop.f32.mrf.mxu3 }
 0x45d   :  { %2574 = vmatpush.msra.mxu0 %v4565_v31 }
 0x45f   :  { %v4762_v22 = vpop.f32.mrf.mxu0  ;;  %2575 = vmatpush.msra.mxu0 %v4572_v25  ;;  %v4780_v25 = vmax.f32 %v1425_v45, 0.0 }
 0x461   :  { %2576 = vmatpush.msra.mxu0 %v4578_v6  ;;  %5475 = vst [vmem:[#allocation33_spill] sm:$0xff] %v4780_v25  ;;  %v1428_v6 = vadd.f32 %v4730_v20, %v4684_v12 }
 0x462   :  { %2203 = vmatmul.f32.gmra.mxu0 %v4765_v1 }
 0x463   :  { %2577 = vmatpush.msra.mxu0 %v4584_v18 }
 0x464   :  { %v4772_v50 = vpop.f32.mrf.mxu2  ;;  %v4774_v56 = vpop.f32.mrf.mxu3 }
 0x465   :  { %2578 = vmatpush.msra.mxu0 %v4592_v9 }
 0x467   :  { %v4777_v31 = vpop.f32.mrf.mxu0  ;;  %2579 = vmatpush.msra.mxu0 %v4599_v54  ;;  %v4795_v54 = vmax.f32 %v1428_v6, 0.0 }
 0x469   :  { %2580 = vmatpush.msra.mxu0 %v4609_v62  ;;  %5476 = vst [vmem:[#allocation34_spill] sm:$0xff] %v4795_v54  ;;  %v1431_v62 = vadd.f32 %v4730_v20, %v4690_v33 }
 0x46a   :  { %2206 = vmatmul.f32.gmra.mxu0 %v4780_v25 }
 0x46b   :  { %2581 = vmatpush.msra.mxu0 %v4616_v48 }
 0x46c   :  { %v4787_v18 = vpop.f32.mrf.mxu2  ;;  %v4789_v35 = vpop.f32.mrf.mxu3 }
 0x46d   :  { %2582 = vmatpush.msra.mxu0 %v4629_v11  ;;  %v4807_v11 = vmax.f32 %v1431_v62, 0.0  ;;  %v4859_v62 = vmax.f32 %v1449_v17, 0.0  ;;  %v4869_v17 = vmax.f32 %v1455_v16, 0.0  ;;  %v4879_v16 = vmax.f32 %v1461_v36, 0.0  ;;  %v5038_v36 = vld [vmem:[#allocation2 + $0x100] sm:$0xff] }
 0x46f   :  { %v4792_v9 = vpop.f32.mrf.mxu0  ;;  %2583 = vmatpush.msra.mxu0 %v4637_v5  ;;  %5477 = vst [vmem:[#allocation35_spill] sm:$0xff] %v4807_v11  ;;  %v1434_v5 = vadd.f32 %v4730_v20, %v4696_v14  ;;  %v4829_v14 = vmax.f32 %v1437_v7, 0.0  ;;  %v4930_v20 = vld [vmem:[#allocation2 + $0x28] sm:$0xff] }
 0x470   :  { %5483 = vst [vmem:[#allocation40_spill] sm:$0xff] %v4859_v62 }
 0x471   :  { %2584 = vmatpush.msra.mxu0 %v4646_v43  ;;  %v4818_v33 = vmax.f32 %v1434_v5, 0.0  ;;  %5479 = vst [vmem:[#allocation37_spill] sm:$0xff] %v4829_v14 }
 0x472   :  { %2209 = vmatmul.f32.gmra.mxu0 %v4795_v54  ;;  %5485 = vst [vmem:[#allocation47_spill] sm:$0xff] %v4869_v17 }
 0x473   :  { %5478 = vst [vmem:[#allocation36_spill] sm:$0xff] %v4818_v33 }
 0x474   :  { %v4801_v48 = vpop.f32.mrf.mxu2  ;;  %v4803_v12 = vpop.f32.mrf.mxu3  ;;  %5489 = vst [vmem:[#allocation51_spill] sm:$0xff] %v4930_v20 }
 0x477   :  { %v4805_v41 = vpop.f32.mrf.mxu0 }
 0x47a   :  { %2212 = vmatmul.f32.gmra.mxu0 %v4807_v11 }
 0x47c   :  { %v4812_v38 = vpop.f32.mrf.mxu2  ;;  %v4814_v43 = vpop.f32.mrf.mxu3 }
 0x47f   :  { %v4816_v53 = vpop.f32.mrf.mxu0 }
 0x482   :  { %2215 = vmatmul.f32.gmra.mxu0 %v4818_v33 }
 0x484   :  { %v4823_v58 = vpop.f32.mrf.mxu2  ;;  %v4825_v19 = vpop.f32.mrf.mxu3 }
 0x487   :  { %v4827_v49 = vpop.f32.mrf.mxu0 }
 0x48a   :  { %2218 = vmatmul.f32.gmra.mxu0 %v4829_v14 }
 0x48c   :  { %v4834_v21 = vpop.f32.mrf.mxu2  ;;  %v4836_v55 = vpop.f32.mrf.mxu3 }
 0x48f   :  { %v4838_v24 = vpop.f32.mrf.mxu0 }
 0x492   :  { %2221 = vmatmul.f32.gmra.mxu0 %v4840_v34 }
 0x494   :  { %v4845_v4 = vpop.f32.mrf.mxu2  ;;  %v4847_v40 = vpop.f32.mrf.mxu3 }
 0x497   :  { %v1837_v13 = vpop.f32.mrf.mxu0 }
 0x49a   :  { %2224 = vmatmul.f32.gmra.mxu0 %v4849_v28 }
 0x49c   :  { %v1641_v51 = vpop.f32.mrf.mxu2  ;;  %v1739_v46 = vpop.f32.mrf.mxu3 }
 0x49f   :  { %v1840_v27 = vpop.f32.mrf.mxu0 }
 0x4a2   :  { %2227 = vmatmul.f32.gmra.mxu0 %v4854_v61 }
 0x4a4   :  { %v1644_v3 = vpop.f32.mrf.mxu2  ;;  %v1742_v45 = vpop.f32.mrf.mxu3 }
 0x4a7   :  { %v1843_v6 = vpop.f32.mrf.mxu0 }
 0x4aa   :  { %2230 = vmatmul.f32.gmra.mxu0 %v4859_v62 }
 0x4ac   :  { %v1647_v5 = vpop.f32.mrf.mxu2  ;;  %v1745_v7 = vpop.f32.mrf.mxu3 }
 0x4af   :  { %v1846_v26 = vpop.f32.mrf.mxu0 }
 0x4b2   :  { %2233 = vmatmul.f32.gmra.mxu0 %v4864_v57 }
 0x4b4   :  { %v1650_v29 = vpop.f32.mrf.mxu2  ;;  %v1748_v44 = vpop.f32.mrf.mxu3 }
 0x4b7   :  { %v1849_v37 = vpop.f32.mrf.mxu0 }
 0x4ba   :  { %2236 = vmatmul.f32.gmra.mxu0 %v4869_v17 }
 0x4bc   :  { %v1653_v39 = vpop.f32.mrf.mxu2  ;;  %v1751_v59 = vpop.f32.mrf.mxu3 }
 0x4bf   :  { %v1852_v32 = vpop.f32.mrf.mxu0 }
 0x4c2   :  { %2239 = vmatmul.f32.gmra.mxu0 %v4874_v30 }
 0x4c4   :  { %v1656_v57 = vpop.f32.mrf.mxu2  ;;  %v1754_v62 = vpop.f32.mrf.mxu3 }
 0x4c7   :  { %v1855_v61 = vpop.f32.mrf.mxu0 }
 0x4c8   :  { %2100 = vmatpush.msra.mxu3 %v1855_v61  ;;  %v5021_v61 = vld [vmem:[#allocation2 + $0xc8] sm:$0xff] }
 0x4ca   :  { %2101 = vmatpush.msra.mxu3 %v1852_v32  ;;  %2242 = vmatmul.f32.gmra.mxu0 %v4879_v16 }
 0x4cc   :  { %2102 = vmatpush.msra.mxu3 %v1849_v37  ;;  %v1659_v2 = vpop.f32.mrf.mxu2  ;;  %v1757_v17 = vpop.f32.mrf.mxu3 }
 0x4cd   :  { %1970 = vmatpush.msra.mxu1 %v1659_v2  ;;  %2035 = vmatpush.msra.mxu2 %v1757_v17  ;;  %v2274_v17 = vld [vmem:[#allocation10 + $0x260] sm:$0xff]  ;;  %v2273_v2 = vld [vmem:[#allocation10 + $0x258] sm:$0xff] }
 0x4ce   :  { %2103 = vmatpush.msra.mxu3 %v1846_v26  ;;  %v5031_v26 = vld [vmem:[#allocation2 + $0xd8] sm:$0xff] }
 0x4cf   :  { %v4882_v0 = vpop.f32.mrf.mxu0  ;;  %1971 = vmatpush.msra.mxu1 %v1656_v57  ;;  %2036 = vmatpush.msra.mxu2 %v1754_v62  ;;  %v5033_v57 = vld [vmem:[#allocation2 + $0xe0] sm:$0xff] }
 0x4d0   :  { %2104 = vmatpush.msra.mxu3 %v1843_v6  ;;  %v2277_v6 = vld [vmem:[#allocation10 + $0x278] sm:$0xff] }
 0x4d1   :  { %1972 = vmatpush.msra.mxu1 %v1653_v39  ;;  %2037 = vmatpush.msra.mxu2 %v1751_v59  ;;  %v4911_v39 = vld [vmem:[#allocation2 + $0x10] sm:$0xff] }
 0x4d2   :  { %2105 = vmatpush.msra.mxu3 %v1840_v27  ;;  %2585 = vmatmul.f32.vlgmr.msra.gmra.mxu0 %v4736_v63  ;;  %5487 = vst [vmem:[#allocation49_spill] sm:$0xff] %v4911_v39  ;;  %v5019_v27 = vld [vmem:[#allocation2 + $0xc0] sm:$0xff] }
 0x4d3   :  { %1973 = vmatpush.msra.mxu1 %v1650_v29  ;;  %2038 = vmatpush.msra.mxu2 %v1748_v44  ;;  %v4921_v44 = vld [vmem:[#allocation2] sm:$0xff] }
 0x4d4   :  { %2106 = vmatpush.msra.mxu3 %v1837_v13  ;;  %5488 = vst [vmem:[#allocation50_spill] sm:$0xff] %v4921_v44  ;;  %v5490_v13 = vld [vmem:[#allocation41_spill] sm:$0xff]  ;;  %v5492_v29 = vld [vmem:[#allocation46_spill] sm:$0xff] }
 0x4d5   :  { %1974 = vmatpush.msra.mxu1 %v1647_v5  ;;  %2039 = vmatpush.msra.mxu2 %v1745_v7  ;;  %v2276_v5 = vld [vmem:[#allocation10 + $0x270] sm:$0xff]  ;;  %v2275_v7 = vld [vmem:[#allocation10 + $0x268] sm:$0xff] }
 0x4d6   :  { %2107 = vmatpush.msra.mxu3 %v4838_v24 }
 0x4d7   :  { %v4886_v32 = vpop.f32.mrf.mxu0  ;;  %1975 = vmatpush.msra.mxu1 %v1644_v3  ;;  %2040 = vmatpush.msra.mxu2 %v1742_v45  ;;  %v5491_v3 = vld [vmem:[#allocation40_spill] sm:$0xff]  ;;  %v5026_v45 = vld [vmem:[#allocation2 + $0xe8] sm:$0xff] }
 0x4d8   :  { %2108 = vmatpush.msra.mxu3 %v4827_v49  ;;  %v4995_v49 = vld [vmem:[#allocation2 + $0x90] sm:$0xff] }
 0x4d9   :  { %1976 = vmatpush.msra.mxu1 %v1641_v51  ;;  %2041 = vmatpush.msra.mxu2 %v1739_v46  ;;  %v5014_v51 = vld [vmem:[#allocation2 + $0xd0] sm:$0xff] }
 0x4da   :  { %2109 = vmatpush.msra.mxu3 %v4816_v53  ;;  %2588 = vmatmul.f32.gmra.mxu0 %v4750_v10  ;;  %v4985_v53 = vld [vmem:[#allocation2 + $0x80] sm:$0xff] }
 0x4db   :  { %1977 = vmatpush.msra.mxu1 %v4845_v4  ;;  %2042 = vmatpush.msra.mxu2 %v4847_v40  ;;  %v5007_v4 = vld [vmem:[#allocation2 + $0xa8] sm:$0xff]  ;;  %v5009_v40 = vld [vmem:[#allocation2 + $0xb0] sm:$0xff]  ;;  %v1914_v10 = vld [vmem:[#allocation2 + $0x140] sm:$0xff] }
 0x4dc   :  { %2110 = vmatpush.msra.mxu3 %v4805_v41  ;;  %v4978_v41 = vld [vmem:[#allocation2 + $0x88] sm:$0xff] }
 0x4dd   :  { %1978 = vmatpush.msra.mxu1 %v4834_v21  ;;  %2043 = vmatpush.msra.mxu2 %v4836_v55  ;;  %v4997_v21 = vld [vmem:[#allocation2 + $0x98] sm:$0xff] }
 0x4de   :  { %2111 = vmatpush.msra.mxu3 %v4792_v9  ;;  %v5002_v55 = vld [vmem:[#allocation2 + $0xb8] sm:$0xff] }
 0x4df   :  { %v4897_v59 = vpop.f32.mrf.mxu0  ;;  %1979 = vmatpush.msra.mxu1 %v4823_v58  ;;  %2044 = vmatpush.msra.mxu2 %v4825_v19  ;;  %v4990_v58 = vld [vmem:[#allocation2 + $0xa0] sm:$0xff] }
 0x4e0   :  { %2112 = vmatpush.msra.mxu3 %v4777_v31  ;;  %v4959_v31 = vld [vmem:[#allocation2 + $0x48] sm:$0xff] }
 0x4e1   :  { %1980 = vmatpush.msra.mxu1 %v4812_v38  ;;  %2045 = vmatpush.msra.mxu2 %v4814_v43  ;;  %v4983_v43 = vld [vmem:[#allocation2 + $0x78] sm:$0xff] }
 0x4e2   :  { %2113 = vmatpush.msra.mxu3 %v4762_v22  ;;  %2591 = vmatmul.f32.gmra.mxu0 %v4765_v1  ;;  %v4949_v22 = vld [vmem:[#allocation2 + $0x38] sm:$0xff]  ;;  %v5495_v1 = vld [vmem:[#allocation30_spill] sm:$0xff] }
 0x4e3   :  { %1981 = vmatpush.msra.mxu1 %v4801_v48  ;;  %2046 = vmatpush.msra.mxu2 %v4803_v12  ;;  %v4971_v48 = vld [vmem:[#allocation2 + $0x60] sm:$0xff]  ;;  %v4973_v12 = vld [vmem:[#allocation2 + $0x68] sm:$0xff] }
 0x4e4   :  { %2114 = vmatpush.msra.mxu3 %v4747_v15  ;;  %v4935_v15 = vld [vmem:[#allocation2 + $0x18] sm:$0xff] }
 0x4e5   :  { %1982 = vmatpush.msra.mxu1 %v4787_v18  ;;  %2047 = vmatpush.msra.mxu2 %v4789_v35  ;;  %v4961_v18 = vld [vmem:[#allocation2 + $0x50] sm:$0xff] }
 0x4e6   :  { %2115 = vmatpush.msra.mxu3 %v4734_v42  ;;  %v4966_v35 = vld [vmem:[#allocation2 + $0x70] sm:$0xff] }
 0x4e7   :  { %v4914_v37 = vpop.f32.mrf.mxu0  ;;  %1983 = vmatpush.msra.mxu1 %v4772_v50  ;;  %2048 = vmatpush.msra.mxu2 %v4774_v56  ;;  %v4954_v50 = vld [vmem:[#allocation2 + $0x58] sm:$0xff] }
 0x4e8   :  { %2116 = vmatmul.f32.vlgmr.msra.gmra.mxu3 %v4911_v39  ;;  %v5497_v39 = vld [vmem:[#allocation44_spill] sm:$0xff] }
 0x4e9   :  { %1984 = vmatpush.msra.mxu1 %v4757_v60  ;;  %2049 = vmatpush.msra.mxu2 %v4759_v8  ;;  %v4937_v60 = vld [vmem:[#allocation2 + $0x20] sm:$0xff]  ;;  %v4947_v8 = vld [vmem:[#allocation2 + $0x30] sm:$0xff] }
 0x4ea   :  { %2594 = vmatmul.f32.gmra.mxu0 %v4780_v25 }
 0x4eb   :  { %1985 = vmatpush.msra.mxu1 %v4742_v52  ;;  %2050 = vmatpush.msra.mxu2 %v4744_v23  ;;  %v4942_v52 = vld [vmem:[#allocation2 + $0x40] sm:$0xff] }
 0x4ec   :  { %1986 = vmatmul.f32.vlgmr.msra.gmra.mxu1 %v4921_v44  ;;  %2051 = vmatmul.f32.vlgmr.msra.gmra.mxu2 %v4923_v47  ;;  %v1916_v44 = vld [vmem:[#allocation2 + $0x150] sm:$0xff] }
 0x4ed   :  { %2278 = vmatpush.msra.mxu1 %v2277_v6 }
 0x4ef   :  { %v4932_v42 = vpop.f32.mrf.mxu0  ;;  %2279 = vmatpush.msra.mxu1 %v2276_v5  ;;  %v2272_v5 = vld [vmem:[#allocation10 + $0x250] sm:$0xff] }
 0x4f0   :  { %2119 = vmatmul.f32.gmra.mxu3 %v4930_v20  ;;  %v1918_v20 = vld [vmem:[#allocation2 + $0x160] sm:$0xff] }
 0x4f1   :  { %2280 = vmatpush.msra.mxu1 %v2275_v7  ;;  %v5493_v7 = vld [vmem:[#allocation47_spill] sm:$0xff] }
 0x4f2   :  { %2597 = vmatmul.f32.gmra.mxu0 %v4795_v54  ;;  %v1908_v54 = vld [vmem:[#allocation2 + $0x110] sm:$0xff] }
 0x4f3   :  { %2281 = vmatpush.msra.mxu1 %v2274_v17  ;;  %v2269_v17 = vld [vmem:[#allocation10 + $0x238] sm:$0xff] }
 0x4f4   :  { %1989 = vmatmul.f32.gmra.mxu1 %v4935_v15  ;;  %2054 = vmatmul.f32.gmra.mxu2 %v4937_v60 }
 0x4f5   :  { %2282 = vmatpush.msra.mxu1 %v2273_v2 }
 0x4f7   :  { %v4944_v23 = vpop.f32.mrf.mxu0  ;;  %2283 = vmatpush.msra.mxu1 %v2272_v5  ;;  %v5494_v5 = vld [vmem:[#allocation42_spill] sm:$0xff] }
 0x4f8   :  { %2122 = vmatmul.f32.gmra.mxu3 %v4942_v52 }
 0x4fa   :  { %2600 = vmatmul.f32.gmra.mxu0 %v4807_v11  ;;  %v1907_v11 = vld [vmem:[#allocation2 + $0x108] sm:$0xff] }
 0x4fc   :  { %1992 = vmatmul.f32.gmra.mxu1 %v4947_v8  ;;  %2057 = vmatmul.f32.gmra.mxu2 %v4949_v22 }
 0x4ff   :  { %v4956_v56 = vpop.f32.mrf.mxu0 }
 0x500   :  { %2125 = vmatmul.f32.gmra.mxu3 %v4954_v50 }
 0x502   :  { %2603 = vmatmul.f32.gmra.mxu0 %v4818_v33  ;;  %v2267_v33 = vld [vmem:[#allocation10 + $0x228] sm:$0xff] }
 0x504   :  { %1995 = vmatmul.f32.gmra.mxu1 %v4959_v31  ;;  %2060 = vmatmul.f32.gmra.mxu2 %v4961_v18 }
 0x507   :  { %v4968_v9 = vpop.f32.mrf.mxu0 }
 0x508   :  { %2128 = vmatmul.f32.gmra.mxu3 %v4966_v35 }
 0x50a   :  { %2606 = vmatmul.f32.gmra.mxu0 %v4829_v14  ;;  %v2268_v14 = vld [vmem:[#allocation10 + $0x230] sm:$0xff] }
 0x50c   :  { %1998 = vmatmul.f32.gmra.mxu1 %v4971_v48  ;;  %2063 = vmatmul.f32.gmra.mxu2 %v4973_v12 }
 0x50f   :  { %v4980_v38 = vpop.f32.mrf.mxu0 }
 0x510   :  { %2131 = vmatmul.f32.gmra.mxu3 %v4978_v41 }
 0x512   :  { %2609 = vmatmul.f32.gmra.mxu0 %v4840_v34  ;;  %v5045_v34 = vld [vmem:[#allocation2 + $0x118] sm:$0xff] }
 0x514   :  { %2001 = vmatmul.f32.gmra.mxu1 %v4983_v43  ;;  %2066 = vmatmul.f32.gmra.mxu2 %v4985_v53 }
 0x517   :  { %v4992_v19 = vpop.f32.mrf.mxu0 }
 0x518   :  { %2134 = vmatmul.f32.gmra.mxu3 %v4990_v58 }
 0x51a   :  { %2612 = vmatmul.f32.gmra.mxu0 %v4849_v28  ;;  %v1905_v28 = vld [vmem:[#allocation2 + $0xf8] sm:$0xff] }
 0x51c   :  { %2004 = vmatmul.f32.gmra.mxu1 %v4995_v49  ;;  %2069 = vmatmul.f32.gmra.mxu2 %v4997_v21 }
 0x51f   :  { %v5004_v24 = vpop.f32.mrf.mxu0 }
 0x520   :  { %2137 = vmatmul.f32.gmra.mxu3 %v5002_v55 }
 0x522   :  { %2615 = vmatmul.f32.gmra.mxu0 %v5490_v13  ;;  %v5041_v13 = vld [vmem:[#allocation2 + $0xf0] sm:$0xff] }
 0x524   :  { %2007 = vmatmul.f32.gmra.mxu1 %v5007_v4  ;;  %2072 = vmatmul.f32.gmra.mxu2 %v5009_v40 }
 0x527   :  { %v5016_v46 = vpop.f32.mrf.mxu0 }
 0x528   :  { %2140 = vmatmul.f32.gmra.mxu3 %v5014_v51 }
 0x52a   :  { %2618 = vmatmul.f32.gmra.mxu0 %v5491_v3  ;;  %v2271_v3 = vld [vmem:[#allocation10 + $0x248] sm:$0xff] }
 0x52b   :  { %2284 = vmatpush.msra.mxu1 %v2271_v3  ;;  %v5049_v3 = vld [vmem:[#allocation2 + $0x170] sm:$0xff] }
 0x52c   :  { %2010 = vmatmul.f32.gmra.mxu1 %v5019_v27  ;;  %2075 = vmatmul.f32.gmra.mxu2 %v5021_v61 }
 0x52d   :  { %3359 = vmatpush.lsf.msrb.mxu2 %v5049_v3 }
 0x52f   :  { %v5028_v62 = vpop.f32.mrf.mxu0 }
 0x530   :  { %2143 = vmatmul.f32.gmra.mxu3 %v5026_v45 }
 0x532   :  { %2621 = vmatmul.f32.gmra.mxu0 %v5492_v29  ;;  %v2270_v29 = vld [vmem:[#allocation10 + $0x240] sm:$0xff] }
 0x533   :  { %2285 = vmatpush.msra.mxu1 %v2270_v29  ;;  %v5052_v29 = vld [vmem:[#allocation2 + $0x168] sm:$0xff] }
 0x534   :  { %2013 = vmatmul.f32.gmra.mxu1 %v5031_v26  ;;  %2078 = vmatmul.f32.gmra.mxu2 %v5033_v57 }
 0x535   :  { %2286 = vmatpush.msra.mxu1 %v2269_v17  ;;  %v1912_v17 = vld [vmem:[#allocation2 + $0x130] sm:$0xff]  ;;  %3431 = vmatpush.lsf.msrb.mxu3 %v5052_v29 }
 0x537   :  { %v2237_v6 = vpop.f32.mrf.mxu0  ;;  %2287 = vmatpush.msra.mxu1 %v2268_v14  ;;  %v1921_v14 = vld [vmem:[#allocation2 + $0x178] sm:$0xff] }
 0x538   :  { %2146 = vmatmul.f32.gmra.mxu3 %v5038_v36 }
 0x539   :  { %2288 = vmatpush.msra.mxu1 %v2267_v33  ;;  %v1910_v33 = vld [vmem:[#allocation2 + $0x120] sm:$0xff] }
 0x53a   :  { %2624 = vmatmul.f32.gmra.mxu0 %v5493_v7  ;;  %v1917_v7 = vld [vmem:[#allocation2 + $0x158] sm:$0xff] }
 0x53b   :  { %2289 = vmatpush.msra.mxu1 %v5494_v5  ;;  %3360 = vmatpush.lsf.msrb.mxu2 %v1917_v7  ;;  %v1911_v5 = vld [vmem:[#allocation2 + $0x128] sm:$0xff] }
 0x53c   :  { %2016 = vmatmul.f32.gmra.mxu1 %v5041_v13  ;;  %2081 = vmatmul.f32.gmra.mxu2 %v1905_v28 }
 0x53d   :  { %2290 = vmatpush.msra.mxu1 %v5495_v1  ;;  %3361 = vmatpush.lsf.msrb.mxu2 %v1914_v10  ;;  %v5498_v1 = vld [vmem:[#allocation45_spill] sm:$0xff] }
 0x53f   :  { %v2240_v2 = vpop.f32.mrf.mxu0  ;;  %3323 = vmatpush.lsf.msrb.mxu1 %v1921_v14  ;;  %3362 = vmatpush.lsf.msrb.mxu2 %v1911_v5 }
 0x540   :  { %2149 = vmatmul.f32.gmra.mxu3 %v5045_v34 }
 0x541   :  { %3363 = vmatpush.lsf.msrb.mxu2 %v1908_v54 }
 0x542   :  { %2627 = vmatmul.f32.gmra.mxu0 %v4874_v30  ;;  %v5496_v30 = vld [vmem:[#allocation43_spill] sm:$0xff] }
 0x543   :  { %2291 = vmatpush.msra.mxu1 %v5496_v30  ;;  %3364 = vmatpush.lsf.msrb.mxu2 %v1905_v28  ;;  %v5499_v28 = vld [vmem:[#allocation51_spill] sm:$0xff] }
 0x544   :  { %2019 = vmatmul.f32.gmra.mxu1 %v1907_v11  ;;  %2084 = vmatmul.f32.gmra.mxu2 %v1908_v54 }
 0x545   :  { %2292 = vmatpush.msra.mxu1 %v5497_v39  ;;  %v1913_v39 = vld [vmem:[#allocation2 + $0x138] sm:$0xff]  ;;  %3365 = vmatpush.lsf.msrb.mxu2 %v5033_v57 }
 0x547   :  { %v2243_v25 = vpop.f32.mrf.mxu0  ;;  %2293 = vmatpush.msra.mxu1 %v5498_v1  ;;  %3366 = vmatpush.lsf.msrb.mxu2 %v5021_v61 }
 0x548   :  { %2488 = vmatpush.msra.mxu3 %v2243_v25  ;;  %v1915_v25 = vld [vmem:[#allocation2 + $0x148] sm:$0xff] }
 0x549   :  { %2152 = vmatmul.f32.gmra.mxu3 %v1912_v17  ;;  %3324 = vmatpush.lsf.msrb.mxu1 %v1918_v20 }
 0x54a   :  { %2489 = vmatpush.msra.mxu3 %v2240_v2  ;;  %2630 = vmatmul.f32.gmra.mxu0 %v4879_v16 }
 0x54b   :  { %3325 = vmatpush.lsf.msrb.mxu1 %v1915_v25  ;;  %3367 = vmatpush.lsf.msrb.mxu2 %v5009_v40 }
 0x54c   :  { %2490 = vmatpush.msra.mxu3 %v2237_v6  ;;  %2022 = vmatmul.f32.gmra.mxu1 %v1910_v33 }
 0x54d   :  { %2087 = vmatmul.f32.gmra.mxu2 %v1911_v5  ;;  %3326 = vmatpush.lsf.msrb.mxu1 %v1912_v17 }
 0x54e   :  { %2491 = vmatpush.msra.mxu3 %v5028_v62  ;;  %3368 = vmatpush.lsf.msrb.mxu2 %v4997_v21  ;;  %v5511_v21 = vld [vmem:[#allocation41_spill] sm:$0xff] }
 0x54f   :  { %v5062_v30 = vpop.f32.mrf.mxu0  ;;  %3327 = vmatpush.lsf.msrb.mxu1 %v5045_v34 }
 0x550   :  { %3432 = vmatpush.lsf.msrb.mxu3 %v1916_v44  ;;  %3369 = vmatpush.lsf.msrb.mxu2 %v4985_v53 }
 0x551   :  { %2155 = vmatmul.f32.gmra.mxu3 %v1915_v25  ;;  %3328 = vmatpush.lsf.msrb.mxu1 %v5038_v36  ;;  %v5515_v36 = vld [vmem:[#allocation48_spill] sm:$0xff] }
 0x552   :  { %2492 = vmatpush.msra.mxu3 %v5016_v46  ;;  %3370 = vmatpush.lsf.msrb.mxu2 %v4973_v12  ;;  %v5513_v46 = vld [vmem:[#allocation46_spill] sm:$0xff] }
 0x553   :  { %3329 = vmatpush.lsf.msrb.mxu1 %v5026_v45  ;;  %v5514_v45 = vld [vmem:[#allocation47_spill] sm:$0xff] }
 0x554   :  { %2493 = vmatpush.msra.mxu3 %v5004_v24  ;;  %2025 = vmatmul.f32.gmra.mxu1 %v1913_v39 }
 0x555   :  { %2090 = vmatmul.f32.gmra.mxu2 %v1914_v10  ;;  %3330 = vmatpush.lsf.msrb.mxu1 %v5014_v51 }
 0x556   :  { %3433 = vmatpush.lsf.msrb.mxu3 %v1913_v39  ;;  %3371 = vmatpush.lsf.msrb.mxu2 %v4961_v18  ;;  %v5507_v18 = vld [vmem:[#allocation36_spill] sm:$0xff] }
 0x557   :  { %v5069_v62 = vpop.f32.mrf.mxu0  ;;  %3331 = vmatpush.lsf.msrb.mxu1 %v5002_v55 }
 0x558   :  { %2494 = vmatpush.msra.mxu3 %v4992_v19  ;;  %3372 = vmatpush.lsf.msrb.mxu2 %v4949_v22 }
 0x559   :  { %2158 = vmatmul.f32.gmra.mxu3 %v1918_v20  ;;  %3332 = vmatpush.lsf.msrb.mxu1 %v4990_v58  ;;  %v5510_v58 = vld [vmem:[#allocation39_spill] sm:$0xff] }
 0x55a   :  { %3434 = vmatpush.lsf.msrb.mxu3 %v1910_v33  ;;  %3373 = vmatpush.lsf.msrb.mxu2 %v4937_v60 }
 0x55b   :  { %3333 = vmatpush.lsf.msrb.mxu1 %v4978_v41 }
 0x55c   :  { %2495 = vmatpush.msra.mxu3 %v4980_v38  ;;  %2028 = vmatmul.f32.gmra.mxu1 %v1916_v44  ;;  %v5509_v38 = vld [vmem:[#allocation38_spill] sm:$0xff] }
 0x55d   :  { %2093 = vmatmul.f32.gmra.mxu2 %v1917_v7  ;;  %3334 = vmatpush.lsf.msrb.mxu1 %v4966_v35 }
 0x55e   :  { %3435 = vmatpush.lsf.msrb.mxu3 %v1907_v11  ;;  %3374 = vmatpush.lsf.msrb.mxu2 %v4923_v47  ;;  %v5503_v47 = vld [vmem:[#allocation32_spill] sm:$0xff] }
 0x55f   :  { %v5083_v10 = vpop.f32.mrf.mxu0  ;;  %3335 = vmatpush.lsf.msrb.mxu1 %v4954_v50  ;;  %v5506_v50 = vld [vmem:[#allocation35_spill] sm:$0xff] }
 0x560   :  { %2496 = vmatpush.msra.mxu3 %v4968_v9 }
 0x561   :  { %2161 = vmatmul.f32.gmra.mxu3 %v1921_v14  ;;  %3336 = vmatpush.lsf.msrb.mxu1 %v4942_v52 }
 0x562   :  { %2497 = vmatpush.msra.mxu3 %v4956_v56 }
 0x563   :  { %3337 = vmatpush.lsf.msrb.mxu1 %v5499_v28 }
 0x564   :  { %3436 = vmatpush.lsf.msrb.mxu3 %v5041_v13  ;;  %2031 = vmatmul.f32.gmra.mxu1 %v5052_v29 }
 0x565   :  { %2096 = vmatmul.f32.gmra.mxu2 %v5049_v3 }
 0x566   :  { %2498 = vmatpush.msra.mxu3 %v4944_v23  ;;  %v5505_v23 = vld [vmem:[#allocation34_spill] sm:$0xff] }
 0x567   :  { %v5100_v54 = vpop.f32.mrf.mxu0 }
 0x568   :  { %3437 = vmatpush.lsf.msrb.mxu3 %v5031_v26 }
 0x569   :  { %v5105_v11 = vpop.f32.mrf.mxu1 }
 0x56a   :  { %2499 = vmatpush.msra.mxu3 %v4932_v42 }
 0x56b   :  { %v5155_v40 = vpop.f32.mrf.mxu3 }
 0x56c   :  { %3438 = vmatpush.lsf.msrb.mxu3 %v5019_v27  ;;  %2294 = vmatmul.f32.vlgmr.msra.gmra.mxu1 %v4736_v63  ;;  %v5502_v63 = vld [vmem:[#allocation31_spill] sm:$0xff] }
 0x56d   :  { %3375 = vllmr.16.mxu2 }
 0x56e   :  { %2500 = vmatpush.msra.mxu3 %v4914_v37 }
 0x56f   :  { %v5116_v34 = vpop.f32.mrf.mxu0 }
 0x570   :  { %2501 = vmatpush.msra.mxu3 %v4897_v59  ;;  %v5501_v59 = vld [vmem:[#allocation49_spill] sm:$0xff] }
 0x571   :  { %3338 = vmatpush.lsf.msrb.mxu1 %v5501_v59 }
 0x572   :  { %3439 = vmatpush.lsf.msrb.mxu3 %v5007_v4  ;;  %v5512_v4 = vld [vmem:[#allocation40_spill] sm:$0xff] }
 0x573   :  { %3339 = vllmr.16.mxu1  ;;  %v5160_v27 = vpop.f32.mrf.mxu3 }
 0x574   :  { %2502 = vmatpush.msra.mxu3 %v4886_v32  ;;  %v5500_v32 = vld [vmem:[#allocation50_spill] sm:$0xff]  ;;  %2297 = vmatmul.f32.gmra.mxu1 %v5502_v63 }
 0x576   :  { %3440 = vmatpush.lsf.msrb.mxu3 %v4995_v49 }
 0x577   :  { %v2601_v37 = vpop.f32.mrf.mxu0 }
 0x578   :  { %2503 = vmatpush.msra.mxu3 %v4882_v0  ;;  %v5120_v0 = vpop.f32.mrf.mxu1 }
 0x57a   :  { %3441 = vmatpush.lsf.msrb.mxu3 %v4983_v43 }
 0x57b   :  { %v5165_v26 = vpop.f32.mrf.mxu3 }
 0x57c   :  { %3442 = vmatpush.lsf.msrb.mxu3 %v4971_v48  ;;  %2300 = vmatmul.f32.gmra.mxu1 %v5503_v47  ;;  %v5508_v48 = vld [vmem:[#allocation37_spill] sm:$0xff] }
 0x57e   :  { %3443 = vmatpush.lsf.msrb.mxu3 %v4959_v31 }
 0x57f   :  { %v2604_v20 = vpop.f32.mrf.mxu0 }
 0x580   :  { %3444 = vmatpush.lsf.msrb.mxu3 %v4947_v8  ;;  %v5125_v44 = vpop.f32.mrf.mxu1 }
 0x582   :  { %3445 = vmatpush.lsf.msrb.mxu3 %v4935_v15  ;;  %v5504_v15 = vld [vmem:[#allocation33_spill] sm:$0xff] }
 0x583   :  { %v5175_v7 = vpop.f32.mrf.mxu3 }
 0x584   :  { %3446 = vmatpush.lsf.msrb.mxu3 %v5500_v32  ;;  %2303 = vmatmul.f32.gmra.mxu1 %v5504_v15 }
 0x585   :  { %3447 = vllmr.16.mxu3 }
 0x587   :  { %v2607_v60 = vpop.f32.mrf.mxu0 }
 0x588   :  { %v5128_v42 = vpop.f32.mrf.mxu1 }
 0x58b   :  { %v5180_v3 = vpop.f32.mrf.mxu3 }
 0x58c   :  { %2306 = vmatmul.f32.gmra.mxu1 %v5505_v23 }
 0x58f   :  { %v2610_v8 = vpop.f32.mrf.mxu0 }
 0x590   :  { %v5131_v52 = vpop.f32.mrf.mxu1 }
 0x593   :  { %v5182_v17 = vpop.f32.mrf.mxu3 }
 0x594   :  { %2309 = vmatmul.f32.gmra.mxu1 %v5506_v50 }
 0x597   :  { %v2613_v56 = vpop.f32.mrf.mxu0 }
 0x598   :  { %v5134_v22 = vpop.f32.mrf.mxu1 }
 0x59b   :  { %v5184_v33 = vpop.f32.mrf.mxu3 }
 0x59c   :  { %2312 = vmatmul.f32.gmra.mxu1 %v5507_v18 }
 0x59f   :  { %v2616_v35 = vpop.f32.mrf.mxu0 }
 0x5a0   :  { %v5137_v31 = vpop.f32.mrf.mxu1 }
 0x5a3   :  { %v5186_v1 = vpop.f32.mrf.mxu3 }
 0x5a4   :  { %2315 = vmatmul.f32.gmra.mxu1 %v5508_v48 }
 0x5a6   :  { %3448 = vmatmul.lmr.bf16.vlgmr.msra.gmra.16.mxu3 }
 0x5a7   :  { %v2619_v12 = vpop.f32.mrf.mxu0 }
 0x5a8   :  { %v5140_v9 = vpop.f32.mrf.mxu1 }
 0x5ab   :  { %v5198_v23 = vpop.f32.mrf.mxu3 }
 0x5ac   :  { %2318 = vmatmul.f32.gmra.mxu1 %v5509_v38 }
 0x5ae   :  { %3449 = vmatmul.lmr.bf16.gmra.16.mxu3 }
 0x5af   :  { %v2622_v43 = vpop.f32.mrf.mxu0 }
 0x5b0   :  { %v5143_v41 = vpop.f32.mrf.mxu1 }
 0x5b3   :  { %v5202_v50 = vpop.f32.mrf.mxu3 }
 0x5b4   :  { %2321 = vmatmul.f32.gmra.mxu1 %v5510_v58  ;;  %v2795_v58 = vld [vmem:[#allocation11 + $0xf8] sm:$0xff] }
 0x5b6   :  { %3450 = vmatmul.lmr.bf16.gmra.16.mxu3 }
 0x5b7   :  { %v2625_v19 = vpop.f32.mrf.mxu0 }
 0x5b8   :  { %v5146_v53 = vpop.f32.mrf.mxu1 }
 0x5bb   :  { %v5206_v18 = vpop.f32.mrf.mxu3 }
 0x5bc   :  { %2324 = vmatmul.f32.gmra.mxu1 %v5511_v21  ;;  %v2793_v21 = vld [vmem:[#allocation11 + $0xe8] sm:$0xff] }
 0x5be   :  { %3451 = vmatmul.lmr.bf16.gmra.16.mxu3 }
 0x5bf   :  { %v2628_v55 = vpop.f32.mrf.mxu0 }
 0x5c0   :  { %v5149_v49 = vpop.f32.mrf.mxu1 }
 0x5c3   :  { %v5210_v48 = vpop.f32.mrf.mxu3 }
 0x5c4   :  { %2327 = vmatmul.f32.gmra.mxu1 %v5512_v4 }
 0x5c6   :  { %3452 = vmatmul.lmr.bf16.gmra.16.mxu3 }
 0x5c7   :  { %v2631_v13 = vpop.f32.mrf.mxu0 }
 0x5c8   :  { %v5152_v24 = vpop.f32.mrf.mxu1  ;;  %2666 = vmatpush.msra.mxu1 %v2631_v13  ;;  %v2791_v13 = vld [vmem:[#allocation11 + $0xd8] sm:$0xff] }
 0x5ca   :  { %2667 = vmatpush.msra.mxu1 %v2628_v55  ;;  %v2792_v55 = vld [vmem:[#allocation11 + $0xe0] sm:$0xff] }
 0x5cc   :  { %2668 = vmatpush.msra.mxu1 %v2625_v19  ;;  %v5214_v38 = vpop.f32.mrf.mxu3  ;;  %v2794_v19 = vld [vmem:[#allocation11 + $0xf0] sm:$0xff] }
 0x5cd   :  { %2330 = vmatmul.f32.gmra.mxu1 %v5513_v46  ;;  %v2790_v46 = vld [vmem:[#allocation11 + $0xd0] sm:$0xff] }
 0x5ce   :  { %3453 = vmatmul.lmr.bf16.gmra.16.mxu3  ;;  %2669 = vmatpush.msra.mxu1 %v2622_v43 }
 0x5d0   :  { %v5157_v51 = vpop.f32.mrf.mxu1  ;;  %2670 = vmatpush.msra.mxu1 %v2619_v12 }
 0x5d2   :  { %2671 = vmatpush.msra.mxu1 %v2616_v35 }
 0x5d4   :  { %2672 = vmatpush.msra.mxu1 %v2613_v56  ;;  %v5218_v4 = vpop.f32.mrf.mxu3 }
 0x5d5   :  { %2333 = vmatmul.f32.gmra.mxu1 %v5514_v45  ;;  %v2898_v45 = vld [vmem:[#allocation13 + $0xf8] sm:$0xff] }
 0x5d6   :  { %3454 = vmatmul.lmr.bf16.gmra.16.mxu3  ;;  %2673 = vmatpush.msra.mxu1 %v2610_v8 }
 0x5d7   :  { %2904 = vmatpush.msra.mxu3 %v2898_v45 }
 0x5d8   :  { %v5162_v61 = vpop.f32.mrf.mxu1  ;;  %2674 = vmatpush.msra.mxu1 %v2607_v60 }
 0x5da   :  { %2675 = vmatpush.msra.mxu1 %v2604_v20 }
 0x5dc   :  { %2676 = vmatpush.msra.mxu1 %v2601_v37  ;;  %v5188_v37 = vpop.f32.mrf.mxu2 }
 0x5dd   :  { %2336 = vmatmul.f32.gmra.mxu1 %v5515_v36 }
 0x5de   :  { %3455 = vmatmul.lmr.bf16.gmra.16.mxu3  ;;  %2677 = vmatpush.msra.mxu1 %v5116_v34 }
 0x5e0   :  { %v5167_v57 = vpop.f32.mrf.mxu1  ;;  %2678 = vmatpush.msra.mxu1 %v5100_v54 }
 0x5e2   :  { %2679 = vmatpush.msra.mxu1 %v5083_v10 }
 0x5e4   :  { %2680 = vmatpush.msra.mxu1 %v5069_v62  ;;  %v5190_v47 = vpop.f32.mrf.mxu2 }
 0x5e5   :  { %2339 = vmatmul.f32.gmra.mxu1 %v4879_v16 }
 0x5e6   :  { %3456 = vmatmul.lmr.bf16.gmra.16.mxu3  ;;  %2681 = vmatpush.msra.mxu1 %v5062_v30 }
 0x5e8   :  { %v5172_v6 = vpop.f32.mrf.mxu1 }
 0x5ec   :  { %v5192_v20 = vpop.f32.mrf.mxu2 }
 0x5ed   :  { %3340 = vmatmul.lmr.bf16.vlgmr.msra.gmra.16.mxu1 }
 0x5ee   :  { %3457 = vmatmul.lmr.bf16.gmra.16.mxu3 }
 0x5f0   :  { %v2295_v2 = vpop.f32.mrf.mxu1 }
 0x5f4   :  { %v5194_v15 = vpop.f32.mrf.mxu2 }
 0x5f5   :  { %3341 = vmatmul.lmr.bf16.gmra.16.mxu1 }
 0x5f6   :  { %3458 = vmatmul.lmr.bf16.gmra.16.mxu3 }
 0x5f8   :  { %v2298_v29 = vpop.f32.mrf.mxu1 }
 0x5fc   :  { %v5196_v60 = vpop.f32.mrf.mxu2 }
 0x5fd   :  { %3342 = vmatmul.lmr.bf16.gmra.16.mxu1 }
 0x5fe   :  { %3459 = vmatmul.lmr.bf16.gmra.16.mxu3 }
 0x600   :  { %v2301_v14 = vpop.f32.mrf.mxu1 }
 0x604   :  { %v5200_v8 = vpop.f32.mrf.mxu2 }
 0x605   :  { %3343 = vmatmul.lmr.bf16.gmra.16.mxu1 }
 0x606   :  { %3460 = vmatmul.lmr.bf16.gmra.16.mxu3 }
 0x608   :  { %v2304_v5 = vpop.f32.mrf.mxu1 }
 0x60c   :  { %v5204_v56 = vpop.f32.mrf.mxu2 }
 0x60d   :  { %3344 = vmatmul.lmr.bf16.gmra.16.mxu1 }
 0x60e   :  { %3461 = vmatmul.lmr.bf16.gmra.16.mxu3 }
 0x610   :  { %v2307_v16 = vpop.f32.mrf.mxu1 }
 0x614   :  { %v5208_v35 = vpop.f32.mrf.mxu2 }
 0x615   :  { %3345 = vmatmul.lmr.bf16.gmra.16.mxu1 }
 0x616   :  { %3462 = vmatmul.lmr.bf16.gmra.16.mxu3 }
 0x618   :  { %v2310_v25 = vpop.f32.mrf.mxu1 }
 0x61c   :  { %v5212_v12 = vpop.f32.mrf.mxu2 }
 0x61d   :  { %3346 = vmatmul.lmr.bf16.gmra.16.mxu1 }
 0x61e   :  { %3463 = vmatmul.lmr.bf16.gmra.16.mxu3 }
 0x620   :  { %v2313_v30 = vpop.f32.mrf.mxu1 }
 0x624   :  { %v5216_v43 = vpop.f32.mrf.mxu2 }
 0x625   :  { %3347 = vmatmul.lmr.bf16.gmra.16.mxu1 }
 0x628   :  { %v2316_v39 = vpop.f32.mrf.mxu1 }
 0x62c   :  { %v5220_v36 = vpop.f32.mrf.mxu2 }
 0x62d   :  { %3348 = vmatmul.lmr.bf16.gmra.16.mxu1 }
 0x630   :  { %v2319_v62 = vpop.f32.mrf.mxu1 }
 0x635   :  { %3349 = vmatmul.lmr.bf16.gmra.16.mxu1 }
 0x638   :  { %v2322_v10 = vpop.f32.mrf.mxu1 }
 0x63d   :  { %3350 = vmatmul.lmr.bf16.gmra.16.mxu1 }
 0x640   :  { %v2325_v54 = vpop.f32.mrf.mxu1 }
 0x645   :  { %3351 = vmatmul.lmr.bf16.gmra.16.mxu1 }
 0x648   :  { %v2328_v34 = vpop.f32.mrf.mxu1 }
 0x64d   :  { %3352 = vmatmul.lmr.bf16.gmra.16.mxu1 }
 0x650   :  { %v2331_v28 = vpop.f32.mrf.mxu1 }
 0x655   :  { %3353 = vmatmul.lmr.bf16.gmra.16.mxu1 }
 0x658   :  { %v2334_v32 = vpop.f32.mrf.mxu1 }
 0x65d   :  { %3354 = vmatmul.lmr.bf16.gmra.16.mxu1 }
 0x660   :  { %v2337_v59 = vpop.f32.mrf.mxu1 }
 0x665   :  { %3355 = vmatmul.lmr.bf16.gmra.16.mxu1 }
 0x668   :  { %v2340_v63 = vpop.f32.mrf.mxu1 }
 0x669   :  { %2391 = vmatpush.msra.mxu2 %v2340_v63  ;;  %v2782_v63 = vld [vmem:[#allocation11 + $0x90] sm:$0xff] }
 0x66b   :  { %2392 = vmatpush.msra.mxu2 %v2337_v59  ;;  %v2783_v59 = vld [vmem:[#allocation11 + $0x98] sm:$0xff] }
 0x66d   :  { %2393 = vmatpush.msra.mxu2 %v2334_v32  ;;  %v2892_v32 = vld [vmem:[#allocation13 + $0xc8] sm:$0xff] }
 0x66f   :  { %2394 = vmatpush.msra.mxu2 %v2331_v28  ;;  %v2893_v28 = vld [vmem:[#allocation13 + $0xd0] sm:$0xff] }
 0x671   :  { %2395 = vmatpush.msra.mxu2 %v2328_v34  ;;  %v2784_v34 = vld [vmem:[#allocation11 + $0xa0] sm:$0xff] }
 0x673   :  { %2396 = vmatpush.msra.mxu2 %v2325_v54  ;;  %v5224_v54 = vpop.f32.mrf.mxu2 }
 0x675   :  { %2397 = vmatpush.msra.mxu2 %v2322_v10  ;;  %v2894_v10 = vld [vmem:[#allocation13 + $0xd8] sm:$0xff] }
 0x677   :  { %2398 = vmatpush.msra.mxu2 %v2319_v62  ;;  %v2785_v62 = vld [vmem:[#allocation11 + $0xa8] sm:$0xff] }
 0x679   :  { %2399 = vmatpush.msra.mxu2 %v2316_v39  ;;  %v2895_v39 = vld [vmem:[#allocation13 + $0xe0] sm:$0xff] }
 0x67b   :  { %2400 = vmatpush.msra.mxu2 %v2313_v30  ;;  %v5222_v30 = vpop.f32.mrf.mxu3  ;;  %v5228_v45 = vpop.f32.mrf.mxu2 }
 0x67d   :  { %2401 = vmatpush.msra.mxu2 %v2310_v25  ;;  %v2786_v25 = vld [vmem:[#allocation11 + $0xb0] sm:$0xff] }
 0x67f   :  { %2402 = vmatpush.msra.mxu2 %v2307_v16  ;;  %v2787_v16 = vld [vmem:[#allocation11 + $0xb8] sm:$0xff] }
 0x681   :  { %2403 = vmatpush.msra.mxu2 %v2304_v5  ;;  %v2896_v5 = vld [vmem:[#allocation13 + $0xe8] sm:$0xff] }
 0x683   :  { %2404 = vmatpush.msra.mxu2 %v2301_v14  ;;  %v2897_v14 = vld [vmem:[#allocation13 + $0xf0] sm:$0xff] }
 0x684   :  { %2905 = vmatpush.msra.mxu3 %v2897_v14  ;;  %v2886_v14 = vld [vmem:[#allocation13 + $0x98] sm:$0xff] }
 0x685   :  { %2405 = vmatpush.msra.mxu2 %v2298_v29  ;;  %v2788_v29 = vld [vmem:[#allocation11 + $0xc0] sm:$0xff] }
 0x686   :  { %2906 = vmatpush.msra.mxu3 %v2896_v5 }
 0x687   :  { %2406 = vmatpush.msra.mxu2 %v2295_v2  ;;  %v2789_v2 = vld [vmem:[#allocation11 + $0xc8] sm:$0xff] }
 0x688   :  { %3376 = vmatmul.lmr.bf16.vlgmr.msra.gmra.16.mxu2  ;;  %2907 = vmatpush.msra.mxu3 %v2895_v39  ;;  %v2884_v39 = vld [vmem:[#allocation13 + $0x88] sm:$0xff] }
 0x689   :  { %2801 = vmatpush.msra.mxu2 %v2795_v58  ;;  %v2891_v58 = vld [vmem:[#allocation13 + $0xc0] sm:$0xff] }
 0x68a   :  { %2908 = vmatpush.msra.mxu3 %v2894_v10  ;;  %v2883_v10 = vld [vmem:[#allocation13 + $0x80] sm:$0xff] }
 0x68b   :  { %2802 = vmatpush.msra.mxu2 %v2794_v19  ;;  %v2781_v19 = vld [vmem:[#allocation11 + $0x88] sm:$0xff] }
 0x68c   :  { %2909 = vmatpush.msra.mxu3 %v2893_v28 }
 0x68d   :  { %2803 = vmatpush.msra.mxu2 %v2793_v21  ;;  %v2890_v21 = vld [vmem:[#allocation13 + $0xb8] sm:$0xff] }
 0x68e   :  { %2910 = vmatpush.msra.mxu3 %v2892_v32 }
 0x68f   :  { %2804 = vmatpush.msra.mxu2 %v2792_v55  ;;  %v5226_v55 = vpop.f32.mrf.mxu3 }
 0x690   :  { %3377 = vmatmul.lmr.bf16.gmra.16.mxu2  ;;  %2911 = vmatpush.msra.mxu3 %v2891_v58  ;;  %5516 = vst [vmem:[#allocation42_spill] sm:$0xff] %v5226_v55 }
 0x691   :  { %2805 = vmatpush.msra.mxu2 %v2791_v13  ;;  %v2780_v13 = vld [vmem:[#allocation11 + $0x80] sm:$0xff] }
 0x692   :  { %2912 = vmatpush.msra.mxu3 %v2890_v21 }
 0x693   :  { %2806 = vmatpush.msra.mxu2 %v2790_v46  ;;  %v2889_v46 = vld [vmem:[#allocation13 + $0xb0] sm:$0xff] }
 0x694   :  { %2913 = vmatpush.msra.mxu3 %v2889_v46  ;;  %v2056_v46 = vadd.f32 %v5190_v47, %v5120_v0 }
 0x695   :  { %2807 = vmatpush.msra.mxu2 %v2789_v2  ;;  %v2888_v2 = vld [vmem:[#allocation13 + $0xa8] sm:$0xff] }
 0x696   :  { %2914 = vmatpush.msra.mxu3 %v2888_v2 }
 0x697   :  { %2808 = vmatpush.msra.mxu2 %v2788_v29  ;;  %v2887_v29 = vld [vmem:[#allocation13 + $0xa0] sm:$0xff]  ;;  %v2505_v5 = vpop.f32.mrf.mxu3 }
 0x698   :  { %3378 = vmatmul.lmr.bf16.gmra.16.mxu2  ;;  %2915 = vmatpush.msra.mxu3 %v2887_v29  ;;  %v2121_v29 = vadd.f32 %v5160_v27, %v2056_v46  ;;  %v2062_v27 = vadd.f32 %v5194_v15, %v5128_v42 }
 0x699   :  { %2809 = vmatpush.msra.mxu2 %v2787_v16  ;;  %v2885_v16 = vld [vmem:[#allocation13 + $0x90] sm:$0xff] }
 0x69a   :  { %2916 = vmatpush.msra.mxu3 %v2886_v14 }
 0x69b   :  { %2810 = vmatpush.msra.mxu2 %v2786_v25  ;;  %v2683_v25 = vpop.f32.mrf.mxu1 }
 0x69c   :  { %2917 = vmatpush.msra.mxu3 %v2885_v16 }
 0x69d   :  { %2811 = vmatpush.msra.mxu2 %v2785_v62  ;;  %v5230_v62 = vpop.f32.mrf.mxu2 }
 0x69e   :  { %2918 = vmatpush.msra.mxu3 %v2884_v39 }
 0x69f   :  { %2812 = vmatpush.msra.mxu2 %v2784_v34  ;;  %v2508_v34 = vpop.f32.mrf.mxu3 }
 0x6a0   :  { %3379 = vmatmul.lmr.bf16.gmra.16.mxu2  ;;  %2919 = vmatpush.msra.mxu3 %v2883_v10  ;;  %v2748_v10 = vmax.f32 %v2121_v29, 0.0  ;;  %v2127_v29 = vadd.f32 %v5175_v7, %v2062_v27  ;;  %v2068_v7 = vadd.f32 %v5200_v8, %v5134_v22 }
 0x6a1   :  { %2813 = vmatpush.msra.mxu2 %v2783_v59  ;;  %v2053_v59 = vadd.f32 %v5188_v37, %v5105_v11  ;;  %v2059_v11 = vadd.f32 %v5192_v20, %v5125_v44 }
 0x6a3   :  { %2814 = vmatpush.msra.mxu2 %v2782_v63  ;;  %v2686_v28 = vpop.f32.mrf.mxu1 }
 0x6a5   :  { %2815 = vmatpush.msra.mxu2 %v2781_v19  ;;  %v5232_v32 = vpop.f32.mrf.mxu2  ;;  %v2118_v19 = vadd.f32 %v5155_v40, %v2053_v59  ;;  %v2124_v59 = vadd.f32 %v5165_v26, %v2059_v11  ;;  %v2065_v26 = vadd.f32 %v5196_v60, %v5131_v52  ;;  %v2133_v52 = vadd.f32 %v5182_v17, %v2068_v7 }
 0x6a6   :  { %v2074_v17 = vadd.f32 %v5208_v35, %v5140_v9 }
 0x6a7   :  { %2816 = vmatpush.msra.mxu2 %v2780_v13  ;;  %v2511_v63 = vpop.f32.mrf.mxu3  ;;  %v2747_v13 = vmax.f32 %v2118_v19, 0.0  ;;  %v2130_v11 = vadd.f32 %v5180_v3, %v2065_v26  ;;  %v2071_v3 = vadd.f32 %v5204_v56, %v5137_v31 }
 0x6a8   :  { %3380 = vmatmul.lmr.bf16.gmra.16.mxu2 }
 0x6a9   :  { %v2136_v22 = vadd.f32 %v5184_v33, %v2071_v3  ;;  %v2077_v33 = vadd.f32 %v5212_v12, %v5143_v41  ;;  %v2996_v3 = vld [vmem:[#allocation14 + $0x58] sm:$0xff] }
 0x6ab   :  { %v2689_v58 = vpop.f32.mrf.mxu1  ;;  %v2142_v26 = vadd.f32 %v5198_v23, %v2077_v33  ;;  %v2083_v23 = vadd.f32 %v5220_v36, %v5149_v49  ;;  %v2086_v36 = vadd.f32 %v5224_v54, %v5152_v24  ;;  %v2092_v33 = vadd.f32 %v5230_v62, %v5162_v61 }
 0x6ac   :  { %v2095_v62 = vadd.f32 %v5232_v32, %v5167_v57 }
 0x6ad   :  { %v5237_v21 = vpop.f32.mrf.mxu2 }
 0x6af   :  { %v2514_v2 = vpop.f32.mrf.mxu3 }
 0x6b0   :  { %3381 = vmatmul.lmr.bf16.gmra.16.mxu2 }
 0x6b3   :  { %v2692_v16 = vpop.f32.mrf.mxu1 }
 0x6b7   :  { %v2517_v55 = vpop.f32.mrf.mxu3 }
 0x6b8   :  { %3382 = vmatmul.lmr.bf16.gmra.16.mxu2 }
 0x6bb   :  { %v2695_v47 = vpop.f32.mrf.mxu1 }
 0x6c0   :  { %3383 = vmatmul.lmr.bf16.gmra.16.mxu2 }
 0x6c8   :  { %3384 = vmatmul.lmr.bf16.gmra.16.mxu2 }
 0x6d0   :  { %3385 = vmatmul.lmr.bf16.gmra.16.mxu2 }
 0x6d8   :  { %3386 = vmatmul.lmr.bf16.gmra.16.mxu2 }
 0x6e0   :  { %3387 = vmatmul.lmr.bf16.gmra.16.mxu2 }
 0x6e8   :  { %3388 = vmatmul.lmr.bf16.gmra.16.mxu2 }
 0x6f0   :  { %3389 = vmatmul.lmr.bf16.gmra.16.mxu2 }
 0x6f8   :  { %3390 = vmatmul.lmr.bf16.gmra.16.mxu2 }
 0x700   :  { %3391 = vmatmul.lmr.bf16.gmra.16.mxu2 }
 0x708   :  { %2817 = vmatmul.f32.vlgmr.msra.gmra.mxu2 %v2747_v13  ;;  %v2749_v13 = vmax.f32 %v2124_v59, 0.0 }
 0x70b   :  { %v2408_v14 = vpop.f32.mrf.mxu2 }
 0x70c   :  { %v2506_v39 = vadd.f32 %v2505_v5, %v2408_v14  ;;  %v2750_v14 = vmax.f32 %v2127_v29, 0.0  ;;  %v2139_v29 = vadd.f32 %v5186_v1, %v2074_v17  ;;  %v2080_v1 = vadd.f32 %v5216_v43, %v5146_v53 }
 0x70d   :  { %v2148_v43 = vadd.f32 %v5206_v18, %v2083_v23  ;;  %v2098_v23 = vadd.f32 %v5237_v21, %v5172_v6  ;;  %v5287_v21 = vld [vmem:[%s5380_s5 + $0x1] ss:$0 sm:$0xff] }
 0x70e   :  { %v2731_v37 = vadd.f32 %v2683_v25, %v2506_v39  ;;  %v2520_v25 = vpop.f32.mrf.mxu3 }
 0x70f   :  { %v2757_v49 = vmax.f32 %v2148_v43, 0.0 }
 0x710   :  { %2820 = vmatmul.f32.gmra.mxu2 %v2748_v10  ;;  %v2763_v40 = vmax.f32 %v2731_v37, 0.0 }
 0x712   :  { %2920 = vmatmul.f32.vlgmr.msra.gmra.mxu3 %v2763_v40 }
 0x713   :  { %v2411_v19 = vpop.f32.mrf.mxu2 }
 0x714   :  { %v2509_v0 = vadd.f32 %v2508_v34, %v2411_v19  ;;  %v2698_v34 = vpop.f32.mrf.mxu1  ;;  %v2752_v19 = vmax.f32 %v2133_v52, 0.0  ;;  %v2998_v52 = vld [vmem:[#allocation14 + $0x68] sm:$0xff] }
 0x716   :  { %v2732_v46 = vadd.f32 %v2686_v28, %v2509_v0  ;;  %v2751_v28 = vmax.f32 %v2130_v11, 0.0 }
 0x718   :  { %2823 = vmatmul.f32.gmra.mxu2 %v2749_v13  ;;  %v2764_v5 = vmax.f32 %v2732_v46, 0.0  ;;  %v2753_v46 = vmax.f32 %v2136_v22, 0.0 }
 0x71a   :  { %2923 = vmatmul.f32.gmra.mxu3 %v2764_v5 }
 0x71b   :  { %v2414_v44 = vpop.f32.mrf.mxu2 }
 0x71c   :  { %v2512_v20 = vadd.f32 %v2511_v63, %v2414_v44  ;;  %v2523_v63 = vpop.f32.mrf.mxu3  ;;  %v2701_v59 = vpop.f32.mrf.mxu1 }
 0x71e   :  { %v2733_v39 = vadd.f32 %v2689_v58, %v2512_v20  ;;  %v2754_v20 = vmax.f32 %v2139_v29, 0.0  ;;  %v2991_v29 = vld [vmem:[#allocation14 + $0x30] sm:$0xff] }
 0x720   :  { %2826 = vmatmul.f32.gmra.mxu2 %v2750_v14  ;;  %v2765_v10 = vmax.f32 %v2733_v39, 0.0 }
 0x722   :  { %2926 = vmatmul.f32.gmra.mxu3 %v2765_v10 }
 0x723   :  { %v2417_v42 = vpop.f32.mrf.mxu2 }
 0x724   :  { %v2515_v15 = vadd.f32 %v2514_v2, %v2417_v42  ;;  %v2526_v13 = vpop.f32.mrf.mxu3 }
 0x726   :  { %v2734_v37 = vadd.f32 %v2692_v16, %v2515_v15  ;;  %v2704_v16 = vpop.f32.mrf.mxu1  ;;  %v2145_v15 = vadd.f32 %v5202_v50, %v2080_v1 }
 0x728   :  { %2829 = vmatmul.f32.gmra.mxu2 %v2751_v28  ;;  %v2766_v40 = vmax.f32 %v2734_v37, 0.0  ;;  %v2756_v28 = vmax.f32 %v2145_v15, 0.0  ;;  %v2160_v15 = vadd.f32 %v5222_v30, %v2095_v62 }
 0x72a   :  { %2929 = vmatmul.f32.gmra.mxu3 %v2766_v40 }
 0x72b   :  { %v2420_v60 = vpop.f32.mrf.mxu2 }
 0x72c   :  { %v2518_v58 = vadd.f32 %v2517_v55, %v2420_v60  ;;  %v2529_v56 = vpop.f32.mrf.mxu3  ;;  %v2997_v60 = vld [vmem:[#allocation14 + $0x60] sm:$0xff] }
 0x72e   :  { %v2735_v0 = vadd.f32 %v2695_v47, %v2518_v58  ;;  %v2707_v44 = vpop.f32.mrf.mxu1 }
 0x730   :  { %2832 = vmatmul.f32.gmra.mxu2 %v2752_v19  ;;  %v2767_v2 = vmax.f32 %v2735_v0, 0.0 }
 0x732   :  { %2932 = vmatmul.f32.gmra.mxu3 %v2767_v2  ;;  %v2151_v2 = vadd.f32 %v5210_v48, %v2086_v36  ;;  %v2992_v48 = vld [vmem:[#allocation14 + $0x38] sm:$0xff] }
 0x733   :  { %v2423_v8 = vpop.f32.mrf.mxu2 }
 0x734   :  { %v2521_v27 = vadd.f32 %v2520_v25, %v2423_v8  ;;  %v2532_v39 = vpop.f32.mrf.mxu3  ;;  %v2994_v8 = vld [vmem:[#allocation14 + $0x48] sm:$0xff]  ;;  %v2758_v54 = vmax.f32 %v2151_v2, 0.0 }
 0x736   :  { %v2736_v5 = vadd.f32 %v2698_v34, %v2521_v27  ;;  %v2755_v34 = vmax.f32 %v2142_v26, 0.0  ;;  %v2710_v11 = vpop.f32.mrf.mxu1  ;;  %v2993_v27 = vld [vmem:[#allocation14 + $0x40] sm:$0xff]  ;;  %v2157_v26 = vadd.f32 %v5218_v4, %v2092_v33 }
 0x738   :  { %2835 = vmatmul.f32.gmra.mxu2 %v2753_v46  ;;  %v2768_v55 = vmax.f32 %v2736_v5, 0.0  ;;  %v2089_v46 = vadd.f32 %v5228_v45, %v5157_v51  ;;  %v2760_v61 = vmax.f32 %v2157_v26, 0.0 }
 0x73a   :  { %2935 = vmatmul.f32.gmra.mxu3 %v2768_v55  ;;  %v2154_v55 = vadd.f32 %v5214_v38, %v2089_v46 }
 0x73b   :  { %v2426_v31 = vpop.f32.mrf.mxu2 }
 0x73c   :  { %v2524_v47 = vadd.f32 %v2523_v63, %v2426_v31  ;;  %v2535_v37 = vpop.f32.mrf.mxu3  ;;  %v3000_v63 = vld [vmem:[#allocation14 + $0x78] sm:$0xff]  ;;  %v2759_v45 = vmax.f32 %v2154_v55, 0.0 }
 0x73d   :  { %3005 = vmatpush.msra.mxu0 %v3000_v63  ;;  %3086 = vmatpush.msra.mxu1 %v3000_v63  ;;  %v5517_v63 = vld [vmem:[#allocation42_spill] sm:$0xff] }
 0x73e   :  { %v2737_v14 = vadd.f32 %v2701_v59, %v2524_v47  ;;  %v2713_v53 = vpop.f32.mrf.mxu1  ;;  %v2999_v59 = vld [vmem:[#allocation14 + $0x70] sm:$0xff] }
 0x73f   :  { %3006 = vmatpush.msra.mxu0 %v2999_v59  ;;  %3087 = vmatpush.msra.mxu1 %v2999_v59 }
 0x740   :  { %2838 = vmatmul.f32.gmra.mxu2 %v2754_v20  ;;  %v2769_v25 = vmax.f32 %v2737_v14, 0.0  ;;  %v2988_v14 = vld [vmem:[#allocation14 + $0x18] sm:$0xff] }
 0x741   :  { %3007 = vmatpush.msra.mxu0 %v2998_v52  ;;  %3088 = vmatpush.msra.mxu1 %v2998_v52 }
 0x742   :  { %2938 = vmatmul.f32.gmra.mxu3 %v2769_v25 }
 0x743   :  { %v2429_v9 = vpop.f32.mrf.mxu2  ;;  %3008 = vmatpush.msra.mxu0 %v2997_v60  ;;  %3089 = vmatpush.msra.mxu1 %v2997_v60 }
 0x744   :  { %v2527_v35 = vadd.f32 %v2526_v13, %v2429_v9  ;;  %v2538_v0 = vpop.f32.mrf.mxu3  ;;  %v2995_v13 = vld [vmem:[#allocation14 + $0x50] sm:$0xff] }
 0x745   :  { %3009 = vmatpush.msra.mxu0 %v2996_v3  ;;  %3090 = vmatpush.msra.mxu1 %v2996_v3  ;;  %v2987_v9 = vld [vmem:[#allocation14 + $0x10] sm:$0xff] }
 0x746   :  { %v2738_v10 = vadd.f32 %v2704_v16, %v2527_v35  ;;  %v2716_v16 = vpop.f32.mrf.mxu1 }
 0x747   :  { %3010 = vmatpush.msra.mxu0 %v2995_v13  ;;  %3091 = vmatpush.msra.mxu1 %v2995_v13 }
 0x748   :  { %2841 = vmatmul.f32.gmra.mxu2 %v2755_v34  ;;  %v2770_v42 = vmax.f32 %v2738_v10, 0.0  ;;  %v2985_v10 = vld [vmem:[#allocation14] sm:$0xff] }
 0x749   :  { %3011 = vmatpush.msra.mxu0 %v2994_v8  ;;  %3092 = vmatpush.msra.mxu1 %v2994_v8 }
 0x74a   :  { %2941 = vmatmul.f32.gmra.mxu3 %v2770_v42 }
 0x74b   :  { %v2432_v41 = vpop.f32.mrf.mxu2  ;;  %3012 = vmatpush.msra.mxu0 %v2993_v27  ;;  %3093 = vmatpush.msra.mxu1 %v2993_v27 }
 0x74c   :  { %v2530_v12 = vadd.f32 %v2529_v56, %v2432_v41  ;;  %v2990_v56 = vld [vmem:[#allocation14 + $0x28] sm:$0xff]  ;;  %v2541_v47 = vpop.f32.mrf.mxu3 }
 0x74d   :  { %3013 = vmatpush.msra.mxu0 %v2992_v48  ;;  %3094 = vmatpush.msra.mxu1 %v2992_v48 }
 0x74e   :  { %v2739_v7 = vadd.f32 %v2707_v44, %v2530_v12  ;;  %v2989_v44 = vld [vmem:[#allocation14 + $0x20] sm:$0xff]  ;;  %v2719_v51 = vpop.f32.mrf.mxu1 }
 0x74f   :  { %3014 = vmatpush.msra.mxu0 %v2991_v29  ;;  %3095 = vmatpush.msra.mxu1 %v2991_v29 }
 0x750   :  { %2844 = vmatmul.f32.gmra.mxu2 %v2756_v28  ;;  %v2771_v40 = vmax.f32 %v2739_v7, 0.0  ;;  %v2761_v28 = vmax.f32 %v2160_v15, 0.0 }
 0x751   :  { %3015 = vmatpush.msra.mxu0 %v2990_v56  ;;  %3096 = vmatpush.msra.mxu1 %v2990_v56 }
 0x752   :  { %2944 = vmatmul.f32.gmra.mxu3 %v2771_v40  ;;  %v2163_v40 = vadd.f32 %v5517_v63, %v2098_v23 }
 0x753   :  { %v2435_v50 = vpop.f32.mrf.mxu2  ;;  %3016 = vmatpush.msra.mxu0 %v2989_v44  ;;  %3097 = vmatpush.msra.mxu1 %v2989_v44 }
 0x754   :  { %v2533_v58 = vadd.f32 %v2532_v39, %v2435_v50  ;;  %v2986_v39 = vld [vmem:[#allocation14 + $0x8] sm:$0xff]  ;;  %v2544_v1 = vpop.f32.mrf.mxu3  ;;  %v2762_v59 = vmax.f32 %v2163_v40, 0.0 }
 0x755   :  { %3017 = vmatpush.msra.mxu0 %v2988_v14  ;;  %3098 = vmatpush.msra.mxu1 %v2988_v14 }
 0x756   :  { %v2740_v19 = vadd.f32 %v2710_v11, %v2533_v58  ;;  %v2722_v42 = vpop.f32.mrf.mxu1 }
 0x757   :  { %3018 = vmatpush.msra.mxu0 %v2987_v9  ;;  %3099 = vmatpush.msra.mxu1 %v2987_v9 }
 0x758   :  { %2847 = vmatmul.f32.gmra.mxu2 %v2757_v49  ;;  %v2772_v18 = vmax.f32 %v2740_v19, 0.0 }
 0x759   :  { %3019 = vmatpush.msra.mxu0 %v2986_v39  ;;  %3100 = vmatpush.msra.mxu1 %v2986_v39 }
 0x75a   :  { %2947 = vmatmul.f32.gmra.mxu3 %v2772_v18 }
 0x75b   :  { %v2438_v22 = vpop.f32.mrf.mxu2  ;;  %3020 = vmatpush.msra.mxu0 %v2985_v10  ;;  %3101 = vmatpush.msra.mxu1 %v2985_v10 }
 0x75c   :  { %v2536_v24 = vadd.f32 %v2535_v37, %v2438_v22  ;;  %v2547_v37 = vpop.f32.mrf.mxu3 }
 0x75e   :  { %v2741_v17 = vadd.f32 %v2713_v53, %v2536_v24  ;;  %v2725_v32 = vpop.f32.mrf.mxu1 }
 0x760   :  { %2850 = vmatmul.f32.gmra.mxu2 %v2758_v54  ;;  %v2773_v5 = vmax.f32 %v2741_v17, 0.0 }
 0x762   :  { %2950 = vmatmul.f32.gmra.mxu3 %v2773_v5 }
 0x763   :  { %v2441_v31 = vpop.f32.mrf.mxu2 }
 0x764   :  { %v2539_v20 = vadd.f32 %v2538_v0, %v2441_v31  ;;  %v2550_v52 = vpop.f32.mrf.mxu3  ;;  %v5293_v0 = vld [vmem:[%s5382_s7 + $0x1] ss:$0 sm:$0xff] }
 0x766   :  { %v2742_v25 = vadd.f32 %v2716_v16, %v2539_v20  ;;  %v2728_v58 = vpop.f32.mrf.mxu1 }
 0x768   :  { %2853 = vmatmul.f32.gmra.mxu2 %v2759_v45  ;;  %v2774_v38 = vmax.f32 %v2742_v25, 0.0 }
 0x76a   :  { %2953 = vmatmul.f32.gmra.mxu3 %v2774_v38 }
 0x76b   :  { %v2444_v35 = vpop.f32.mrf.mxu2 }
 0x76c   :  { %v2542_v34 = vadd.f32 %v2541_v47, %v2444_v35 }
 0x76e   :  { %v2743_v11 = vadd.f32 %v2719_v51, %v2542_v34 }
 0x770   :  { %2856 = vmatmul.f32.gmra.mxu2 %v2760_v61  ;;  %v2775_v4 = vmax.f32 %v2743_v11, 0.0 }
 0x772   :  { %2956 = vmatmul.f32.gmra.mxu3 %v2775_v4 }
 0x773   :  { %v2447_v41 = vpop.f32.mrf.mxu2 }
 0x774   :  { %v2545_v12 = vadd.f32 %v2544_v1, %v2447_v41 }
 0x776   :  { %v2744_v7 = vadd.f32 %v2722_v42, %v2545_v12 }
 0x778   :  { %2859 = vmatmul.f32.gmra.mxu2 %v2761_v28  ;;  %v2776_v57 = vmax.f32 %v2744_v7, 0.0 }
 0x77a   :  { %2959 = vmatmul.f32.gmra.mxu3 %v2776_v57 }
 0x77b   :  { %v2450_v53 = vpop.f32.mrf.mxu2 }
 0x77c   :  { %v2548_v43 = vadd.f32 %v2547_v37, %v2450_v53 }
 0x77e   :  { %v2745_v50 = vadd.f32 %v2725_v32, %v2548_v43 }
 0x780   :  { %2862 = vmatmul.f32.gmra.mxu2 %v2762_v59  ;;  %v2777_v30 = vmax.f32 %v2745_v50, 0.0 }
 0x782   :  { %2962 = vmatmul.f32.gmra.mxu3 %v2777_v30 }
 0x783   :  { %v2453_v60 = vpop.f32.mrf.mxu2 }
 0x784   :  { %v2551_v49 = vadd.f32 %v2550_v52, %v2453_v60 }
 0x786   :  { %v2746_v6 = vadd.f32 %v2728_v58, %v2551_v49 }
 0x788   :  { %v2778_v36 = vmax.f32 %v2746_v6, 0.0 }
 0x78a   :  { %2965 = vmatmul.f32.gmra.mxu3 %v2778_v36 }
 0x78b   :  { %v2818_v19 = vpop.f32.mrf.mxu2 }
 0x78c   :  { %v2819_v3 = vadd.f32 %v5287_v21, %v2818_v19 }
 0x78e   :  { %v2866_v18 = vmax.f32 %v2819_v3, 0.0 }
 0x790   :  { %3021 = vmatmul.f32.vlgmr.msra.gmra.mxu0 %v2866_v18 }
 0x793   :  { %v2821_v2 = vpop.f32.mrf.mxu2 }
 0x794   :  { %v2822_v13 = vadd.f32 %v5287_v21, %v2821_v2 }
 0x795   :  { %v2921_v22 = vpop.f32.mrf.mxu3 }
 0x796   :  { %v2867_v8 = vmax.f32 %v2822_v13, 0.0  ;;  %v2922_v16 = vadd.f32 %v5293_v0, %v2921_v22 }
 0x798   :  { %3024 = vmatmul.f32.gmra.mxu0 %v2867_v8  ;;  %v2969_v27 = vmax.f32 %v2922_v16, 0.0 }
 0x79a   :  { %3102 = vmatmul.f32.vlgmr.msra.gmra.mxu1 %v2969_v27 }
 0x79b   :  { %v2824_v24 = vpop.f32.mrf.mxu2 }
 0x79c   :  { %v2825_v54 = vadd.f32 %v5287_v21, %v2824_v24 }
 0x79d   :  { %v2924_v46 = vpop.f32.mrf.mxu3 }
 0x79e   :  { %v2868_v17 = vmax.f32 %v2825_v54, 0.0  ;;  %v2925_v48 = vadd.f32 %v5293_v0, %v2924_v46 }
 0x7a0   :  { %3027 = vmatmul.f32.gmra.mxu0 %v2868_v17  ;;  %v2970_v5 = vmax.f32 %v2925_v48, 0.0 }
 0x7a2   :  { %3105 = vmatmul.f32.gmra.mxu1 %v2970_v5 }
 0x7a3   :  { %v2827_v55 = vpop.f32.mrf.mxu2 }
 0x7a4   :  { %v2828_v29 = vadd.f32 %v5287_v21, %v2827_v55 }
 0x7a5   :  { %v2927_v31 = vpop.f32.mrf.mxu3 }
 0x7a6   :  { %v2869_v56 = vmax.f32 %v2828_v29, 0.0  ;;  %v2928_v47 = vadd.f32 %v5293_v0, %v2927_v31 }
 0x7a8   :  { %3030 = vmatmul.f32.gmra.mxu0 %v2869_v56  ;;  %v2971_v44 = vmax.f32 %v2928_v47, 0.0 }
 0x7aa   :  { %3108 = vmatmul.f32.gmra.mxu1 %v2971_v44 }
 0x7ab   :  { %v2830_v20 = vpop.f32.mrf.mxu2 }
 0x7ac   :  { %v2831_v51 = vadd.f32 %v5287_v21, %v2830_v20 }
 0x7ad   :  { %v2930_v45 = vpop.f32.mrf.mxu3 }
 0x7ae   :  { %v2870_v33 = vmax.f32 %v2831_v51, 0.0  ;;  %v2931_v14 = vadd.f32 %v5293_v0, %v2930_v45 }
 0x7b0   :  { %3033 = vmatmul.f32.gmra.mxu0 %v2870_v33  ;;  %v2972_v25 = vmax.f32 %v2931_v14, 0.0 }
 0x7b2   :  { %3111 = vmatmul.f32.gmra.mxu1 %v2972_v25 }
 0x7b3   :  { %v2833_v38 = vpop.f32.mrf.mxu2 }
 0x7b4   :  { %v2834_v26 = vadd.f32 %v5287_v21, %v2833_v38 }
 0x7b5   :  { %v2933_v9 = vpop.f32.mrf.mxu3 }
 0x7b6   :  { %v2871_v35 = vmax.f32 %v2834_v26, 0.0  ;;  %v2934_v39 = vadd.f32 %v5293_v0, %v2933_v9 }
 0x7b8   :  { %3036 = vmatmul.f32.gmra.mxu0 %v2871_v35  ;;  %v2973_v34 = vmax.f32 %v2934_v39, 0.0  ;;  %v5328_v39 = vld [vmem:[%s5384_s9] ss:$0 sm:$0xff]  ;;  %s3719_s9 = smov [#allocation16]  }
 0x7b9   :  { %s3171_s0 = sshll.u32 %s3719_s9, 4  ;;  %s3172_s0 = int_to_ptr.vmem [resolvable:$true] %s3171_s0 }
 0x7ba   :  { %3114 = vmatmul.f32.gmra.mxu1 %v2973_v34 }
 0x7bb   :  { %v2836_v1 = vpop.f32.mrf.mxu2 }
 0x7bc   :  { %v2837_v61 = vadd.f32 %v5287_v21, %v2836_v1 }
 0x7bd   :  { %v2936_v62 = vpop.f32.mrf.mxu3 }
 0x7be   :  { %v2872_v10 = vmax.f32 %v2837_v61, 0.0  ;;  %v2937_v11 = vadd.f32 %v5293_v0, %v2936_v62 }
 0x7c0   :  { %3039 = vmatmul.f32.gmra.mxu0 %v2872_v10  ;;  %v2974_v42 = vmax.f32 %v2937_v11, 0.0 }
 0x7c2   :  { %3117 = vmatmul.f32.gmra.mxu1 %v2974_v42 }
 0x7c3   :  { %v2839_v4 = vpop.f32.mrf.mxu2 }
 0x7c4   :  { %v2840_v15 = vadd.f32 %v5287_v21, %v2839_v4 }
 0x7c5   :  { %v2939_v41 = vpop.f32.mrf.mxu3 }
 0x7c6   :  { %v2873_v12 = vmax.f32 %v2840_v15, 0.0  ;;  %v2940_v28 = vadd.f32 %v5293_v0, %v2939_v41 }
 0x7c8   :  { %3042 = vmatmul.f32.gmra.mxu0 %v2873_v12  ;;  %v2975_v23 = vmax.f32 %v2940_v28, 0.0 }
 0x7ca   :  { %3120 = vmatmul.f32.gmra.mxu1 %v2975_v23 }
 0x7cb   :  { %v2842_v7 = vpop.f32.mrf.mxu2 }
 0x7cc   :  { %v2843_v37 = vadd.f32 %v5287_v21, %v2842_v7 }
 0x7cd   :  { %v2942_v57 = vpop.f32.mrf.mxu3 }
 0x7ce   :  { %v2874_v32 = vmax.f32 %v2843_v37, 0.0  ;;  %v2943_v63 = vadd.f32 %v5293_v0, %v2942_v57 }
 0x7d0   :  { %3045 = vmatmul.f32.gmra.mxu0 %v2874_v32  ;;  %v2976_v40 = vmax.f32 %v2943_v63, 0.0 }
 0x7d2   :  { %3123 = vmatmul.f32.gmra.mxu1 %v2976_v40 }
 0x7d3   :  { %v2845_v53 = vpop.f32.mrf.mxu2 }
 0x7d4   :  { %v2846_v43 = vadd.f32 %v5287_v21, %v2845_v53 }
 0x7d5   :  { %v2945_v59 = vpop.f32.mrf.mxu3 }
 0x7d6   :  { %v2875_v50 = vmax.f32 %v2846_v43, 0.0  ;;  %v2946_v30 = vadd.f32 %v5293_v0, %v2945_v59 }
 0x7d8   :  { %3048 = vmatmul.f32.gmra.mxu0 %v2875_v50  ;;  %v2977_v52 = vmax.f32 %v2946_v30, 0.0 }
 0x7da   :  { %3126 = vmatmul.f32.gmra.mxu1 %v2977_v52 }
 0x7db   :  { %v2848_v60 = vpop.f32.mrf.mxu2 }
 0x7dc   :  { %v2849_v58 = vadd.f32 %v5287_v21, %v2848_v60 }
 0x7dd   :  { %v2948_v49 = vpop.f32.mrf.mxu3 }
 0x7de   :  { %v2876_v6 = vmax.f32 %v2849_v58, 0.0  ;;  %v2949_v36 = vadd.f32 %v5293_v0, %v2948_v49 }
 0x7e0   :  { %3051 = vmatmul.f32.gmra.mxu0 %v2876_v6  ;;  %v2978_v19 = vmax.f32 %v2949_v36, 0.0 }
 0x7e2   :  { %3129 = vmatmul.f32.gmra.mxu1 %v2978_v19 }
 0x7e3   :  { %v2851_v3 = vpop.f32.mrf.mxu2 }
 0x7e4   :  { %v2852_v18 = vadd.f32 %v5287_v21, %v2851_v3 }
 0x7e5   :  { %v2951_v2 = vpop.f32.mrf.mxu3 }
 0x7e6   :  { %v2877_v13 = vmax.f32 %v2852_v18, 0.0  ;;  %v2952_v22 = vadd.f32 %v5293_v0, %v2951_v2 }
 0x7e8   :  { %3054 = vmatmul.f32.gmra.mxu0 %v2877_v13  ;;  %v2979_v8 = vmax.f32 %v2952_v22, 0.0 }
 0x7ea   :  { %3132 = vmatmul.f32.gmra.mxu1 %v2979_v8 }
 0x7eb   :  { %v2854_v16 = vpop.f32.mrf.mxu2 }
 0x7ec   :  { %v2855_v27 = vadd.f32 %v5287_v21, %v2854_v16 }
 0x7ed   :  { %v2954_v24 = vpop.f32.mrf.mxu3 }
 0x7ee   :  { %v2878_v54 = vmax.f32 %v2855_v27, 0.0  ;;  %v2955_v46 = vadd.f32 %v5293_v0, %v2954_v24 }
 0x7f0   :  { %3057 = vmatmul.f32.gmra.mxu0 %v2878_v54  ;;  %v2980_v17 = vmax.f32 %v2955_v46, 0.0 }
 0x7f2   :  { %3135 = vmatmul.f32.gmra.mxu1 %v2980_v17 }
 0x7f3   :  { %v2857_v48 = vpop.f32.mrf.mxu2 }
 0x7f4   :  { %v2858_v5 = vadd.f32 %v5287_v21, %v2857_v48 }
 0x7f5   :  { %v2957_v55 = vpop.f32.mrf.mxu3 }
 0x7f6   :  { %v2879_v29 = vmax.f32 %v2858_v5, 0.0  ;;  %v2958_v31 = vadd.f32 %v5293_v0, %v2957_v55 }
 0x7f8   :  { %3060 = vmatmul.f32.gmra.mxu0 %v2879_v29  ;;  %v2981_v56 = vmax.f32 %v2958_v31, 0.0 }
 0x7fa   :  { %3138 = vmatmul.f32.gmra.mxu1 %v2981_v56 }
 0x7fb   :  { %v2860_v47 = vpop.f32.mrf.mxu2 }
 0x7fc   :  { %v2861_v44 = vadd.f32 %v5287_v21, %v2860_v47 }
 0x7fd   :  { %v2960_v20 = vpop.f32.mrf.mxu3 }
 0x7fe   :  { %v2880_v51 = vmax.f32 %v2861_v44, 0.0  ;;  %v2961_v45 = vadd.f32 %v5293_v0, %v2960_v20 }
 0x800   :  { %3063 = vmatmul.f32.gmra.mxu0 %v2880_v51  ;;  %v2982_v33 = vmax.f32 %v2961_v45, 0.0 }
 0x802   :  { %3141 = vmatmul.f32.gmra.mxu1 %v2982_v33 }
 0x803   :  { %v2863_v14 = vpop.f32.mrf.mxu2 }
 0x804   :  { %v2864_v25 = vadd.f32 %v5287_v21, %v2863_v14 }
 0x805   :  { %v2963_v38 = vpop.f32.mrf.mxu3 }
 0x806   :  { %v2881_v26 = vmax.f32 %v2864_v25, 0.0  ;;  %v2964_v9 = vadd.f32 %v5293_v0, %v2963_v38 }
 0x808   :  { %3066 = vmatmul.f32.gmra.mxu0 %v2881_v26  ;;  %v2983_v35 = vmax.f32 %v2964_v9, 0.0 }
 0x80a   :  { %3144 = vmatmul.f32.gmra.mxu1 %v2983_v35 }
 0x80d   :  { %v3022_v34 = vpop.f32.mrf.mxu0  ;;  %v2966_v1 = vpop.f32.mrf.mxu3 }
 0x80e   :  { %v3023_v61 = vadd.f32 %v5328_v39, %v3022_v34  ;;  %v2967_v62 = vadd.f32 %v5293_v0, %v2966_v1 }
 0x810   :  { %3070 = vst [vmem:[#allocation16] sm:$0xff] %v3023_v61  ;;  %v2984_v21 = vmax.f32 %v2967_v62, 0.0 }
 0x812   :  { %3147 = vmatmul.f32.gmra.mxu1 %v2984_v21 }
 0x815   :  { %v3025_v10 = vpop.f32.mrf.mxu0 }
 0x816   :  { %v3026_v11 = vadd.f32 %v5328_v39, %v3025_v10 }
 0x817   :  { %v3103_v42 = vpop.f32.mrf.mxu1 }
 0x818   :  { %3071 = vst [vmem:[#allocation16 + $0x8] sm:$0xff] %v3026_v11  ;;  %v3104_v4 = vadd.f32 %v5328_v39, %v3103_v42 }
 0x81a   :  { %3151 = vst [vmem:[#allocation17] sm:$0xff] %v3104_v4 }
 0x81d   :  { %v3028_v15 = vpop.f32.mrf.mxu0 }
 0x81e   :  { %v3029_v41 = vadd.f32 %v5328_v39, %v3028_v15 }
 0x81f   :  { %v3106_v12 = vpop.f32.mrf.mxu1 }
 0x820   :  { %3072 = vst [vmem:[#allocation16 + $0x10] sm:$0xff] %v3029_v41  ;;  %v3107_v28 = vadd.f32 %v5328_v39, %v3106_v12 }
 0x822   :  { %3152 = vst [vmem:[#allocation17 + $0x8] sm:$0xff] %v3107_v28 }
 0x825   :  { %v3031_v0 = vpop.f32.mrf.mxu0 }
 0x826   :  { %v3032_v23 = vadd.f32 %v5328_v39, %v3031_v0 }
 0x827   :  { %v3109_v7 = vpop.f32.mrf.mxu1 }
 0x828   :  { %3073 = vst [vmem:[#allocation16 + $0x18] sm:$0xff] %v3032_v23  ;;  %v3110_v37 = vadd.f32 %v5328_v39, %v3109_v7 }
 0x82a   :  { %3153 = vst [vmem:[#allocation17 + $0x10] sm:$0xff] %v3110_v37 }
 0x82d   :  { %v3034_v57 = vpop.f32.mrf.mxu0 }
 0x82e   :  { %v3035_v32 = vadd.f32 %v5328_v39, %v3034_v57 }
 0x82f   :  { %v3112_v63 = vpop.f32.mrf.mxu1 }
 0x830   :  { %3074 = vst [vmem:[#allocation16 + $0x20] sm:$0xff] %v3035_v32  ;;  %v3113_v40 = vadd.f32 %v5328_v39, %v3112_v63 }
 0x832   :  { %3154 = vst [vmem:[#allocation17 + $0x18] sm:$0xff] %v3113_v40 }
 0x835   :  { %v3037_v53 = vpop.f32.mrf.mxu0 }
 0x836   :  { %v3038_v43 = vadd.f32 %v5328_v39, %v3037_v53 }
 0x837   :  { %v3115_v59 = vpop.f32.mrf.mxu1 }
 0x838   :  { %3075 = vst [vmem:[#allocation16 + $0x28] sm:$0xff] %v3038_v43  ;;  %v3116_v50 = vadd.f32 %v5328_v39, %v3115_v59 }
 0x83a   :  { %3155 = vst [vmem:[#allocation17 + $0x20] sm:$0xff] %v3116_v50 }
 0x83d   :  { %v3040_v30 = vpop.f32.mrf.mxu0 }
 0x83e   :  { %v3041_v52 = vadd.f32 %v5328_v39, %v3040_v30 }
 0x83f   :  { %v3118_v60 = vpop.f32.mrf.mxu1 }
 0x840   :  { %3076 = vst [vmem:[#allocation16 + $0x30] sm:$0xff] %v3041_v52  ;;  %v3119_v58 = vadd.f32 %v5328_v39, %v3118_v60 }
 0x842   :  { %3156 = vst [vmem:[#allocation17 + $0x28] sm:$0xff] %v3119_v58 }
 0x845   :  { %v3043_v49 = vpop.f32.mrf.mxu0 }
 0x846   :  { %v3044_v6 = vadd.f32 %v5328_v39, %v3043_v49 }
 0x847   :  { %v3121_v36 = vpop.f32.mrf.mxu1 }
 0x848   :  { %3077 = vst [vmem:[#allocation16 + $0x38] sm:$0xff] %v3044_v6  ;;  %v3122_v19 = vadd.f32 %v5328_v39, %v3121_v36 }
 0x84a   :  { %3157 = vst [vmem:[#allocation17 + $0x30] sm:$0xff] %v3122_v19 }
 0x84d   :  { %v3046_v3 = vpop.f32.mrf.mxu0 }
 0x84e   :  { %v3047_v18 = vadd.f32 %v5328_v39, %v3046_v3 }
 0x84f   :  { %v3124_v2 = vpop.f32.mrf.mxu1 }
 0x850   :  { %3078 = vst [vmem:[#allocation16 + $0x40] sm:$0xff] %v3047_v18  ;;  %v3125_v13 = vadd.f32 %v5328_v39, %v3124_v2 }
 0x852   :  { %3158 = vst [vmem:[#allocation17 + $0x38] sm:$0xff] %v3125_v13 }
 0x855   :  { %v3049_v22 = vpop.f32.mrf.mxu0 }
 0x856   :  { %v3050_v8 = vadd.f32 %v5328_v39, %v3049_v22 }
 0x857   :  { %v3127_v16 = vpop.f32.mrf.mxu1 }
 0x858   :  { %3079 = vst [vmem:[#allocation16 + $0x48] sm:$0xff] %v3050_v8  ;;  %v3128_v27 = vadd.f32 %v5328_v39, %v3127_v16 }
 0x85a   :  { %3159 = vst [vmem:[#allocation17 + $0x40] sm:$0xff] %v3128_v27 }
 0x85d   :  { %v3052_v24 = vpop.f32.mrf.mxu0 }
 0x85e   :  { %v3053_v54 = vadd.f32 %v5328_v39, %v3052_v24 }
 0x85f   :  { %v3130_v46 = vpop.f32.mrf.mxu1 }
 0x860   :  { %3080 = vst [vmem:[#allocation16 + $0x50] sm:$0xff] %v3053_v54  ;;  %v3131_v17 = vadd.f32 %v5328_v39, %v3130_v46 }
 0x862   :  { %3160 = vst [vmem:[#allocation17 + $0x48] sm:$0xff] %v3131_v17 }
 0x865   :  { %v3055_v48 = vpop.f32.mrf.mxu0 }
 0x866   :  { %v3056_v5 = vadd.f32 %v5328_v39, %v3055_v48 }
 0x867   :  { %v3133_v55 = vpop.f32.mrf.mxu1 }
 0x868   :  { %3081 = vst [vmem:[#allocation16 + $0x58] sm:$0xff] %v3056_v5  ;;  %v3134_v29 = vadd.f32 %v5328_v39, %v3133_v55 }
 0x86a   :  { %3161 = vst [vmem:[#allocation17 + $0x50] sm:$0xff] %v3134_v29 }
 0x86d   :  { %v3058_v31 = vpop.f32.mrf.mxu0 }
 0x86e   :  { %v3059_v56 = vadd.f32 %v5328_v39, %v3058_v31 }
 0x86f   :  { %v3136_v47 = vpop.f32.mrf.mxu1 }
 0x870   :  { %3082 = vst [vmem:[#allocation16 + $0x60] sm:$0xff] %v3059_v56  ;;  %v3137_v44 = vadd.f32 %v5328_v39, %v3136_v47 }
 0x872   :  { %3162 = vst [vmem:[#allocation17 + $0x58] sm:$0xff] %v3137_v44 }
 0x875   :  { %v3061_v20 = vpop.f32.mrf.mxu0 }
 0x876   :  { %v3062_v51 = vadd.f32 %v5328_v39, %v3061_v20 }
 0x877   :  { %v3139_v45 = vpop.f32.mrf.mxu1 }
 0x878   :  { %3083 = vst [vmem:[#allocation16 + $0x68] sm:$0xff] %v3062_v51  ;;  %v3140_v33 = vadd.f32 %v5328_v39, %v3139_v45 }
 0x87a   :  { %3163 = vst [vmem:[#allocation17 + $0x60] sm:$0xff] %v3140_v33 }
 0x87d   :  { %v3064_v14 = vpop.f32.mrf.mxu0 }
 0x87e   :  { %v3065_v25 = vadd.f32 %v5328_v39, %v3064_v14 }
 0x87f   :  { %v3142_v38 = vpop.f32.mrf.mxu1 }
 0x880   :  { %3084 = vst [vmem:[#allocation16 + $0x70] sm:$0xff] %v3065_v25  ;;  %v3143_v26 = vadd.f32 %v5328_v39, %v3142_v38 }
 0x882   :  { %3164 = vst [vmem:[#allocation17 + $0x68] sm:$0xff] %v3143_v26 }
 0x885   :  { %v3067_v9 = vpop.f32.mrf.mxu0 }
 0x886   :  { %v3068_v35 = vadd.f32 %v5328_v39, %v3067_v9 }
 0x887   :  { %v3145_v34 = vpop.f32.mrf.mxu1 }
 0x888   :  { %3085 = vst [vmem:[#allocation16 + $0x78] sm:$0xff] %v3068_v35  ;;  %v3146_v1 = vadd.f32 %v5328_v39, %v3145_v34 }
 0x889   :  { %3179 = dma.vmem_to_hbm [thread:$0]  %s3172_s0, 2048, %s3174_s19, [#allocation7], %s3711_s25, %s3711_s25, %s3712_s26  }
 0x88a   :  { %3165 = vst [vmem:[#allocation17 + $0x70] sm:$0xff] %v3146_v1 }
 0x88f   :  { %v3148_v61 = vpop.f32.mrf.mxu1 }
 0x890   :  { %v3149_v62 = vadd.f32 %v5328_v39, %v3148_v61 }
 0x892   :  { %3166 = vst [vmem:[#allocation17 + $0x78] sm:$0xff] %v3149_v62 }
 0x893   :  { %3192 = dma.vmem_to_hbm [thread:$0]  %s3185_s20, 2048, %s3187_s10, [#allocation18], %s3711_s25, %s3711_s25, %s3712_s26  }
 0x894   :  { %3706 = dma.done.wait [#allocation7], 2048  }
 0x895   :  { %3707 = vsyncadd [#allocation7], 4294965248 }
 0x896   :  { %3708 = dma.done.wait [#allocation18], 2048  }
 0x897   :  { %3709 = vsyncadd [#allocation18], 4294965248 }
 0x898   :  { %3201 = vsyncpa [#allocation6], 1 }
 0x899   :  { %3202 = vsyncpa [#allocation9], 1 }
 0x89a   :  { %3203 = vsyncpa [#allocation12], 1 }
 0x89b   :  { %3204 = vsyncpa [#allocation15], 1 }
 0x89c   :  { %3205 = vsyncpa [#allocation7], 1 }
 0x89d   :  { %3206 = vsyncpa [#allocation18], 1 }
 0x89e   :  { %3207 = vsyncmov [#allocation4] }
 0x8a1   :  { %s3208_s11 = vpop.sfrf %3207 }
 0x8a2   :  { %p3215_p0 = scmp.ne.s32.totalorder %s3208_s11, 0 }
 0x8a4   :  { %3212 = shalt.err (%p3215_p0)  }

</bundles_post_ra>
